<compile_context>
chip_gen: v5e
topology: v5e:2x2
jax: 0.10.0
libtpu: 0.0.40
codegen_flags: <defaults>
</compile_context>

<pallas_src>
import functools

import jax
import jax.numpy as jnp
from jax.experimental import pallas as pl
from jax.experimental.pallas import tpu as pltpu


# ----------------------------------------------------------------------------
# Fused Pallas kernel
# ----------------------------------------------------------------------------

def _residual_block_kernel(x_ref, w1_ref, b1_ref, w2_ref, b2_ref, wp_ref,
                           bp_ref, o_ref, ypad_ref, *, H, W, K, PAD, Cin, P):
    """Fused ResidualBlock forward for one batch element.

    x_ref   : (1, H+2*PAD, W+2*PAD, Cin)  bf16 zero-padded input
    w1_ref  : (K, K*Cin, P)               bf16 conv1 weights, KW folded into K
    w2_ref  : (K, K*P,   P)               bf16 conv2 weights
    wp_ref  : (Cin, P)                    bf16 1x1 projector weights
    b*_ref  : (1, P)                      fp32 biases
    o_ref   : (1, H, W, P)                fp32 output
    ypad_ref: (H+2*PAD, W+2*PAD, P)       bf16 VMEM scratch (padded relu(conv1))
    """
    x = x_ref[0]                                            # (Hp, Wp, Cin) bf16

    # ---- conv1 + ReLU : width taps folded into contraction (K = KW*Cin) ----
    xcol = jnp.concatenate([x[:, dx:dx + W, :] for dx in range(K)], axis=-1)
    acc1 = jnp.zeros((H * W, P), jnp.float32)
    for dy in range(K):
        patch = xcol[dy:dy + H].reshape(H * W, K * Cin)
        acc1 = acc1 + jnp.dot(patch, w1_ref[dy],
                              preferred_element_type=jnp.float32)
    y1 = jnp.maximum(acc1 + b1_ref[...], 0.0)               # fp32 epilogue

    # ---- stage relu(conv1) into a zero-padded VMEM scratch (never hits HBM) ----
    ypad_ref[...] = jnp.zeros_like(ypad_ref)
    ypad_ref[PAD:PAD + H, PAD:PAD + W, :] = (
        y1.reshape(H, W, P).astype(ypad_ref.dtype))
    yp = ypad_ref[...]

    # ---- conv2 + ReLU ----
    ycol = jnp.concatenate([yp[:, dx:dx + W, :] for dx in range(K)], axis=-1)
    acc2 = jnp.zeros((H * W, P), jnp.float32)
    for dy in range(K):
        patch = ycol[dy:dy + H].reshape(H * W, K * P)
        acc2 = acc2 + jnp.dot(patch, w2_ref[dy],
                              preferred_element_type=jnp.float32)
    y2 = jnp.maximum(acc2 + b2_ref[...], 0.0)

    # ---- 1x1 projector on unpadded input + residual add + final ReLU ----
    xin = x[PAD:PAD + H, PAD:PAD + W, :].reshape(H * W, Cin)
    proj = jnp.dot(xin, wp_ref[...],
                   preferred_element_type=jnp.float32) + bp_ref[...]
    out = jnp.maximum(proj + y2, 0.0)
    o_ref[0] = out.reshape(H, W, P).astype(o_ref.dtype)


# ----------------------------------------------------------------------------
# Wrapper
# ----------------------------------------------------------------------------

def residual_block(params, x):
    """x: (B, H, W, in_planes) fp32 NHWC -> (B, H, W, planes) fp32."""
    B, H, W, Cin = x.shape
    k = params["ksize"]
    P = params["b1"].shape[-1]
    # TODO(synk): dilation > 1 in the reference keeps padding=(k-1)//2 and thus
    # shrinks the spatial size (breaking the residual add); only (1,1) is done.
    assert params["dilation"] == (1, 1)
    pad = (k - 1) // 2
    Hp, Wp = H + 2 * pad, W + 2 * pad

    xp = jnp.pad(x, ((0, 0), (pad, pad), (pad, pad), (0, 0))).astype(jnp.bfloat16)
    w1 = params["w1"].reshape(k, k * Cin, P)
    w2 = params["w2"].reshape(k, k * P, P)
    wp = params["wp"].reshape(Cin, P)

    kern = functools.partial(_residual_block_kernel,
                             H=H, W=W, K=k, PAD=pad, Cin=Cin, P=P)
    return pl.pallas_call(
        kern,
        out_shape=jax.ShapeDtypeStruct((B, H, W, P), jnp.float32),
        grid=(B,),
        in_specs=[
            pl.BlockSpec((1, Hp, Wp, Cin), lambda b: (b, 0, 0, 0)),
            pl.BlockSpec((k, k * Cin, P), lambda b: (0, 0, 0)),
            pl.BlockSpec((1, P), lambda b: (0, 0)),
            pl.BlockSpec((k, k * P, P), lambda b: (0, 0, 0)),
            pl.BlockSpec((1, P), lambda b: (0, 0)),
            pl.BlockSpec((Cin, P), lambda b: (0, 0)),
            pl.BlockSpec((1, P), lambda b: (0, 0)),
        ],
        out_specs=pl.BlockSpec((1, H, W, P), lambda b: (b, 0, 0, 0)),
        scratch_shapes=[pltpu.VMEM((Hp, Wp, P), jnp.bfloat16)],
        compiler_params=pltpu.CompilerParams(
            dimension_semantics=("parallel",)),   # v7x: batch across 2 TCs
    )(xp, w1, params["b1"], w2, params["b2"], wp, params["bp"])


# ----------------------------------------------------------------------------
# Parameters (deterministic, synthetic) and pure-JAX reference
# ----------------------------------------------------------------------------

def init_params(key, in_planes, planes, kernel_size=3, dilation=(1, 1)):
    ks = jax.random.split(key, 6)

    def conv_w(k_, kh, kw, ci, co):
        fan_in = float(ci * kh * kw)
        w = jax.random.normal(k_, (kh, kw, ci, co), jnp.float32) / jnp.sqrt(fan_in)
        return w.astype(jnp.bfloat16)                         # bf16 in HBM

    return {
        "w1": conv_w(ks[0], kernel_size, kernel_size, in_planes, planes),
        "b1": jax.random.normal(ks[1], (1, planes), jnp.float32) * 0.01,
        "w2": conv_w(ks[2], kernel_size, kernel_size, planes, planes),
        "b2": jax.random.normal(ks[3], (1, planes), jnp.float32) * 0.01,
        "wp": conv_w(ks[4], 1, 1, in_planes, planes),
        "bp": jax.random.normal(ks[5], (1, planes), jnp.float32) * 0.01,
        "ksize": kernel_size,
        "dilation": dilation,
    }


def residual_block_ref(params, x):
    """Pure-JAX reference with the same bf16-operand / fp32-accum numerics."""
    k = params["ksize"]
    pad = (k - 1) // 2
    xb = x.astype(jnp.bfloat16)

    def conv(inp, w, b, p_):
        out = jax.lax.conv_general_dilated(
            inp, w, window_strides=(1, 1),
            padding=((p_, p_), (p_, p_)),
            dimension_numbers=("NHWC", "HWIO", "NHWC"),
            preferred_element_type=jnp.float32)
        return out + b.reshape(1, 1, 1, -1)

    y = jax.nn.relu(conv(xb, params["w1"], params["b1"], pad))
    y = jax.nn.relu(conv(y.astype(jnp.bfloat16), params["w2"], params["b2"], pad))
    px = conv(xb, params["wp"], params["bp"], 0)
    return jax.nn.relu(px + y)


# ----------------------------------------------------------------------------
# Main
# ----------------------------------------------------------------------------

if __name__ == "__main__":
    B, H, W = 2, 16, 16
    in_planes, planes = 64, 128

    key = jax.random.PRNGKey(0)
    pkey, xkey = jax.random.split(key)
    params = init_params(pkey, in_planes, planes)
    x = jax.random.normal(xkey, (B, H, W, in_planes), jnp.float32)

    out = residual_block(params, x)
    jax.block_until_ready(out)

    assert out.shape == (B, H, W, planes)
    assert jnp.all(jnp.isfinite(out))

    ref = residual_block_ref(params, x)
    rel_err = jnp.max(jnp.abs(out - ref)) / (jnp.max(jnp.abs(ref)) + 1e-6)
    assert rel_err < 2e-2, f"mismatch vs reference: rel err {rel_err}"

    print("KERNEL_OK")
</pallas_src>

<mosaic_0001>
module attributes {stable_mosaic.version = 11 : i64} {
  func.func @_residual_block_kernel(%arg0: i32, %arg1: memref<1x18x18x64xbf16, #tpu.memory_space<vmem>>, %arg2: memref<3x192x128xbf16, #tpu.memory_space<vmem>>, %arg3: memref<1x128xf32, #tpu.memory_space<vmem>>, %arg4: memref<3x384x128xbf16, #tpu.memory_space<vmem>>, %arg5: memref<1x128xf32, #tpu.memory_space<vmem>>, %arg6: memref<64x128xbf16, #tpu.memory_space<vmem>>, %arg7: memref<1x128xf32, #tpu.memory_space<vmem>>, %arg8: memref<1x16x16x128xf32, #tpu.memory_space<vmem>>, %arg9: memref<18x18x128xbf16, #tpu.memory_space<vmem>>) attributes {dimension_semantics = [#tpu.dimension_semantics<parallel>], iteration_bounds = array<i64: 2>, scalar_prefetch = 0 : i64, scratch_operands = 1 : i64, tpu.core_type = #tpu.core_type<tc>, window_params = [{transform_indices = @transform_0, window_bounds = array<i64: 1, 18, 18, 64>}, {pipeline_mode = #tpu.pipeline_mode<synchronous>, transform_indices = @transform_1, window_bounds = array<i64: 3, 192, 128>}, {pipeline_mode = #tpu.pipeline_mode<synchronous>, transform_indices = @transform_2, window_bounds = array<i64: 1, 128>}, {pipeline_mode = #tpu.pipeline_mode<synchronous>, transform_indices = @transform_3, window_bounds = array<i64: 3, 384, 128>}, {pipeline_mode = #tpu.pipeline_mode<synchronous>, transform_indices = @transform_4, window_bounds = array<i64: 1, 128>}, {pipeline_mode = #tpu.pipeline_mode<synchronous>, transform_indices = @transform_5, window_bounds = array<i64: 64, 128>}, {pipeline_mode = #tpu.pipeline_mode<synchronous>, transform_indices = @transform_6, window_bounds = array<i64: 1, 128>}, {transform_indices = @transform_7, window_bounds = array<i64: 1, 16, 16, 128>}]} {
    %c0 = arith.constant 0 : index
    %c0_0 = arith.constant 0 : index
    %c0_1 = arith.constant 0 : index
    %c0_2 = arith.constant 0 : index
    %0 = vector.load %arg1[%c0, %c0_0, %c0_1, %c0_2] : memref<1x18x18x64xbf16, #tpu.memory_space<vmem>>, vector<1x18x18x64xbf16>
    %1 = vector.shape_cast %0 : vector<1x18x18x64xbf16> to vector<18x18x64xbf16>
    %2 = vector.extract_strided_slice %1 {offsets = [0, 0, 0], sizes = [18, 16, 64], strides = [1, 1, 1]} : vector<18x18x64xbf16> to vector<18x16x64xbf16>
    %3 = vector.extract_strided_slice %1 {offsets = [0, 1, 0], sizes = [18, 16, 64], strides = [1, 1, 1]} : vector<18x18x64xbf16> to vector<18x16x64xbf16>
    %4 = vector.extract_strided_slice %1 {offsets = [0, 2, 0], sizes = [18, 16, 64], strides = [1, 1, 1]} : vector<18x18x64xbf16> to vector<18x16x64xbf16>
    %5 = tpu.concatenate %2, %3, %4 in 2 : vector<18x16x64xbf16>, vector<18x16x64xbf16>, vector<18x16x64xbf16> -> vector<18x16x192xbf16>
    %cst = arith.constant 0.000000e+00 : f32
    %6 = vector.broadcast %cst : f32 to vector<256x128xf32>
    %7 = vector.extract_strided_slice %5 {offsets = [0, 0, 0], sizes = [16, 16, 192], strides = [1, 1, 1]} : vector<18x16x192xbf16> to vector<16x16x192xbf16>
    %8 = vector.shape_cast %7 : vector<16x16x192xbf16> to vector<256x192xbf16>
    %c0_3 = arith.constant 0 : index
    %c0_4 = arith.constant 0 : index
    %c0_5 = arith.constant 0 : index
    %9 = vector.load %arg2[%c0_3, %c0_4, %c0_5] : memref<3x192x128xbf16, #tpu.memory_space<vmem>>, vector<1x192x128xbf16>
    %10 = vector.shape_cast %9 : vector<1x192x128xbf16> to vector<192x128xbf16>
    %cst_6 = arith.constant dense<0.000000e+00> : vector<256x128xf32>
    %11 = tpu.matmul %8, %10, %cst_6 {dimension_numbers = #tpu.dot_dimension_numbers<[1], [0], [0], [1], [0, 0, 1, 1], [], []>} : vector<256x192xbf16>, vector<192x128xbf16>, vector<256x128xf32> -> vector<256x128xf32>
    %12 = arith.addf %6, %11 : vector<256x128xf32>
    %13 = vector.extract_strided_slice %5 {offsets = [1, 0, 0], sizes = [16, 16, 192], strides = [1, 1, 1]} : vector<18x16x192xbf16> to vector<16x16x192xbf16>
    %14 = vector.shape_cast %13 : vector<16x16x192xbf16> to vector<256x192xbf16>
    %c1 = arith.constant 1 : index
    %c0_7 = arith.constant 0 : index
    %c0_8 = arith.constant 0 : index
    %15 = vector.load %arg2[%c1, %c0_7, %c0_8] : memref<3x192x128xbf16, #tpu.memory_space<vmem>>, vector<1x192x128xbf16>
    %16 = vector.shape_cast %15 : vector<1x192x128xbf16> to vector<192x128xbf16>
    %cst_9 = arith.constant dense<0.000000e+00> : vector<256x128xf32>
    %17 = tpu.matmul %14, %16, %cst_9 {dimension_numbers = #tpu.dot_dimension_numbers<[1], [0], [0], [1], [0, 0, 1, 1], [], []>} : vector<256x192xbf16>, vector<192x128xbf16>, vector<256x128xf32> -> vector<256x128xf32>
    %18 = arith.addf %12, %17 : vector<256x128xf32>
    %19 = vector.extract_strided_slice %5 {offsets = [2, 0, 0], sizes = [16, 16, 192], strides = [1, 1, 1]} : vector<18x16x192xbf16> to vector<16x16x192xbf16>
    %20 = vector.shape_cast %19 : vector<16x16x192xbf16> to vector<256x192xbf16>
    %c2 = arith.constant 2 : index
    %c0_10 = arith.constant 0 : index
    %c0_11 = arith.constant 0 : index
    %21 = vector.load %arg2[%c2, %c0_10, %c0_11] : memref<3x192x128xbf16, #tpu.memory_space<vmem>>, vector<1x192x128xbf16>
    %22 = vector.shape_cast %21 : vector<1x192x128xbf16> to vector<192x128xbf16>
    %cst_12 = arith.constant dense<0.000000e+00> : vector<256x128xf32>
    %23 = tpu.matmul %20, %22, %cst_12 {dimension_numbers = #tpu.dot_dimension_numbers<[1], [0], [0], [1], [0, 0, 1, 1], [], []>} : vector<256x192xbf16>, vector<192x128xbf16>, vector<256x128xf32> -> vector<256x128xf32>
    %24 = arith.addf %18, %23 : vector<256x128xf32>
    %c0_13 = arith.constant 0 : index
    %c0_14 = arith.constant 0 : index
    %25 = vector.load %arg3[%c0_13, %c0_14] : memref<1x128xf32, #tpu.memory_space<vmem>>, vector<1x128xf32>
    %26 = vector.broadcast %25 : vector<1x128xf32> to vector<256x128xf32>
    %27 = arith.addf %24, %26 : vector<256x128xf32>
    %cst_15 = arith.constant 0.000000e+00 : f32
    %28 = vector.broadcast %cst_15 : f32 to vector<256x128xf32>
    %29 = arith.maximumf %27, %28 : vector<256x128xf32>
    %cst_16 = arith.constant 0.000000e+00 : bf16
    %30 = vector.broadcast %cst_16 : bf16 to vector<18x18x128xbf16>
    %c0_17 = arith.constant 0 : index
    %c0_18 = arith.constant 0 : index
    %c0_19 = arith.constant 0 : index
    %31 = vector.load %arg9[%c0_17, %c0_18, %c0_19] : memref<18x18x128xbf16, #tpu.memory_space<vmem>>, vector<18x18x128xbf16>
    tpu.vector_store %arg9[%c0_17, %c0_18, %c0_19], %30 {strides = array<i32>} : memref<18x18x128xbf16, #tpu.memory_space<vmem>>, vector<18x18x128xbf16>,
    %32 = vector.shape_cast %29 : vector<256x128xf32> to vector<16x16x128xf32>
    %33 = arith.truncf %32 : vector<16x16x128xf32> to vector<16x16x128xbf16>
    %c1_20 = arith.constant 1 : index
    %c1_21 = arith.constant 1 : index
    %c0_22 = arith.constant 0 : index
    %34 = vector.load %arg9[%c1_20, %c1_21, %c0_22] : memref<18x18x128xbf16, #tpu.memory_space<vmem>>, vector<16x16x128xbf16>
    tpu.vector_store %arg9[%c1_20, %c1_21, %c0_22], %33 {strides = array<i32>} : memref<18x18x128xbf16, #tpu.memory_space<vmem>>, vector<16x16x128xbf16>,
    %c0_23 = arith.constant 0 : index
    %c0_24 = arith.constant 0 : index
    %c0_25 = arith.constant 0 : index
    %35 = vector.load %arg9[%c0_23, %c0_24, %c0_25] : memref<18x18x128xbf16, #tpu.memory_space<vmem>>, vector<18x18x128xbf16>
    %36 = vector.extract_strided_slice %35 {offsets = [0, 0, 0], sizes = [18, 16, 128], strides = [1, 1, 1]} : vector<18x18x128xbf16> to vector<18x16x128xbf16>
    %37 = vector.extract_strided_slice %35 {offsets = [0, 1, 0], sizes = [18, 16, 128], strides = [1, 1, 1]} : vector<18x18x128xbf16> to vector<18x16x128xbf16>
    %38 = vector.extract_strided_slice %35 {offsets = [0, 2, 0], sizes = [18, 16, 128], strides = [1, 1, 1]} : vector<18x18x128xbf16> to vector<18x16x128xbf16>
    %39 = tpu.concatenate %36, %37, %38 in 2 : vector<18x16x128xbf16>, vector<18x16x128xbf16>, vector<18x16x128xbf16> -> vector<18x16x384xbf16>
    %cst_26 = arith.constant 0.000000e+00 : f32
    %40 = vector.broadcast %cst_26 : f32 to vector<256x128xf32>
    %41 = vector.extract_strided_slice %39 {offsets = [0, 0, 0], sizes = [16, 16, 384], strides = [1, 1, 1]} : vector<18x16x384xbf16> to vector<16x16x384xbf16>
    %42 = vector.shape_cast %41 : vector<16x16x384xbf16> to vector<256x384xbf16>
    %c0_27 = arith.constant 0 : index
    %c0_28 = arith.constant 0 : index
    %c0_29 = arith.constant 0 : index
    %43 = vector.load %arg4[%c0_27, %c0_28, %c0_29] : memref<3x384x128xbf16, #tpu.memory_space<vmem>>, vector<1x384x128xbf16>
    %44 = vector.shape_cast %43 : vector<1x384x128xbf16> to vector<384x128xbf16>
    %cst_30 = arith.constant dense<0.000000e+00> : vector<256x128xf32>
    %45 = tpu.matmul %42, %44, %cst_30 {dimension_numbers = #tpu.dot_dimension_numbers<[1], [0], [0], [1], [0, 0, 1, 1], [], []>} : vector<256x384xbf16>, vector<384x128xbf16>, vector<256x128xf32> -> vector<256x128xf32>
    %46 = arith.addf %40, %45 : vector<256x128xf32>
    %47 = vector.extract_strided_slice %39 {offsets = [1, 0, 0], sizes = [16, 16, 384], strides = [1, 1, 1]} : vector<18x16x384xbf16> to vector<16x16x384xbf16>
    %48 = vector.shape_cast %47 : vector<16x16x384xbf16> to vector<256x384xbf16>
    %c1_31 = arith.constant 1 : index
    %c0_32 = arith.constant 0 : index
    %c0_33 = arith.constant 0 : index
    %49 = vector.load %arg4[%c1_31, %c0_32, %c0_33] : memref<3x384x128xbf16, #tpu.memory_space<vmem>>, vector<1x384x128xbf16>
    %50 = vector.shape_cast %49 : vector<1x384x128xbf16> to vector<384x128xbf16>
    %cst_34 = arith.constant dense<0.000000e+00> : vector<256x128xf32>
    %51 = tpu.matmul %48, %50, %cst_34 {dimension_numbers = #tpu.dot_dimension_numbers<[1], [0], [0], [1], [0, 0, 1, 1], [], []>} : vector<256x384xbf16>, vector<384x128xbf16>, vector<256x128xf32> -> vector<256x128xf32>
    %52 = arith.addf %46, %51 : vector<256x128xf32>
    %53 = vector.extract_strided_slice %39 {offsets = [2, 0, 0], sizes = [16, 16, 384], strides = [1, 1, 1]} : vector<18x16x384xbf16> to vector<16x16x384xbf16>
    %54 = vector.shape_cast %53 : vector<16x16x384xbf16> to vector<256x384xbf16>
    %c2_35 = arith.constant 2 : index
    %c0_36 = arith.constant 0 : index
    %c0_37 = arith.constant 0 : index
    %55 = vector.load %arg4[%c2_35, %c0_36, %c0_37] : memref<3x384x128xbf16, #tpu.memory_space<vmem>>, vector<1x384x128xbf16>
    %56 = vector.shape_cast %55 : vector<1x384x128xbf16> to vector<384x128xbf16>
    %cst_38 = arith.constant dense<0.000000e+00> : vector<256x128xf32>
    %57 = tpu.matmul %54, %56, %cst_38 {dimension_numbers = #tpu.dot_dimension_numbers<[1], [0], [0], [1], [0, 0, 1, 1], [], []>} : vector<256x384xbf16>, vector<384x128xbf16>, vector<256x128xf32> -> vector<256x128xf32>
    %58 = arith.addf %52, %57 : vector<256x128xf32>
    %c0_39 = arith.constant 0 : index
    %c0_40 = arith.constant 0 : index
    %59 = vector.load %arg5[%c0_39, %c0_40] : memref<1x128xf32, #tpu.memory_space<vmem>>, vector<1x128xf32>
    %60 = vector.broadcast %59 : vector<1x128xf32> to vector<256x128xf32>
    %61 = arith.addf %58, %60 : vector<256x128xf32>
    %cst_41 = arith.constant 0.000000e+00 : f32
    %62 = vector.broadcast %cst_41 : f32 to vector<256x128xf32>
    %63 = arith.maximumf %61, %62 : vector<256x128xf32>
    %64 = vector.extract_strided_slice %1 {offsets = [1, 1, 0], sizes = [16, 16, 64], strides = [1, 1, 1]} : vector<18x18x64xbf16> to vector<16x16x64xbf16>
    %65 = vector.shape_cast %64 : vector<16x16x64xbf16> to vector<256x64xbf16>
    %c0_42 = arith.constant 0 : index
    %c0_43 = arith.constant 0 : index
    %66 = vector.load %arg6[%c0_42, %c0_43] : memref<64x128xbf16, #tpu.memory_space<vmem>>, vector<64x128xbf16>
    %cst_44 = arith.constant dense<0.000000e+00> : vector<256x128xf32>
    %67 = tpu.matmul %65, %66, %cst_44 {dimension_numbers = #tpu.dot_dimension_numbers<[1], [0], [0], [1], [0, 0, 1, 1], [], []>} : vector<256x64xbf16>, vector<64x128xbf16>, vector<256x128xf32> -> vector<256x128xf32>
    %c0_45 = arith.constant 0 : index
    %c0_46 = arith.constant 0 : index
    %68 = vector.load %arg7[%c0_45, %c0_46] : memref<1x128xf32, #tpu.memory_space<vmem>>, vector<1x128xf32>
    %69 = vector.broadcast %68 : vector<1x128xf32> to vector<256x128xf32>
    %70 = arith.addf %67, %69 : vector<256x128xf32>
    %71 = arith.addf %70, %63 : vector<256x128xf32>
    %cst_47 = arith.constant 0.000000e+00 : f32
    %72 = vector.broadcast %cst_47 : f32 to vector<256x128xf32>
    %73 = arith.maximumf %71, %72 : vector<256x128xf32>
    %74 = vector.shape_cast %73 : vector<256x128xf32> to vector<16x16x128xf32>
    %c0_48 = arith.constant 0 : index
    %c0_49 = arith.constant 0 : index
    %c0_50 = arith.constant 0 : index
    %c0_51 = arith.constant 0 : index
    %75 = vector.load %arg8[%c0_48, %c0_49, %c0_50, %c0_51] : memref<1x16x16x128xf32, #tpu.memory_space<vmem>>, vector<1x16x16x128xf32>
    %76 = vector.shape_cast %75 : vector<1x16x16x128xf32> to vector<16x16x128xf32>
    %77 = vector.shape_cast %74 : vector<16x16x128xf32> to vector<1x16x16x128xf32>
    tpu.vector_store %arg8[%c0_48, %c0_49, %c0_50, %c0_51], %77 {strides = array<i32>} : memref<1x16x16x128xf32, #tpu.memory_space<vmem>>, vector<1x16x16x128xf32>,
    return
  }
  func.func @transform_0(%arg0: i32) -> (i32, i32, i32, i32) {
    %c0_i32 = arith.constant 0 : i32
    %c0_i32_0 = arith.constant 0 : i32
    %c0_i32_1 = arith.constant 0 : i32
    %c0_i32_2 = arith.constant 0 : i32
    return %arg0, %c0_i32, %c0_i32_0, %c0_i32_1 : i32, i32, i32, i32
  }
  func.func @transform_1(%arg0: i32) -> (i32, i32, i32) {
    %c0_i32 = arith.constant 0 : i32
    %c0_i32_0 = arith.constant 0 : i32
    %c0_i32_1 = arith.constant 0 : i32
    %c0_i32_2 = arith.constant 0 : i32
    return %c0_i32, %c0_i32_0, %c0_i32_1 : i32, i32, i32
  }
  func.func @transform_2(%arg0: i32) -> (i32, i32) {
    %c0_i32 = arith.constant 0 : i32
    %c0_i32_0 = arith.constant 0 : i32
    %c0_i32_1 = arith.constant 0 : i32
    return %c0_i32, %c0_i32_0 : i32, i32
  }
  func.func @transform_3(%arg0: i32) -> (i32, i32, i32) {
    %c0_i32 = arith.constant 0 : i32
    %c0_i32_0 = arith.constant 0 : i32
    %c0_i32_1 = arith.constant 0 : i32
    %c0_i32_2 = arith.constant 0 : i32
    return %c0_i32, %c0_i32_0, %c0_i32_1 : i32, i32, i32
  }
  func.func @transform_4(%arg0: i32) -> (i32, i32) {
    %c0_i32 = arith.constant 0 : i32
    %c0_i32_0 = arith.constant 0 : i32
    %c0_i32_1 = arith.constant 0 : i32
    return %c0_i32, %c0_i32_0 : i32, i32
  }
  func.func @transform_5(%arg0: i32) -> (i32, i32) {
    %c0_i32 = arith.constant 0 : i32
    %c0_i32_0 = arith.constant 0 : i32
    %c0_i32_1 = arith.constant 0 : i32
    return %c0_i32, %c0_i32_0 : i32, i32
  }
  func.func @transform_6(%arg0: i32) -> (i32, i32) {
    %c0_i32 = arith.constant 0 : i32
    %c0_i32_0 = arith.constant 0 : i32
    %c0_i32_1 = arith.constant 0 : i32
    return %c0_i32, %c0_i32_0 : i32, i32
  }
  func.func @transform_7(%arg0: i32) -> (i32, i32, i32, i32) {
    %c0_i32 = arith.constant 0 : i32
    %c0_i32_0 = arith.constant 0 : i32
    %c0_i32_1 = arith.constant 0 : i32
    %c0_i32_2 = arith.constant 0 : i32
    return %arg0, %c0_i32, %c0_i32_0, %c0_i32_1 : i32, i32, i32, i32
  }
}

</mosaic_0001>

<bundles_post_ra>
// kernel: tpu_custom_call.1
= control target key start
LH: loop header
LB: loop body
LE: loop exit
PB: predicated region body
PF: predicated region fallthrough
CT: control target
= control target key end

     0   :  { %12 = vsyncpa [#allocation4], 0  ;;  %s8618_s0 = inlined_call_operand.vmem [shape: bf16[2,18,18,64], index: 0, kind: input, shape index: {}]   ;;  %s8619_s1 = inlined_call_operand.hbm [shape: bf16[3,192,128], index: 1, kind: input, shape index: {}]   ;;  %s8620_s2 = inlined_call_operand.vmem [shape: f32[1,128], index: 2, kind: input, shape index: {}]   ;;  %s8621_s3 = inlined_call_operand.vmem [shape: bf16[3,384,128], index: 3, kind: input, shape index: {}]   ;;  %s8622_s4 = inlined_call_operand.vmem [shape: f32[1,128], index: 4, kind: input, shape index: {}]   ;;  %s8623_s5 = inlined_call_operand.vmem [shape: bf16[64,128], index: 5, kind: input, shape index: {}]   ;;  %s8624_s6 = inlined_call_operand.vmem [shape: f32[1,128], index: 6, kind: input, shape index: {}]   ;;  %s8625_s7 = inlined_call_operand.hbm [shape: f32[2,16,16,128], index: 7, kind: output, shape index: {}]  }
   0x1   :  { %13 = vsyncpa [#allocation5], 0 }
   0x2   :  { %15 = vsyncpa [#allocation5 + $0x1], 0  ;;  %s6310_s24 = smov 0   ;;  %s6312_s25 = smov 0  }
   0x3   :  { %s6314_s26 = smov 0   ;;  %s6316_s27 = smov 0  }
   0x4 LB: > { %s6331_s28 = sadd.s32 4294967295, %s6261_s27   ;;  %s5156_s29 = sadd.s32 4294967294, %s6261_s27   ;;  %s6261_s27 = sphi %s6316_s27, %s8793_s27   ;;  %s6257_s26 = sphi %s6314_s26, %s8792_s26   ;;  %s6253_s25 = sphi %s6312_s25, %s8791_s25   ;;  %s6249_s24 = sphi %s6310_s24, %s8790_s24  }
   0x5   : > { %s6335_s30 = sadd.s32 1, %s6261_s27   ;;  %s180_s8 = sadd.s32 1, %s6257_s26 }
   0x6   : > { %s177_s9 = ssub.s32 %s6261_s27, %s6335_s30  ;;  %p190_p0 = scmp.ne.s32.totalorder %s6257_s26, %s6253_s25 }
   0x7   : > { %p178_p1 = scmp.eq.s32.totalorder %s177_s9, 0  ;;  %p191_p2 = scmp.eq.s32.totalorder %s6331_s28, 1 }
   0x8   : > { %p196_p3 = scmp.ne.s32.totalorder %s6253_s25, %s6249_s24  ;;  %p197_p4 = scmp.eq.s32.totalorder %s5156_s29, 1 }
   0x9   : > { %s6346_s10 = scalar_select %p178_p1, %s6257_s26, %s180_s8  }
   0xa   : > { %p6348_p5 = por %p191_p2, %p190_p0  ;;  %p6352_p6 = por %p197_p4, %p196_p3 }
   0xb   : > { %p5157_p7 = scmp.ge.s32.totalorder %s6261_s27, 1  ;;  %p204_p8 = scmp.lt.s32.totalorder %s6261_s27, 3 }
   0xc   : > { %p6085_p9 = scmp.eq.s32.totalorder %s6331_s28, 0  ;;  %s215_s15 = sshll.u32 %s8619_s1, 4  ;;  %s216_s15 = int_to_ptr.hbm [resolvable:$true] %s215_s15 }
   0xd   : > { %p205_p10 = pnand %p5157_p7, %p204_p8  ;;  %s6263_s16 = smov [#allocation3]  }
   0xe   : > { %s217_s17 = sshll.u32 %s6263_s16, 4  ;;  %s6264_s18 = smov 64   ;;  %s218_s17 = int_to_ptr.vmem [resolvable:$true] %s217_s17 }
   0xf   : > { %p6077_p11 = pneg %p205_p10  ;;  %s6265_s19 = smov 4  }
  0x10   : > { %256 = sbr.rel (%p205_p10) target bundleno = 1385 (0x569), region = 48 }
  0x11   : > { %p6078_p12 = pnand %p6085_p9, %p6077_p11 }
  0x13   : > { %6080 = dma.hbm_to_vmem [thread:$0]  (!%p6078_p12), %s216_s15, 4608, %s218_s17, [#allocation4], %s6264_s18, %s6264_s18, %s6265_s19  }
  0x15   : > { %6240 = dma.done.wait (%p6085_p9), [#allocation4], 4608  }
  0x16   : > { %6242 = vsyncadd (%p6085_p9), [#allocation4], 4294962688  ;;  %p289_p13 = scmp.lt.s32.totalorder %s6331_s28, 1  ;;  %v5962_v0 = vld [vmem:[#allocation3 + $0xb8] sm:$0xff]  ;;  %v5961_v4 = vld [vmem:[#allocation3 + $0xb0] sm:$0xff]  ;;  %s6266_s8 = smov 64  }
  0x17   : > { %v5950_v1 = vld [vmem:[#allocation3 + $0x58] sm:$0xff]  ;;  %1118 = vmatpush.bf16.msra.mxu1 %v5962_v0  ;;  %v5949_v5 = vld [vmem:[#allocation3 + $0x50] sm:$0xff]  ;;  %vm493_vm0 = vsmask.f32 7424  ;;  %v5960_v13 = vld [vmem:[#allocation3 + $0xa8] sm:$0xff]  ;;  %vm746_vm1 = vcmask 1046528  }
  0x18   : > { %s290_s20 = scalar_select %p289_p13, %s6331_s28, 1  ;;  %1371 = vmatpush.bf16.msra.mxu3 %v5950_v1  ;;  %v5948_v16 = vld [vmem:[#allocation3 + $0x48] sm:$0xff]  ;;  %v5959_v31 = vld [vmem:[#allocation3 + $0xa0] sm:$0xff]  ;;  %v5974_v33 = vld [vmem:[#allocation3 + $0x118] sm:$0xff]  ;;  %vm801_vm2 = vcmask 523264   ;;  %vm2244_vm3 = vcmask 1043456  }
  0x19   : > { %v5947_v32 = vld [vmem:[#allocation3 + $0x40] sm:$0xff]  ;;  %v5970_v37 = vld [vmem:[#allocation3 + $0xf8] sm:$0xff]  ;;  %v5969_v56 = vld [vmem:[#allocation3 + $0xf0] sm:$0xff]  ;;  %vm2245_vm4 = vsmask.f32 7938  ;;  %vm2251_vm9 = vcmask 1040384  }
  0x1a   : > { %s6070_s21 = smul.u32 216, %s290_s20  ;;  %vm7072_vm5 = vmand %vm2244_vm3, %vm2245_vm4  ;;  %vm1920_vm6 = vsmask.f32 256  ;;  %vm1921_vm7 = vsmask.f32 4368  ;;  %s286_s17 = sand.u32 1, %s6253_s25  }
  0x1b   : > { %1119 = vmatpush.bf16.msra.mxu1 %v5961_v4  ;;  %vm7096_vm8 = vmor %vm1920_vm6, %vm1921_vm7  ;;  %vm4362_vm11 = vsmask.f32 3328  ;;  %vm4363_vm12 = vsmask.f32 7440  ;;  %s5162_s18 = sshll.u32 %s286_s17, 8  ;;  %s6069_s23 = sshll.u32 %s6331_s28, 8 }
  0x1c   : > { %s6373_s29 = scalar_lea.vmem %s8618_s0, %s6070_s21  ;;  %1372 = vmatpush.bf16.msra.mxu3 %v5949_v5  ;;  %vm7114_vm10 = vmand %vm2251_vm9, %vm1920_vm6  ;;  %s8335_s19 = scalar_lea.vmem [#allocation6], %s5162_s18 }
  0x1d   : > { %v6376_v2 = vld [vmem:[%s6373_s29] sm:$0xff]  ;;  %v297_v3 = vld [vmem:[%s6373_s29 + $0x8] sm:$0x1]  ;;  %v6382_v10 = vld [vmem:[%s6373_s29 + $0xc] sm:$0xff]  ;;  %s5078_s14 = scalar_lea.hbm %s8625_s7, %s6069_s23  ;;  %s5079_s15 = sshll.u32 %s8335_s19, 4  ;;  %s5080_s15 = int_to_ptr.vmem [resolvable:$true] %s5079_s15 }
  0x1e   : > { %v457_v6 = vunpack.c.l.b16 %v297_v3  ;;  %v495_v7 = vshrl.u32 %v6376_v2, 16  ;;  %v497_v8 = vshll.u32 %v6376_v2, 16  ;;  %v300_v11 = vld [vmem:[%s6373_s29 + $0x14] sm:$0x1]  ;;  %v747_v17 = vrot.slane %v6376_v2, 1  ;;  %v6387_v18 = vld [vmem:[%s6373_s29 + $0x18] sm:$0xff]  ;;  %vm8153_vm13 = vmor %vm4362_vm11, %vm4363_vm12 }
  0x1f   : > { %v458_v14 = vunpack.c.l.b16 %v300_v11  ;;  %v303_v19 = vld [vmem:[%s6373_s29 + $0x20] sm:$0x1]  ;;  %v750_v22 = vrot.slane %v6382_v10, 1  ;;  %v507_v23 = vshrl.u32 %v6382_v10, 16  ;;  %v509_v25 = vshll.u32 %v6382_v10, 16  ;;  %1120 = vmatpush.bf16.msra.mxu1 %v5960_v13  ;;  %v6398_v39 = vld [vmem:[%s6373_s29 + $0x24] sm:$0xff] }
  0x20   : > { %v475_v9 = vpack.c.b16 %v457_v6, %v457_v6  ;;  %v499_v12 = vrot.slane %v497_v8, 1  ;;  %v459_v29 = vunpack.c.l.b16 %v303_v19  ;;  %1373 = vmatpush.bf16.msra.mxu3 %v5948_v16  ;;  %v519_v35 = vshrl.u32 %v6387_v18, 16  ;;  %v306_v40 = vld [vmem:[%s6373_s29 + $0x2c] sm:$0x1]  ;;  %v309_v0 = vld [vmem:[%s6373_s29 + $0x38] sm:$0x1] }
  0x21   : > { %v476_v21 = vpack.c.b16 %v458_v14, %v458_v14  ;;  %v511_v34 = vrot.slane %v509_v25, 1  ;;  %v521_v36 = vshll.u32 %v6387_v18, 16  ;;  %v460_v48 = vunpack.c.l.b16 %v306_v40  ;;  %v6426_v6 = vld [vmem:[%s6373_s29 + $0x30] sm:$0xff]  ;;  %v5973_v8 = vld [vmem:[#allocation3 + $0x110] sm:$0xff]  ;;  %s5067_s28 = scalar_lea.sflag [#allocation5], %s286_s17  ;;  %s6215_s21 = scalar_lea.hbm %s8625_s7, 512 }
  0x22   : > { %v502_v15 = vshll.u32 %v475_v9, 16  ;;  %v500_v20 = vor.u32 %v499_v12, %v495_v7  ;;  %v748_v27 = vrot.slane %v475_v9, 1  ;;  %v477_v38 = vpack.c.b16 %v459_v29, %v459_v29  ;;  %v5968_v9 = vld [vmem:[#allocation3 + $0xe8] sm:$0xff]  ;;  %v315_v16 = vld [vmem:[%s6373_s29 + $0x50] sm:$0x1] }
  0x23   : > { %v751_v26 = vrot.slane %v476_v21, 1  ;;  %v514_v28 = vshll.u32 %v476_v21, 16  ;;  %v512_v41 = vor.u32 %v511_v34, %v507_v23  ;;  %v523_v43 = vrot.slane %v521_v36, 1  ;;  %1121 = vmatpush.bf16.msra.mxu1 %v5959_v31  ;;  %v6438_v21 = vld [vmem:[%s6373_s29 + $0x48] sm:$0xff]  ;;  %v5946_v36 = vld [vmem:[#allocation3 + $0x38] sm:$0xff] }
  0x24   : > { %v504_v24 = vrot.slane %v502_v15, 1  ;;  %v526_v44 = vshll.u32 %v477_v38, 16  ;;  %1374 = vmatpush.bf16.msra.mxu3 %v5947_v32  ;;  %v749_v46 = vsel %vm746_vm1, %v747_v17, %v748_v27  ;;  %v531_v50 = vshrl.u32 %v6398_v39, 16  ;;  %v6451_v32 = vld [vmem:[%s6373_s29 + $0x3c] sm:$0xff]  ;;  %1278 = vmatpush.bf16.msra.mxu2 %v5946_v36 }
  0x25   : > { %v516_v42 = vrot.slane %v514_v28, 1  ;;  %v752_v45 = vsel %vm746_vm1, %v750_v22, %v751_v26  ;;  %v524_v47 = vor.u32 %v523_v43, %v519_v35  ;;  %v533_v51 = vshll.u32 %v6398_v39, 16  ;;  %v312_v22 = vld [vmem:[%s6373_s29 + $0x44] sm:$0x1]  ;;  %v5945_v43 = vld [vmem:[#allocation3 + $0x30] sm:$0xff] }
  0x26   : > { %v505_v30 = vsel %vm493_vm0, %v500_v20, %v504_v24  ;;  %v528_v49 = vrot.slane %v526_v44, 1  ;;  %v478_v53 = vpack.c.b16 %v460_v48, %v460_v48  ;;  %5284 = vmatmul.msk.bf16.vlgmr.msra.gmra.mxu1 %vm801_vm2, %v752_v45  ;;  %v753_v61 = vrot.slane %v6387_v18, 1  ;;  %v5957_v48 = vld [vmem:[#allocation3 + $0x90] sm:$0xff] }
  0x27   : > { %710 = vrot.lane.b32.xlu0 %v505_v30, %s6266_s8  ;;  %1556 = vmatpush.bf16.msrb.mxu1 %v5970_v37  ;;  %v517_v52 = vsel %vm493_vm0, %v512_v41, %v516_v42  ;;  %v535_v55 = vrot.slane %v533_v51, 1  ;;  %v754_v62 = vrot.slane %v477_v38, 1  ;;  %v756_v1 = vrot.slane %v6398_v39, 1  ;;  %v5958_v37 = vld [vmem:[#allocation3 + $0x98] sm:$0xff] }
  0x28   : > { %1649 = vmatpush.bf16.msrb.mxu3 %v5974_v33  ;;  %v529_v54 = vsel %vm493_vm0, %v524_v47, %v528_v49  ;;  %v538_v57 = vshll.u32 %v478_v53, 16  ;;  %v757_v3 = vrot.slane %v478_v53, 1  ;;  %v461_v4 = vunpack.c.l.b16 %v309_v0  ;;  %1025 = vmatpush.bf16.msra.mxu0 %v5958_v37  ;;  %v5943_v0 = vld [vmem:[#allocation3 + $0x20] sm:$0xff] }
  0x29   : > { %5348 = vmatmul.msk.bf16.vlgmr.msra.gmra.mxu3 %vm801_vm2, %v749_v46  ;;  %714 = vrot.lane.b32.xlu1 %v529_v54, %s6266_s8  ;;  %v536_v58 = vor.u32 %v535_v55, %v531_v50  ;;  %v6415_v63 = vsel %vm746_vm1, %v753_v61, %v754_v62  ;;  %v543_v11 = vshrl.u32 %v6426_v6, 16  ;;  %v545_v12 = vshll.u32 %v6426_v6, 16  ;;  %v318_v46 = vld [vmem:[%s6373_s29 + $0x5c] sm:$0x1]  ;;  %v5944_v55 = vld [vmem:[#allocation3 + $0x28] sm:$0xff] }
  0x2a   : > { %v540_v59 = vrot.slane %v538_v57, 1  ;;  %v6423_v5 = vsel %vm746_vm1, %v756_v1, %v757_v3  ;;  %v479_v7 = vpack.c.b16 %v461_v4, %v461_v4  ;;  %v463_v19 = vunpack.c.l.b16 %v315_v16  ;;  %1279 = vmatpush.bf16.msra.mxu2 %v5945_v43  ;;  %v5956_v57 = vld [vmem:[#allocation3 + $0x88] sm:$0xff]  ;;  %v5955_v4 = vld [vmem:[#allocation3 + $0x80] sm:$0xff] }
  0x2b   : > { %1557 = vmatpush.bf16.msrb.mxu1 %v5969_v56  ;;  %v547_v14 = vrot.slane %v545_v12, 1  ;;  %v759_v23 = vrot.slane %v6426_v6, 1  ;;  %v462_v26 = vunpack.c.l.b16 %v312_v22  ;;  %v569_v27 = vshll.u32 %v6438_v21, 16  ;;  %v5953_v12 = vld [vmem:[#allocation3 + $0x70] sm:$0xff]  ;;  %v5952_v16 = vld [vmem:[#allocation3 + $0x68] sm:$0xff] }
  0x2c   : > { %v541_v60 = vsel %vm493_vm0, %v536_v58, %v540_v59  ;;  %v550_v13 = vshll.u32 %v479_v7, 16  ;;  %1650 = vmatpush.bf16.msrb.mxu3 %v5973_v8  ;;  %v760_v24 = vrot.slane %v479_v7, 1  ;;  %v6442_v25 = vpack.c.b16 %v463_v19, %v463_v19  ;;  %1026 = vmatpush.bf16.msra.mxu0 %v5957_v48  ;;  %v5942_v7 = vld [vmem:[#allocation3 + $0x18] sm:$0xff]  ;;  %v5967_v8 = vld [vmem:[#allocation3 + $0xe0] sm:$0xff] }
  0x2d   : > { %v548_v17 = vor.u32 %v547_v14, %v543_v11  ;;  %v567_v29 = vshrl.u32 %v6438_v21, 16  ;;  %v571_v30 = vrot.slane %v569_v27, 1  ;;  %v480_v33 = vpack.c.b16 %v462_v26, %v462_v26  ;;  %v5941_v11 = vld [vmem:[#allocation3 + $0x10] sm:$0xff]  ;;  %v324_v22 = vld [vmem:[%s6373_s29 + $0x74] sm:$0x1] }
  0x2e   : > { %v552_v15 = vrot.slane %v550_v13, 1  ;;  %v6446_v28 = vsel %vm746_vm1, %v759_v23, %v760_v24  ;;  %v574_v31 = vshll.u32 %v6442_v25, 16  ;;  %v555_v38 = vshrl.u32 %v6451_v32, 16  ;;  %1280 = vmatpush.bf16.msra.mxu2 %v5944_v55  ;;  %v5940_v13 = vld [vmem:[#allocation3 + $0x8] sm:$0xff] }
  0x2f   : > { %712 = vrot.lane.b32.xlu0 %v517_v52, %s6266_s8  ;;  %1558 = vmatpush.bf16.msrb.mxu1 %v5968_v9  ;;  %v572_v34 = vor.u32 %v571_v30, %v567_v29  ;;  %v557_v40 = vshll.u32 %v6451_v32, 16  ;;  %v562_v42 = vshll.u32 %v480_v33, 16  ;;  %v464_v49 = vunpack.c.l.b16 %v318_v46  ;;  %v5954_v9 = vld [vmem:[#allocation3 + $0x78] sm:$0xff]  ;;  %v321_v30 = vld [vmem:[%s6373_s29 + $0x68] sm:$0x1] }
  0x30   : > { %v553_v20 = vsel %vm493_vm0, %v548_v17, %v552_v15  ;;  %v576_v35 = vrot.slane %v574_v31, 1  ;;  %v763_v61 = vrot.slane %v480_v33, 1  ;;  %1027 = vmatpush.bf16.msra.mxu0 %v5956_v57  ;;  %v765_v14 = vrot.slane %v6438_v21, 1  ;;  %v5939_v17 = vld [vmem:[#allocation3] sm:$0xff] }
  0x31   : > { %716 = vrot.lane.b32.xlu1 %v541_v60, %s6266_s8  ;;  %718 = vrot.lane.b32.xlu2 %v553_v20, %s6266_s8  ;;  %v559_v44 = vrot.slane %v557_v40, 1  ;;  %v564_v47 = vrot.slane %v562_v42, 1  ;;  %v482_v53 = vpack.c.b16 %v464_v49, %v464_v49  ;;  %v762_v60 = vrot.slane %v6451_v32, 1  ;;  %v5951_v20 = vld [vmem:[#allocation3 + $0x60] sm:$0xff]  ;;  %v5966_v49 = vld [vmem:[#allocation3 + $0xd8] sm:$0xff] }
  0x32   : > { %v577_v41 = vsel %vm493_vm0, %v572_v34, %v576_v35  ;;  %1281 = vmatpush.bf16.msra.mxu2 %v5943_v0  ;;  %v766_v15 = vrot.slane %v6442_v25, 1  ;;  %v6491_v25 = vld [vmem:[%s6373_s29 + $0x6c] sm:$0xff]  ;;  %v466_v26 = vunpack.c.l.b16 %v324_v22  ;;  %v465_v36 = vunpack.c.l.b16 %v321_v30 }
  0x33   : > { %v560_v50 = vor.u32 %v559_v44, %v555_v38  ;;  %v586_v58 = vshll.u32 %v482_v53, 16  ;;  %v6473_v3 = vsel %vm746_vm1, %v762_v60, %v763_v61  ;;  %1559 = vmatpush.bf16.msrb.mxu1 %v5967_v8  ;;  %v769_v24 = vrot.slane %v482_v53, 1  ;;  %v5972_v38 = vld [vmem:[#allocation3 + $0x108] sm:$0xff]  ;;  %v5965_v22 = vld [vmem:[#allocation3 + $0xd0] sm:$0xff] }
  0x34   : > { %1028 = vmatpush.bf16.msra.mxu0 %v5955_v4  ;;  %v6482_v19 = vsel %vm746_vm1, %v765_v14, %v766_v15  ;;  %v484_v27 = vpack.c.b16 %v466_v26, %v466_v26  ;;  %v605_v29 = vshll.u32 %v6491_v25, 16  ;;  %v603_v33 = vshrl.u32 %v6491_v25, 16  ;;  %1651 = vmatpush.bf16.msrb.mxu3 %v5972_v38  ;;  %v6032_v38 = vld [vmem:[%s8621_s3 + $0x138] sm:$0xff] }
  0x35   : > { %v565_v54 = vsel %vm493_vm0, %v560_v50, %v564_v47  ;;  %v588_v62 = vrot.slane %v586_v58, 1  ;;  %v483_v43 = vpack.c.b16 %v465_v36, %v465_v36 }
  0x36   : > { %5285 = vmatmul.msk.bf16.gmra.mxu1 %vm801_vm2, %v6415_v63  ;;  %1282 = vmatpush.bf16.msra.mxu2 %v5942_v7  ;;  %v607_v34 = vrot.slane %v605_v29, 1  ;;  %v610_v35 = vshll.u32 %v484_v27, 16 }
  0x37   : > { %722 = vrot.lane.b32.xlu0 %v577_v41, %s6266_s8  ;;  %v6504_v41 = vld [vmem:[%s6373_s29 + $0x60] sm:$0xff]  ;;  %v598_v48 = vshll.u32 %v483_v43, 16  ;;  %v772_v53 = vrot.slane %v483_v43, 1  ;;  %1560 = vmatpush.bf16.msrb.mxu1 %v5966_v49 }
  0x38   : > { %1029 = vmatpush.bf16.msra.mxu0 %v5954_v9  ;;  %v608_v37 = vor.u32 %v607_v34, %v603_v33  ;;  %v612_v40 = vrot.slane %v610_v35, 1  ;;  %v593_v44 = vshll.u32 %v6504_v41, 16  ;;  %v591_v46 = vshrl.u32 %v6504_v41, 16  ;;  %v330_v34 = vld [vmem:[%s6373_s29 + $0x8c] sm:$0x1]  ;;  %v6581_v49 = vld [vmem:[%s6373_s29 + $0x84] sm:$0xff] }
  0x39   : > { %5349 = vmatmul.msk.bf16.gmra.mxu3 %vm801_vm2, %v752_v45  ;;  %v6462_v45 = vld [vmem:[%s6373_s29 + $0x54] sm:$0xff]  ;;  %720 = vrot.lane.b32.xlu2 %v565_v54, %s6266_s8  ;;  %v327_v54 = vld [vmem:[%s6373_s29 + $0x80] sm:$0x1] }
  0x3a   : > { %v579_v51 = vshrl.u32 %v6462_v45, 16  ;;  %v581_v52 = vshll.u32 %v6462_v45, 16  ;;  %1283 = vmatpush.bf16.msra.mxu2 %v5941_v11  ;;  %v768_v23 = vrot.slane %v6462_v45, 1  ;;  %v613_v42 = vsel %vm493_vm0, %v608_v37, %v612_v40  ;;  %v6024_v37 = vld [vmem:[%s8621_s3 + $0xf8] sm:$0xff] }
  0x3b   : > { %v595_v47 = vrot.slane %v593_v44, 1  ;;  %v467_v57 = vunpack.c.l.b16 %v327_v54  ;;  %1561 = vmatpush.bf16.msrb.mxu1 %v5965_v22  ;;  %v468_v44 = vunpack.c.l.b16 %v330_v34  ;;  %v629_v54 = vshll.u32 %v6581_v49, 16 }
  0x3c   : > { %v583_v56 = vrot.slane %v581_v52, 1  ;;  %1030 = vmatpush.bf16.msra.mxu0 %v5953_v12  ;;  %v6496_v31 = vsel %vm746_vm1, %v768_v23, %v769_v24  ;;  %v771_v52 = vrot.slane %v6504_v41, 1  ;;  %v774_v12 = vrot.slane %v6491_v25, 1  ;;  %v333_v23 = vld [vmem:[%s6373_s29 + $0x98] sm:$0x1] }
  0x3d   : > { %v596_v50 = vor.u32 %v595_v47, %v591_v46  ;;  %v485_v58 = vpack.c.b16 %v467_v57, %v467_v57  ;;  %v469_v29 = vunpack.c.l.b16 %v333_v23  ;;  %v627_v57 = vshrl.u32 %v6581_v49, 16 }
  0x3e   : > { %v584_v59 = vor.u32 %v583_v56, %v579_v51  ;;  %1284 = vmatpush.bf16.msra.mxu2 %v5940_v13  ;;  %v600_v51 = vrot.slane %v598_v48, 1  ;;  %v6514_v56 = vld [vmem:[%s6373_s29 + $0x78] sm:$0xff]  ;;  %v6519_v61 = vsel %vm746_vm1, %v771_v52, %v772_v53  ;;  %v775_v13 = vrot.slane %v484_v27, 1  ;;  %v6554_v27 = vld [vmem:[%s6373_s29 + $0x90] sm:$0xff] }
  0x3f   : > { %728 = vrot.lane.b32.xlu0 %v613_v42, %s6266_s8  ;;  %v615_v0 = vshrl.u32 %v6514_v56, 16  ;;  %v622_v4 = vshll.u32 %v485_v58, 16  ;;  %v777_v24 = vrot.slane %v6514_v56, 1  ;;  %v778_v26 = vrot.slane %v485_v58, 1 }
  0x40   : > { %v589_v1 = vsel %vm493_vm0, %v584_v59, %v588_v62  ;;  %1031 = vmatpush.bf16.msra.mxu0 %v5952_v16  ;;  %v601_v55 = vsel %vm493_vm0, %v596_v50, %v600_v51  ;;  %v617_v59 = vshll.u32 %v6514_v56, 16  ;;  %v6536_v15 = vsel %vm746_vm1, %v774_v12, %v775_v13 }
  0x41   : > { %724 = vrot.lane.b32.xlu1 %v589_v1, %s6266_s8  ;;  %726 = vrot.lane.b32.xlu2 %v601_v55, %s6266_s8  ;;  %v624_v8 = vrot.slane %v622_v4, 1  ;;  %v6558_v33 = vpack.c.b16 %v469_v29, %v469_v29  ;;  %v6565_v36 = vsel %vm746_vm1, %v777_v24, %v778_v26  ;;  %v639_v40 = vshrl.u32 %v6554_v27, 16 }
  0x42   : > { %1285 = vmatpush.bf16.msra.mxu2 %v5939_v17  ;;  %v619_v1 = vrot.slane %v617_v59, 1  ;;  %v486_v53 = vpack.c.b16 %v468_v44, %v468_v44  ;;  %v631_v58 = vrot.slane %v629_v54, 1 }
  0x43   : > { %v646_v43 = vshll.u32 %v6558_v33, 16  ;;  %v784_v44 = vrot.slane %v6558_v33, 1 }
  0x44   : > { %1032 = vmatpush.bf16.msra.mxu0 %v5951_v20  ;;  %v620_v7 = vor.u32 %v619_v1, %v615_v0  ;;  %v634_v59 = vshll.u32 %v486_v53, 16  ;;  %v336_v0 = vld [vmem:[%s6373_s29 + $0xa4] sm:$0x1]  ;;  %v780_v1 = vrot.slane %v6581_v49, 1 }
  0x45   : > { %v648_v48 = vrot.slane %v646_v43, 1  ;;  %v783_v43 = vrot.slane %v6554_v27, 1 }
  0x46   : > { %5286 = vmatmul.msk.bf16.gmra.mxu1 %vm801_vm2, %v6423_v5  ;;  %v625_v9 = vsel %vm493_vm0, %v620_v7, %v624_v8  ;;  %3213 = vmatpush.bf16.msrb.mxu2 %v6032_v38  ;;  %v6600_v7 = vld [vmem:[%s6373_s29 + $0x9c] sm:$0xff]  ;;  %v470_v8 = vunpack.c.l.b16 %v336_v0 }
  0x47   : > { %v651_v22 = vshrl.u32 %v6600_v7, 16 }
  0x48   : > { %3124 = vmatpush.bf16.msrb.mxu0 %v6024_v37 }
  0x49   : > { %5350 = vmatmul.msk.bf16.gmra.mxu3 %vm801_vm2, %v6415_v63  ;;  %730 = vrot.lane.b32.xlu1 %v625_v9, %s6266_s8 }
  0x56   : > { %5287 = vmatmul.msk.bf16.gmra.mxu1 %vm801_vm2, %v6446_v28 }
  0x59   : > { %5351 = vmatmul.msk.bf16.gmra.mxu3 %vm801_vm2, %v6423_v5 }
  0x66   : > { %5288 = vmatmul.msk.bf16.gmra.mxu1 %vm801_vm2, %v6473_v3 }
  0x69   : > { %5352 = vmatmul.msk.bf16.gmra.mxu3 %vm801_vm2, %v6446_v28 }
  0x76   : > { %5289 = vmatmul.msk.bf16.gmra.mxu1 %vm801_vm2, %v6482_v19 }
  0x79   : > { %5353 = vmatmul.msk.bf16.gmra.mxu3 %vm801_vm2, %v6473_v3 }
  0x86   : > { %5290 = vmatmul.msk.bf16.gmra.mxu1 %vm801_vm2, %v6496_v31 }
  0x89   : > { %5354 = vmatmul.msk.bf16.gmra.mxu3 %vm801_vm2, %v6482_v19 }
  0x96   : > { %5291 = vmatmul.msk.bf16.gmra.mxu1 %vm801_vm2, %v6519_v61 }
  0x99   : > { %v711_v60 = vpop.permute.xlu0 %710  ;;  %5355 = vmatmul.msk.bf16.gmra.mxu3 %vm801_vm2, %v6496_v31 }
  0x9a   : > { %v803_v62 = vsel %vm801_vm2, %v6376_v2, %v711_v60  ;;  %v632_v60 = vor.u32 %v631_v58, %v627_v57  ;;  %v342_v58 = vld [vmem:[%s6373_s29 + $0xbc] sm:$0x1] }
  0x9b   : > { %1286 = vmatmul.bf16.vlgmr.msra.gmra.mxu2 %v803_v62  ;;  %v636_v62 = vrot.slane %v634_v59, 1  ;;  %v786_v59 = vrot.slane %v6600_v7, 1  ;;  %v472_v0 = vunpack.c.l.b16 %v342_v58 }
  0x9d   : > { %v637_v4 = vsel %vm493_vm0, %v632_v60, %v636_v62  ;;  %v6660_v62 = vld [vmem:[%s6373_s29 + $0xb4] sm:$0xff] }
  0x9e   : > { %732 = vrot.lane.b32.xlu2 %v637_v4, %s6266_s8  ;;  %v677_v4 = vshll.u32 %v6660_v62, 16 }
  0xa1   : > { %v713_v11 = vpop.permute.xlu0 %712 }
  0xa2   : > { %v806_v2 = vsel %vm801_vm2, %v6382_v10, %v713_v11  ;;  %v715_v10 = vpop.permute.xlu1 %714  ;;  %v488_v11 = vpack.c.b16 %v470_v8, %v470_v8 }
  0xa3   : > { %1033 = vmatmul.bf16.vlgmr.msra.gmra.mxu0 %v806_v2  ;;  %v6533_v14 = vpop.f32.mrf.mxu1  ;;  %v6546_v17 = vsel %vm801_vm2, %v6387_v18, %v715_v10  ;;  %v641_v18 = vshll.u32 %v6554_v27, 16  ;;  %v5971_v10 = vld [vmem:[#allocation3 + $0x100] sm:$0xff] }
  0xa4   : > { %v658_v24 = vshll.u32 %v488_v11, 16  ;;  %1652 = vmatpush.bf16.msrb.mxu3 %v5971_v10  ;;  %v787_v60 = vrot.slane %v488_v11, 1  ;;  %v675_v10 = vshrl.u32 %v6660_v62, 16 }
  0xa5   : > { %v643_v42 = vrot.slane %v641_v18, 1  ;;  %v719_v18 = vpop.permute.xlu2 %718 }
  0xa6   : > { %5292 = vmatmul.msk.bf16.gmra.mxu1 %vm801_vm2, %v6536_v15  ;;  %v660_v29 = vrot.slane %v658_v24, 1  ;;  %v6623_v38 = vsel %vm801_vm2, %v6426_v6, %v719_v18  ;;  %v6023_v6 = vld [vmem:[%s8621_s3 + $0xf0] sm:$0xff]  ;;  %v6681_v18 = vld [vmem:[%s6373_s29 + $0xa8] sm:$0xff] }
  0xa7   : > { %v644_v46 = vor.u32 %v643_v42, %v639_v40  ;;  %v5964_v42 = vld [vmem:[#allocation3 + $0xc8] sm:$0xff]  ;;  %3125 = vmatpush.bf16.msrb.mxu0 %v6023_v6  ;;  %v665_v6 = vshll.u32 %v6681_v18, 16 }
  0xa8   : > { %1562 = vmatpush.bf16.msrb.mxu1 %v5964_v42 }
  0xa9   : > { %5356 = vmatmul.msk.bf16.gmra.mxu3 %vm801_vm2, %v6519_v61  ;;  %v649_v50 = vsel %vm493_vm0, %v644_v46, %v648_v48  ;;  %v6635_v48 = vsel %vm746_vm1, %v783_v43, %v784_v44  ;;  %v667_v58 = vrot.slane %v665_v6, 1 }
  0xaa   : > { %v717_v47 = vpop.permute.xlu1 %716  ;;  %734 = vrot.lane.b32.xlu0 %v649_v50, %s6266_s8  ;;  %v6031_v50 = vld [vmem:[%s8621_s3 + $0x130] sm:$0xff] }
  0xab   : > { %1291 = vmatmul.bf16.gmra.mxu2 %v806_v2  ;;  %v6548_v20 = vpop.f32.mrf.mxu1  ;;  %v6588_v52 = vsel %vm801_vm2, %v6398_v39, %v717_v47  ;;  %v781_v39 = vrot.slane %v486_v53, 1  ;;  %v653_v2 = vshll.u32 %v6600_v7, 16 }
  0xac   : > { %v6542_v16 = vpop.f32.mrf.mxu3  ;;  %3214 = vmatpush.bf16.msrb.mxu2 %v6031_v50 }
  0xad   : > { %v6609_v13 = vsel %vm746_vm1, %v780_v1, %v781_v39  ;;  %v655_v23 = vrot.slane %v653_v2, 1  ;;  %v721_v33 = vpop.permute.xlu2 %720  ;;  %v6664_v39 = vpack.c.b16 %v472_v0, %v472_v0  ;;  %v6671_v2 = vsel %vm746_vm1, %v786_v59, %v787_v60  ;;  %v5963_v60 = vld [vmem:[#allocation3 + $0xc0] sm:$0xff] }
  0xae   : > { %v6652_v54 = vsel %vm801_vm2, %v6451_v32, %v721_v33  ;;  %v339_v32 = vld [vmem:[%s6373_s29 + $0xb0] sm:$0x1]  ;;  %v663_v33 = vshrl.u32 %v6681_v18, 16  ;;  %1563 = vmatpush.bf16.msrb.mxu1 %v5963_v60 }
  0xaf   : > { %v656_v26 = vor.u32 %v655_v23, %v651_v22  ;;  %v679_v22 = vrot.slane %v677_v4, 1  ;;  %v682_v11 = vshll.u32 %v6664_v39, 16  ;;  %v471_v23 = vunpack.c.l.b16 %v339_v32 }
  0xb0   : > { %v668_v0 = vor.u32 %v667_v58, %v663_v33  ;;  %v789_v32 = vrot.slane %v6681_v18, 1  ;;  %v6030_v33 = vld [vmem:[%s8621_s3 + $0x128] sm:$0xff] }
  0xb1   : > { %v661_v34 = vsel %vm493_vm0, %v656_v26, %v660_v29  ;;  %v680_v24 = vor.u32 %v679_v22, %v675_v10  ;;  %v723_v26 = vpop.permute.xlu0 %722  ;;  %v684_v29 = vrot.slane %v682_v11, 1  ;;  %v489_v44 = vpack.c.b16 %v471_v23, %v471_v23  ;;  %v6700_v11 = vld [vmem:[%s6373_s29 + $0xc0] sm:$0xff]  ;;  %3215 = vmatpush.bf16.msrb.mxu2 %v6030_v33 }
  0xb2   : > { %736 = vrot.lane.b32.xlu1 %v661_v34, %s6266_s8  ;;  %v6688_v43 = vsel %vm801_vm2, %v6438_v21, %v723_v26  ;;  %v345_v21 = vld [vmem:[%s6373_s29 + $0xc8] sm:$0x1]  ;;  %v687_v58 = vshrl.u32 %v6700_v11, 16 }
  0xb3   : > { %1038 = vmatmul.bf16.gmra.mxu0 %v6546_v17  ;;  %v6562_v35 = vpop.f32.mrf.mxu1  ;;  %v685_v34 = vsel %vm493_vm0, %v680_v24, %v684_v29  ;;  %v670_v59 = vshll.u32 %v489_v44, 16  ;;  %v790_v10 = vrot.slane %v489_v44, 1  ;;  %v473_v23 = vunpack.c.l.b16 %v345_v21  ;;  %v6022_v44 = vld [vmem:[%s8621_s3 + $0xe8] sm:$0xff]  ;;  %v725_v21 = vpop.permute.xlu1 %724 }
  0xb4   : > { %v6556_v30 = vpop.f32.mrf.mxu3  ;;  %740 = vrot.lane.b32.xlu0 %v685_v34, %s6266_s8  ;;  %v689_v29 = vshll.u32 %v6700_v11, 16  ;;  %3126 = vmatpush.bf16.msrb.mxu0 %v6022_v44  ;;  %v793_v44 = vrot.slane %v6664_v39, 1 }
  0xb5   : > { %v672_v4 = vrot.slane %v670_v59, 1  ;;  %v491_v26 = vpack.c.b16 %v473_v23, %v473_v23  ;;  %v6709_v6 = vsel %vm746_vm1, %v789_v32, %v790_v10 }
  0xb6   : > { %5293 = vmatmul.msk.bf16.gmra.mxu1 %vm801_vm2, %v6565_v36  ;;  %v691_v59 = vrot.slane %v689_v29, 1  ;;  %v792_v29 = vrot.slane %v6660_v62, 1 }
  0xb7   : > { %v673_v22 = vsel %vm493_vm0, %v668_v0, %v672_v4  ;;  %v694_v60 = vshll.u32 %v491_v26, 16 }
  0xb8   : > { %738 = vrot.lane.b32.xlu2 %v673_v22, %s6266_s8  ;;  %v692_v0 = vor.u32 %v691_v59, %v687_v58  ;;  %v6729_v22 = vsel %vm801_vm2, %v6462_v45, %v725_v21  ;;  %v6741_v59 = vsel %vm746_vm1, %v792_v29, %v793_v44  ;;  %v727_v45 = vpop.permute.xlu2 %726  ;;  %v796_v21 = vrot.slane %v491_v26, 1  ;;  %v6021_v26 = vld [vmem:[%s8621_s3 + $0xe0] sm:$0xff] }
  0xb9   : > { %5357 = vmatmul.msk.bf16.gmra.mxu3 %vm801_vm2, %v6536_v15  ;;  %v696_v4 = vrot.slane %v694_v60, 1  ;;  %8655 = vst [vmem:[#allocation12_spill] sm:$0xff] %v6741_v59  ;;  %v6752_v39 = vsel %vm801_vm2, %v6504_v41, %v727_v45  ;;  %v729_v41 = vpop.permute.xlu0 %728  ;;  %v6029_v45 = vld [vmem:[%s8621_s3 + $0x120] sm:$0xff]  ;;  %3127 = vmatpush.bf16.msrb.mxu0 %v6021_v26 }
  0xba   : > { %3216 = vmatpush.bf16.msrb.mxu2 %v6029_v45 }
  0xbb   : > { %1296 = vmatmul.bf16.gmra.mxu2 %v6546_v17  ;;  %v6592_v55 = vpop.f32.mrf.mxu1  ;;  %v697_v32 = vsel %vm493_vm0, %v692_v0, %v696_v4  ;;  %v795_v4 = vrot.slane %v6700_v11, 1 }
  0xbc   : > { %v6584_v51 = vpop.f32.mrf.mxu3  ;;  %742 = vrot.lane.b32.xlu1 %v697_v32, %s6266_s8 }
  0xbd   : > { %v6763_v44 = vsel %vm746_vm1, %v795_v4, %v796_v21 }
  0xbe   : > { %8659 = vst [vmem:[#allocation16_spill] sm:$0xff] %v6763_v44 }
  0xc3   : > { %1043 = vmatmul.bf16.gmra.mxu0 %v6588_v52  ;;  %v6606_v12 = vpop.f32.mrf.mxu1 }
  0xc4   : > { %v6603_v9 = vpop.f32.mrf.mxu3 }
  0xc6   : > { %5294 = vmatmul.msk.bf16.gmra.mxu1 %vm801_vm2, %v6609_v13 }
  0xc9   : > { %5358 = vmatmul.msk.bf16.gmra.mxu3 %vm801_vm2, %v6565_v36 }
  0xcb   : > { %1301 = vmatmul.bf16.gmra.mxu2 %v6588_v52  ;;  %v6625_v40 = vpop.f32.mrf.mxu1 }
  0xcc   : > { %v6619_v37 = vpop.f32.mrf.mxu3 }
  0xd3   : > { %1048 = vmatmul.bf16.gmra.mxu0 %v6623_v38  ;;  %v6632_v47 = vpop.f32.mrf.mxu1 }
  0xd4   : > { %v6630_v46 = vpop.f32.mrf.mxu3 }
  0xd6   : > { %5295 = vmatmul.msk.bf16.gmra.mxu1 %vm801_vm2, %v6635_v48 }
  0xd9   : > { %5359 = vmatmul.msk.bf16.gmra.mxu3 %vm801_vm2, %v6609_v13 }
  0xdb   : > { %1306 = vmatmul.bf16.gmra.mxu2 %v6623_v38  ;;  %v6654_v57 = vpop.f32.mrf.mxu1 }
  0xdc   : > { %v6648_v53 = vpop.f32.mrf.mxu3 }
  0xe3   : > { %1053 = vmatmul.bf16.gmra.mxu0 %v6652_v54  ;;  %v6668_v8 = vpop.f32.mrf.mxu1 }
  0xe4   : > { %v6662_v1 = vpop.f32.mrf.mxu3 }
  0xe6   : > { %5296 = vmatmul.msk.bf16.gmra.mxu1 %vm801_vm2, %v6671_v2 }
  0xe9   : > { %5360 = vmatmul.msk.bf16.gmra.mxu3 %vm801_vm2, %v6635_v48 }
  0xeb   : > { %1311 = vmatmul.bf16.gmra.mxu2 %v6652_v54  ;;  %v6692_v50 = vpop.f32.mrf.mxu1 }
  0xec   : > { %v6684_v42 = vpop.f32.mrf.mxu3 }
  0xf3   : > { %1058 = vmatmul.bf16.gmra.mxu0 %v6688_v43  ;;  %v6706_v34 = vpop.f32.mrf.mxu1 }
  0xf4   : > { %v6703_v24 = vpop.f32.mrf.mxu3 }
  0xf6   : > { %5297 = vmatmul.msk.bf16.gmra.mxu1 %vm801_vm2, %v6709_v6 }
  0xf9   : > { %5361 = vmatmul.msk.bf16.gmra.mxu3 %vm801_vm2, %v6671_v2 }
  0xfb   : > { %1316 = vmatmul.bf16.gmra.mxu2 %v6688_v43  ;;  %v6731_v23 = vpop.f32.mrf.mxu1 }
  0xfc   : > { %v6725_v10 = vpop.f32.mrf.mxu3  ;;  %8653 = vst [vmem:[#allocation10_spill] sm:$0xff] %v6731_v23 }
  0xfd   : > { %8652 = vst [vmem:[#allocation9_spill] sm:$0xff] %v6725_v10 }
 0x103   : > { %1063 = vmatmul.bf16.gmra.mxu0 %v6729_v22  ;;  %v6738_v58 = vpop.f32.mrf.mxu1 }
 0x104   : > { %v6736_v33 = vpop.f32.mrf.mxu3 }
 0x105   : > { %8654 = vst [vmem:[#allocation11_spill] sm:$0xff] %v6736_v33 }
 0x106   : > { %5298 = vmatmul.msk.bf16.gmra.mxu1 %vm801_vm2, %v6741_v59 }
 0x109   : > { %5362 = vmatmul.msk.bf16.gmra.mxu3 %vm801_vm2, %v6709_v6 }
 0x10b   : > { %1321 = vmatmul.bf16.gmra.mxu2 %v6729_v22  ;;  %v6754_v0 = vpop.f32.mrf.mxu1 }
 0x10c   : > { %v6748_v60 = vpop.f32.mrf.mxu3  ;;  %8657 = vst [vmem:[#allocation14_spill] sm:$0xff] %v6754_v0  ;;  %v6780_v0 = vsel %vm801_vm2, %v6491_v25, %v729_v41  ;;  %v731_v25 = vpop.permute.xlu1 %730 }
 0x10d   : > { %8656 = vst [vmem:[#allocation13_spill] sm:$0xff] %v6748_v60  ;;  %v6803_v41 = vsel %vm801_vm2, %v6514_v56, %v731_v25  ;;  %v733_v56 = vpop.permute.xlu2 %732 }
 0x113   : > { %1068 = vmatmul.bf16.gmra.mxu0 %v6752_v39  ;;  %v6760_v29 = vpop.f32.mrf.mxu1 }
 0x114   : > { %v6758_v32 = vpop.f32.mrf.mxu3 }
 0x115   : > { %8658 = vst [vmem:[#allocation15_spill] sm:$0xff] %v6758_v32 }
 0x116   : > { %5299 = vmatmul.msk.bf16.gmra.mxu1 %vm801_vm2, %v6763_v44 }
 0x119   : > { %5363 = vmatmul.msk.bf16.gmra.mxu3 %vm801_vm2, %v6741_v59 }
 0x11b   : > { %1326 = vmatmul.bf16.gmra.mxu2 %v6752_v39  ;;  %v6783_v44 = vpop.f32.mrf.mxu1 }
 0x11c   : > { %v6776_v21 = vpop.f32.mrf.mxu3 }
 0x11d   : > { %8660 = vst [vmem:[#allocation17_spill] sm:$0xff] %v6776_v21 }
 0x11e   : > { %v1287_v32 = vpop.f32.mrf.mxu2 }
 0x120   : > { %v1034_v4 = vpop.f32.mrf.mxu0 }
 0x121   : > { %v1124_v60 = vadd.f32 %v6533_v14, %v1034_v4 }
 0x123   : > { %v6785_v33 = vadd.f32 %v1287_v32, %v1124_v60  ;;  %1073 = vmatmul.bf16.gmra.mxu0 %v6780_v0  ;;  %v6791_v45 = vpop.f32.mrf.mxu1 }
 0x124   : > { %v6788_v59 = vpop.f32.mrf.mxu3 }
 0x125   : > { %8661 = vst [vmem:[#allocation18_spill] sm:$0xff] %v6788_v59 }
 0x126   : > { %v1289_v23 = vpop.f32.mrf.mxu2  ;;  %1564 = vmatmul.bf16.vlgmr.msrb.gmra.mxu1 %v6546_v17 }
 0x128   : > { %v1036_v10 = vpop.f32.mrf.mxu0 }
 0x129   : > { %v1126_v26 = vadd.f32 %v6548_v20, %v1036_v10  ;;  %5412 = vmatmul.msk.bf16.vlgmr.msrb.gmra.mxu3 %vm801_vm2, %v6415_v63 }
 0x12b   : > { %v6793_v21 = vadd.f32 %v1289_v23, %v1126_v26  ;;  %1331 = vmatmul.bf16.gmra.mxu2 %v6780_v0  ;;  %v6806_v10 = vpop.f32.mrf.mxu1 }
 0x12c   : > { %v6799_v32 = vpop.f32.mrf.mxu3  ;;  %8663 = vst [vmem:[#allocation20_spill] sm:$0xff] %v6806_v10 }
 0x12d   : > { %8662 = vst [vmem:[#allocation19_spill] sm:$0xff] %v6799_v32 }
 0x12e   : > { %v1292_v14 = vpop.f32.mrf.mxu2 }
 0x130   : > { %v1039_v60 = vpop.f32.mrf.mxu0 }
 0x131   : > { %v1129_v20 = vadd.f32 %v6562_v35, %v1039_v60  ;;  %v6020_v35 = vld [vmem:[%s8621_s3 + $0xd8] sm:$0xff] }
 0x132   : > { %3128 = vmatpush.bf16.msrb.mxu0 %v6020_v35 }
 0x133   : > { %v6808_v23 = vadd.f32 %v1292_v14, %v1129_v20  ;;  %1078 = vmatmul.bf16.gmra.mxu0 %v6803_v41  ;;  %v6814_v59 = vpop.f32.mrf.mxu1 }
 0x134   : > { %v6811_v63 = vpop.f32.mrf.mxu3 }
 0x135   : > { %8664 = vst [vmem:[#allocation21_spill] sm:$0xff] %v6811_v63 }
 0x136   : > { %v1294_v17 = vpop.f32.mrf.mxu2  ;;  %1569 = vmatmul.bf16.gmra.mxu1 %v6588_v52  ;;  %v6832_v52 = vsel %vm801_vm2, %v6581_v49, %v733_v56  ;;  %v735_v49 = vpop.permute.xlu0 %734 }
 0x138   : > { %v1041_v4 = vpop.f32.mrf.mxu0 }
 0x139   : > { %v1131_v26 = vadd.f32 %v6592_v55, %v1041_v4  ;;  %5413 = vmatmul.msk.bf16.gmra.mxu3 %vm801_vm2, %v6423_v5  ;;  %v6028_v55 = vld [vmem:[%s8621_s3 + $0x118] sm:$0xff] }
 0x13a   : > { %3217 = vmatpush.bf16.msrb.mxu2 %v6028_v55 }
 0x13b   : > { %v6816_v32 = vadd.f32 %v1294_v17, %v1131_v26  ;;  %1336 = vmatmul.bf16.gmra.mxu2 %v6803_v41  ;;  %v6835_v20 = vpop.f32.mrf.mxu1 }
 0x13c   : > { %v6828_v60 = vpop.f32.mrf.mxu3  ;;  %8666 = vst [vmem:[#allocation23_spill] sm:$0xff] %v6835_v20 }
 0x13d   : > { %8665 = vst [vmem:[#allocation22_spill] sm:$0xff] %v6828_v60 }
 0x13e   : > { %v1297_v25 = vpop.f32.mrf.mxu2 }
 0x140   : > { %v1044_v14 = vpop.f32.mrf.mxu0 }
 0x141   : > { %v1134_v5 = vadd.f32 %v6606_v12, %v1044_v14  ;;  %v6855_v14 = vsel %vm801_vm2, %v6554_v27, %v735_v49  ;;  %v737_v27 = vpop.permute.xlu1 %736 }
 0x143   : > { %v6837_v17 = vadd.f32 %v1297_v25, %v1134_v5  ;;  %1083 = vmatmul.bf16.gmra.mxu0 %v6832_v52  ;;  %v6843_v55 = vpop.f32.mrf.mxu1 }
 0x144   : > { %v6840_v63 = vpop.f32.mrf.mxu3 }
 0x145   : > { %8667 = vst [vmem:[#allocation24_spill] sm:$0xff] %v6840_v63 }
 0x146   : > { %v1299_v4 = vpop.f32.mrf.mxu2  ;;  %1574 = vmatmul.bf16.gmra.mxu1 %v6623_v38 }
 0x148   : > { %v1046_v26 = vpop.f32.mrf.mxu0 }
 0x149   : > { %v1136_v35 = vadd.f32 %v6625_v40, %v1046_v26  ;;  %5414 = vmatmul.msk.bf16.gmra.mxu3 %vm801_vm2, %v6446_v28 }
 0x14b   : > { %v6845_v60 = vadd.f32 %v1299_v4, %v1136_v35  ;;  %1341 = vmatmul.bf16.gmra.mxu2 %v6832_v52  ;;  %v6858_v5 = vpop.f32.mrf.mxu1 }
 0x14c   : > { %v6851_v25 = vpop.f32.mrf.mxu3  ;;  %8669 = vst [vmem:[#allocation26_spill] sm:$0xff] %v6858_v5 }
 0x14d   : > { %8668 = vst [vmem:[#allocation25_spill] sm:$0xff] %v6851_v25 }
 0x14e   : > { %v1302_v12 = vpop.f32.mrf.mxu2 }
 0x150   : > { %v1049_v56 = vpop.f32.mrf.mxu0 }
 0x151   : > { %v1139_v40 = vadd.f32 %v6632_v47, %v1049_v56  ;;  %v6019_v47 = vld [vmem:[%s8621_s3 + $0xd0] sm:$0xff] }
 0x152   : > { %3129 = vmatpush.bf16.msrb.mxu0 %v6019_v47 }
 0x153   : > { %v6860_v4 = vadd.f32 %v1302_v12, %v1139_v40  ;;  %1088 = vmatmul.bf16.gmra.mxu0 %v6855_v14  ;;  %v6866_v63 = vpop.f32.mrf.mxu1 }
 0x154   : > { %v6863_v28 = vpop.f32.mrf.mxu3 }
 0x155   : > { %8670 = vst [vmem:[#allocation27_spill] sm:$0xff] %v6863_v28 }
 0x156   : > { %v1304_v38 = vpop.f32.mrf.mxu2  ;;  %1579 = vmatmul.bf16.gmra.mxu1 %v6652_v54  ;;  %v6884_v54 = vsel %vm801_vm2, %v6600_v7, %v737_v27  ;;  %v739_v7 = vpop.permute.xlu2 %738 }
 0x158   : > { %v1051_v26 = vpop.f32.mrf.mxu0 }
 0x159   : > { %v1141_v35 = vadd.f32 %v6654_v57, %v1051_v26  ;;  %5415 = vmatmul.msk.bf16.gmra.mxu3 %vm801_vm2, %v6473_v3  ;;  %v6027_v57 = vld [vmem:[%s8621_s3 + $0x110] sm:$0xff] }
 0x15a   : > { %3218 = vmatpush.bf16.msrb.mxu2 %v6027_v57 }
 0x15b   : > { %v6868_v25 = vadd.f32 %v1304_v38, %v1141_v35  ;;  %1346 = vmatmul.bf16.gmra.mxu2 %v6855_v14  ;;  %v6887_v40 = vpop.f32.mrf.mxu1 }
 0x15c   : > { %v6880_v56 = vpop.f32.mrf.mxu3  ;;  %8672 = vst [vmem:[#allocation29_spill] sm:$0xff] %v6887_v40 }
 0x15d   : > { %8671 = vst [vmem:[#allocation28_spill] sm:$0xff] %v6880_v56 }
 0x15e   : > { %v1307_v49 = vpop.f32.mrf.mxu2 }
 0x160   : > { %v1054_v12 = vpop.f32.mrf.mxu0 }
 0x161   : > { %v1144_v3 = vadd.f32 %v6668_v8, %v1054_v12  ;;  %v6908_v12 = vsel %vm801_vm2, %v6681_v18, %v739_v7  ;;  %v741_v18 = vpop.permute.xlu0 %740  ;;  %v6026_v7 = vld [vmem:[%s8621_s3 + $0x108] sm:$0xff] }
 0x162   : > { %3219 = vmatpush.bf16.msrb.mxu2 %v6026_v7 }
 0x163   : > { %v6889_v38 = vadd.f32 %v1307_v49, %v1144_v3  ;;  %1093 = vmatmul.bf16.gmra.mxu0 %v6884_v54  ;;  %v6898_v57 = vpop.f32.mrf.mxu1 }
 0x164   : > { %v6896_v47 = vpop.f32.mrf.mxu3 }
 0x165   : > { %8673 = vst [vmem:[#allocation30_spill] sm:$0xff] %v6896_v47 }
 0x166   : > { %v6892_v26 = vpop.f32.mrf.mxu2  ;;  %1584 = vmatmul.bf16.gmra.mxu1 %v6688_v43 }
 0x168   : > { %v6894_v35 = vpop.f32.mrf.mxu0 }
 0x169   : > { %5416 = vmatmul.msk.bf16.gmra.mxu3 %vm801_vm2, %v6482_v19 }
 0x16b   : > { %1351 = vmatmul.bf16.gmra.mxu2 %v6884_v54  ;;  %v6911_v47 = vpop.f32.mrf.mxu1 }
 0x16c   : > { %v6904_v49 = vpop.f32.mrf.mxu3  ;;  %8675 = vst [vmem:[#allocation32_spill] sm:$0xff] %v6911_v47 }
 0x16d   : > { %8674 = vst [vmem:[#allocation31_spill] sm:$0xff] %v6904_v49 }
 0x16e   : > { %v1312_v8 = vpop.f32.mrf.mxu2 }
 0x170   : > { %v1059_v27 = vpop.f32.mrf.mxu0 }
 0x171   : > { %v1149_v3 = vadd.f32 %v6706_v34, %v1059_v27  ;;  %v6018_v34 = vld [vmem:[%s8621_s3 + $0xc8] sm:$0xff] }
 0x172   : > { %3130 = vmatpush.bf16.msrb.mxu0 %v6018_v34 }
 0x173   : > { %v6913_v56 = vadd.f32 %v1312_v8, %v1149_v3  ;;  %1098 = vmatmul.bf16.gmra.mxu0 %v6908_v12  ;;  %v6922_v28 = vpop.f32.mrf.mxu1 }
 0x174   : > { %v6920_v40 = vpop.f32.mrf.mxu3 }
 0x175   : > { %8676 = vst [vmem:[#allocation33_spill] sm:$0xff] %v6920_v40 }
 0x176   : > { %v6916_v43 = vpop.f32.mrf.mxu2  ;;  %1589 = vmatmul.bf16.gmra.mxu1 %v6729_v22  ;;  %v6938_v22 = vsel %vm801_vm2, %v6660_v62, %v741_v18  ;;  %v743_v62 = vpop.permute.xlu1 %742 }
 0x178   : > { %v6918_v19 = vpop.f32.mrf.mxu0 }
 0x179   : > { %5417 = vmatmul.msk.bf16.gmra.mxu3 %vm801_vm2, %v6496_v31 }
 0x17b   : > { %1356 = vmatmul.bf16.gmra.mxu2 %v6908_v12  ;;  %v6941_v40 = vpop.f32.mrf.mxu1 }
 0x17c   : > { %v6934_v3 = vpop.f32.mrf.mxu3  ;;  %8678 = vst [vmem:[#allocation35_spill] sm:$0xff] %v6941_v40 }
 0x17d   : > { %8677 = vst [vmem:[#allocation34_spill] sm:$0xff] %v6934_v3 }
 0x17e   : > { %v1317_v8 = vpop.f32.mrf.mxu2 }
 0x180   : > { %v1064_v27 = vpop.f32.mrf.mxu0 }
 0x181   : > { %v1154_v31 = vadd.f32 %v6738_v58, %v1064_v27  ;;  %v6962_v27 = vsel %vm801_vm2, %v6700_v11, %v743_v62  ;;  %v348_v62 = vld [vmem:[%s6373_s29 + $0xd4] sm:$0x1] }
 0x183   : > { %v6943_v49 = vadd.f32 %v1317_v8, %v1154_v31  ;;  %1103 = vmatmul.bf16.gmra.mxu0 %v6938_v22  ;;  %v6952_v7 = vpop.f32.mrf.mxu1 }
 0x184   : > { %v6950_v34 = vpop.f32.mrf.mxu3 }
 0x185   : > { %8679 = vst [vmem:[#allocation36_spill] sm:$0xff] %v6950_v34 }
 0x186   : > { %v6946_v47 = vpop.f32.mrf.mxu2  ;;  %1594 = vmatmul.bf16.gmra.mxu1 %v6752_v39 }
 0x188   : > { %v6948_v5 = vpop.f32.mrf.mxu0 }
 0x189   : > { %5418 = vmatmul.msk.bf16.gmra.mxu3 %vm801_vm2, %v6519_v61 }
 0x18b   : > { %1361 = vmatmul.bf16.gmra.mxu2 %v6938_v22  ;;  %v6965_v34 = vpop.f32.mrf.mxu1 }
 0x18c   : > { %v6958_v8 = vpop.f32.mrf.mxu3  ;;  %8681 = vst [vmem:[#allocation38_spill] sm:$0xff] %v6965_v34 }
 0x18d   : > { %8680 = vst [vmem:[#allocation37_spill] sm:$0xff] %v6958_v8  ;;  %v6267_v8 = vmov 0  }
 0x18e   : > { %v1322_v58 = vpop.f32.mrf.mxu2  ;;  %1837 = vst [vmem:[#allocation2 + $0xc] sm:$0xf] %v6267_v8 }
 0x18f   : > { %1834 = vst [vmem:[#allocation2] sm:$0xf] %v6267_v8 }
 0x190   : > { %v1069_v18 = vpop.f32.mrf.mxu0  ;;  %1835 = vst [vmem:[#allocation2 + $0x4] sm:$0xf] %v6267_v8 }
 0x191   : > { %v1159_v31 = vadd.f32 %v6760_v29, %v1069_v18  ;;  %1836 = vst [vmem:[#allocation2 + $0x8] sm:$0x1] %v6267_v8  ;;  %v474_v18 = vunpack.c.l.b16 %v348_v62 }
 0x192   : > { %1838 = vst [vmem:[#allocation2 + $0x10] sm:$0xf] %v6267_v8 }
 0x193   : > { %v6967_v3 = vadd.f32 %v1322_v58, %v1159_v31  ;;  %1108 = vmatmul.bf16.gmra.mxu0 %v6962_v27  ;;  %v6978_v11 = vpop.f32.mrf.mxu1  ;;  %1839 = vst [vmem:[#allocation2 + $0x14] sm:$0x1] %v6267_v8  ;;  %v6990_v58 = vld [vmem:[%s6373_s29 + $0xcc] sm:$0xff] }
 0x194   : > { %v6974_v40 = vpop.f32.mrf.mxu3  ;;  %1840 = vst [vmem:[#allocation2 + $0x18] sm:$0xf] %v6267_v8  ;;  %v699_v62 = vshrl.u32 %v6990_v58, 16 }
 0x195   : > { %8683 = vst [vmem:[#allocation40_spill] sm:$0xff] %v6974_v40 }
 0x196   : > { %v6970_v39 = vpop.f32.mrf.mxu2  ;;  %1599 = vmatmul.bf16.gmra.mxu1 %v6780_v0  ;;  %1841 = vst [vmem:[#allocation2 + $0x1c] sm:$0xf] %v6267_v8  ;;  %v6997_v0 = vpack.c.b16 %v474_v18, %v474_v18 }
 0x197   : > { %8682 = vst [vmem:[#allocation39_spill] sm:$0xff] %v6970_v39 }
 0x198   : > { %v6972_v61 = vpop.f32.mrf.mxu0  ;;  %1842 = vst [vmem:[#allocation2 + $0x20] sm:$0x1] %v6267_v8  ;;  %v706_v39 = vshll.u32 %v6997_v0, 16 }
 0x199   : > { %5419 = vmatmul.msk.bf16.gmra.mxu3 %vm801_vm2, %v6536_v15  ;;  %v701_v15 = vshll.u32 %v6990_v58, 16  ;;  %1843 = vst [vmem:[#allocation2 + $0x24] sm:$0xf] %v6267_v8 }
 0x19a   : > { %1844 = vst [vmem:[#allocation2 + $0x28] sm:$0xf] %v6267_v8  ;;  %v708_v18 = vrot.slane %v706_v39, 1 }
 0x19b   : > { %v7000_v20 = vpop.f32.mrf.mxu1  ;;  %1845 = vst [vmem:[#allocation2 + $0x2c] sm:$0x1] %v6267_v8 }
 0x19c   : > { %v6992_v40 = vpop.f32.mrf.mxu3  ;;  %8685 = vst [vmem:[#allocation42_spill] sm:$0xff] %v7000_v20 }
 0x19d   : > { %8684 = vst [vmem:[#allocation41_spill] sm:$0xff] %v6992_v40  ;;  %v703_v40 = vrot.slane %v701_v15, 1 }
 0x19e   : > { %v1327_v29 = vpop.f32.mrf.mxu2  ;;  %1846 = vst [vmem:[#allocation2 + $0x30] sm:$0xf] %v6267_v8 }
 0x19f   : > { %1847 = vst [vmem:[#allocation2 + $0x34] sm:$0xf] %v6267_v8 }
 0x1a0   : > { %v1074_v31 = vpop.f32.mrf.mxu0  ;;  %1848 = vst [vmem:[#allocation2 + $0x38] sm:$0x1] %v6267_v8 }
 0x1a1   : > { %v1164_v34 = vadd.f32 %v6791_v45, %v1074_v31  ;;  %v704_v45 = vor.u32 %v703_v40, %v699_v62  ;;  %1849 = vst [vmem:[#allocation2 + $0x3c] sm:$0xf] %v6267_v8 }
 0x1a2   : > { %1850 = vst [vmem:[#allocation2 + $0x40] sm:$0xf] %v6267_v8 }
 0x1a3   : > { %v7003_v10 = vadd.f32 %v1327_v29, %v1164_v34  ;;  %v709_v34 = vsel %vm493_vm0, %v704_v45, %v708_v18  ;;  %v1565_v40 = vpop.f32.mrf.mxu1  ;;  %1851 = vst [vmem:[#allocation2 + $0x44] sm:$0x1] %v6267_v8  ;;  %v1377_v45 = vadd.f32 %v6542_v16, %v6785_v33 }
 0x1a4   : > { %v7017_v20 = vpop.f32.mrf.mxu3  ;;  %744 = vrot.lane.b32.xlu2 %v709_v34, %s6266_s8  ;;  %1852 = vst [vmem:[#allocation2 + $0x48] sm:$0xf] %v6267_v8  ;;  %v6017_v34 = vld [vmem:[%s8621_s3 + $0xc0] sm:$0xff]  ;;  %s5081_s8 = sshll.u32 %s5078_s14, 4  ;;  %s5082_s8 = int_to_ptr.hbm [resolvable:$true] %s5081_s8 }
 0x1a5   : > { %8687 = vst [vmem:[#allocation44_spill] sm:$0xff] %v7017_v20  ;;  %v6025_v20 = vld [vmem:[%s8621_s3 + $0x100] sm:$0xff]  ;;  %3131 = vmatpush.bf16.msrb.mxu0 %v6017_v34  ;;  %s6209_s16 = sshra.s32 %s5082_s8, 4  ;;  %s6210_s16 = int_to_ptr.hbm [resolvable:$true] %s6209_s16 }
 0x1a6   : > { %v7010_v31 = vpop.f32.mrf.mxu2  ;;  %1853 = vst [vmem:[#allocation2 + $0x4c] sm:$0xf] %v6267_v8  ;;  %1604 = vmatmul.bf16.gmra.mxu1 %v6803_v41  ;;  %3220 = vmatpush.bf16.msrb.mxu2 %v6025_v20  ;;  %v1379_v20 = vadd.f32 %v6556_v30, %v6793_v21  ;;  %s6211_s18 = scalar_lea.hbm %s6210_s16, 256  ;;  %p6216_p3 = scmp.lt.s32.totalorder %s6210_s16, %s8625_s7 }
 0x1a7   : > { %8686 = vst [vmem:[#allocation43_spill] sm:$0xff] %v7010_v31  ;;  %p6212_p0 = scmp.ne.s32.totalorder %s6210_s16, %s6211_s18  ;;  %p6217_p4 = scmp.lt.s32.totalorder %s6215_s21, %s6211_s18 }
 0x1a8   : > { %v7015_v29 = vpop.f32.mrf.mxu0  ;;  %1854 = vst [vmem:[#allocation2 + $0x50] sm:$0x1] %v6267_v8 }
 0x1a9   : > { %5420 = vmatmul.msk.bf16.gmra.mxu3 %vm801_vm2, %v6565_v36  ;;  %1855 = vst [vmem:[#allocation2 + $0x54] sm:$0xf] %v6267_v8  ;;  %v7038_v36 = vld [vmem:[%s8620_s2] ss:$0 sm:$0xff]  ;;  %p6213_p1 = pnand %p6212_p0, %p6348_p5  ;;  %p6218_p7 = por %p6217_p4, %p6216_p3 }
 0x1aa   : > { %1856 = vst [vmem:[#allocation2 + $0x58] sm:$0xf] %v6267_v8 }
 0x1ab   : > { %1857 = vst [vmem:[#allocation2 + $0x5c] sm:$0x1] %v6267_v8  ;;  %v1567_v16 = vpop.f32.mrf.mxu1  ;;  %p6214_p2 = pneg %p6213_p1 }
 0x1ac   : > { %v1654_v62 = vpop.f32.mrf.mxu3  ;;  %1858 = vst [vmem:[#allocation2 + $0x60] sm:$0xf] %v6267_v8 }
 0x1ad   : > { %v1655_v41 = vadd.f32 %v1654_v62, %v1565_v40  ;;  %1859 = vst [vmem:[#allocation2 + $0x64] sm:$0xf] %v6267_v8  ;;  %p6219_p8 = pnand %p6218_p7, %p6214_p2 }
 0x1ae   : > { %v1332_v39 = vpop.f32.mrf.mxu2  ;;  %1860 = vst [vmem:[#allocation2 + $0x68] sm:$0x1] %v6267_v8 }
 0x1af   : > { %1861 = vst [vmem:[#allocation2 + $0x6c] sm:$0xf] %v6267_v8 }
 0x1b0   : > { %v1079_v15 = vpop.f32.mrf.mxu0  ;;  %1862 = vst [vmem:[#allocation2 + $0x70] sm:$0xf] %v6267_v8 }
 0x1b1   : > { %v1169_v18 = vadd.f32 %v6814_v59, %v1079_v15  ;;  %v1734_v59 = vadd.f32 %v1655_v41, %v1377_v45  ;;  %1863 = vst [vmem:[#allocation2 + $0x74] sm:$0x1] %v6267_v8 }
 0x1b2   : > { %1864 = vst [vmem:[#allocation2 + $0x78] sm:$0xf] %v6267_v8 }
 0x1b3   : > { %v7048_v33 = vadd.f32 %v1332_v39, %v1169_v18  ;;  %v1770_v40 = vadd.f32 %v7038_v36, %v1734_v59  ;;  %1865 = vst [vmem:[#allocation2 + $0x7c] sm:$0xf] %v6267_v8  ;;  %v1570_v34 = vpop.f32.mrf.mxu1 }
 0x1b4   : > { %v1656_v45 = vpop.f32.mrf.mxu3  ;;  %1866 = vst [vmem:[#allocation2 + $0x80] sm:$0x1] %v6267_v8 }
 0x1b5   : > { %8688 = vst [vmem:[#allocation45_spill] sm:$0xff] %v7048_v33  ;;  %v1802_v62 = vmax.f32 %v1770_v40, 0.0  ;;  %v1657_v41 = vadd.f32 %v1656_v45, %v1567_v16  ;;  %v2247_v16 = vld [vmem:[#allocation2 + $0xc] sm:$0xf] }
 0x1b6   : > { %v7055_v15 = vpop.f32.mrf.mxu2  ;;  %1867 = vst [vmem:[#allocation2 + $0x84] sm:$0xf] %v6267_v8  ;;  %1609 = vmatmul.bf16.gmra.mxu1 %v6832_v52 }
 0x1b7   : > { %8689 = vst [vmem:[#allocation46_spill] sm:$0xff] %v7055_v15  ;;  %v1888_v18 = vpack.c.bf16 %v1802_v62, %v1802_v62  ;;  %v1735_v40 = vadd.f32 %v1657_v41, %v1379_v20 }
 0x1b8   : > { %v7059_v39 = vpop.f32.mrf.mxu0  ;;  %1868 = vst [vmem:[#allocation2 + $0x88] sm:$0xf] %v6267_v8 }
 0x1b9   : > { %8690 = vst [vmem:[#allocation47_spill] sm:$0xff] %v7059_v39  ;;  %v1924_v59 = vshrl.u32 %v1888_v18, 16  ;;  %v1927_v33 = vshll.u32 %v1888_v18, 16  ;;  %v1771_v30 = vadd.f32 %v7038_v36, %v1735_v40  ;;  %5421 = vmatmul.msk.bf16.gmra.mxu3 %vm801_vm2, %v6609_v13  ;;  %v1382_v18 = vadd.f32 %v6584_v51, %v6808_v23  ;;  %v6000_v51 = vld [vmem:[%s8621_s3 + $0x38] sm:$0xff] }
 0x1ba   : > { %1869 = vst [vmem:[#allocation2 + $0x8c] sm:$0x1] %v6267_v8  ;;  %3535 = vmatpush.bf16.msra.mxu3 %v6000_v51  ;;  %v1384_v51 = vadd.f32 %v6603_v9, %v6816_v32  ;;  %v6008_v9 = vld [vmem:[%s8621_s3 + $0x78] sm:$0xff] }
 0x1bb   : > { %v1926_v15 = vrot.slane %v1924_v59, 7  ;;  %1870 = vst [vmem:[#allocation2 + $0x90] sm:$0xf] %v6267_v8  ;;  %v1803_v20 = vmax.f32 %v1771_v30, 0.0  ;;  %3624 = vmatpush.bf16.msra.mxu0 %v6008_v9 }
 0x1bc   : > { %1871 = vst [vmem:[#allocation2 + $0x94] sm:$0xf] %v6267_v8  ;;  %v1659_v41 = vpop.f32.mrf.mxu3 }
 0x1bd   : > { %v1929_v45 = vor.u32 %v1927_v33, %v1926_v15  ;;  %1872 = vst [vmem:[#allocation2 + $0x98] sm:$0x1] %v6267_v8  ;;  %v1889_v59 = vpack.c.bf16 %v1803_v20, %v1803_v20  ;;  %v1660_v39 = vadd.f32 %v1659_v41, %v1570_v34  ;;  %v1572_v33 = vpop.f32.mrf.mxu1 }
 0x1be   : > { %v1337_v62 = vpop.f32.mrf.mxu2  ;;  %1873 = vst [vmem:[#allocation2 + $0x9c] sm:$0xf] %v6267_v8 }
 0x1bf   : > { %v2248_v13 = vsel %vm7072_vm5, %v1929_v45, %v2247_v16  ;;  %1874 = vst [vmem:[#allocation2 + $0xa0] sm:$0xf] %v6267_v8  ;;  %v1932_v23 = vshrl.u32 %v1889_v59, 16  ;;  %v1736_v16 = vadd.f32 %v1660_v39, %v1382_v18  ;;  %v1935_v34 = vshll.u32 %v1889_v59, 16 }
 0x1c0   : > { %v1084_v52 = vpop.f32.mrf.mxu0  ;;  %2249 = vst [vmem:[#allocation2 + $0xc] sm:$0xf] %v2248_v13 }
 0x1c1   : > { %v1174_v40 = vadd.f32 %v6843_v55, %v1084_v52  ;;  %1875 = vst [vmem:[#allocation2 + $0xa4] sm:$0x1] %v6267_v8  ;;  %v1934_v55 = vrot.slane %v1932_v23, 7  ;;  %v1772_v45 = vadd.f32 %v7038_v36, %v1736_v16  ;;  %v2253_v23 = vld [vmem:[#allocation2 + $0x14] sm:$0x1] }
 0x1c2   : > { %1876 = vst [vmem:[#allocation2 + $0xa8] sm:$0xf] %v6267_v8 }
 0x1c3   : > { %v7089_v30 = vadd.f32 %v1337_v62, %v1174_v40  ;;  %1877 = vst [vmem:[#allocation2 + $0xac] sm:$0xf] %v6267_v8  ;;  %v1930_v62 = vrot.slane %v1926_v15, 4  ;;  %v1937_v39 = vor.u32 %v1935_v34, %v1934_v55  ;;  %v1804_v18 = vmax.f32 %v1772_v45, 0.0 }
 0x1c4   : > { %1878 = vst [vmem:[#allocation2 + $0xb0] sm:$0x1] %v6267_v8  ;;  %v1661_v13 = vpop.f32.mrf.mxu3  ;;  %v1939_v15 = vrot.slane %v1934_v55, 4 }
 0x1c5   : > { %8693 = vst [vmem:[#allocation48_spill] sm:$0xff] %v7089_v30  ;;  %v1938_v59 = vsel %vm7096_vm8, %v1930_v62, %v1937_v39  ;;  %v1890_v40 = vpack.c.bf16 %v1804_v18, %v1804_v18  ;;  %v1662_v16 = vadd.f32 %v1661_v13, %v1572_v33  ;;  %v1575_v34 = vpop.f32.mrf.mxu1  ;;  %v6040_v62 = vld [vmem:[%s8621_s3 + $0x178] sm:$0xff] }
 0x1c6   : > { %v7100_v52 = vpop.f32.mrf.mxu2  ;;  %1879 = vst [vmem:[#allocation2 + $0xb4] sm:$0xf] %v6267_v8  ;;  %v6016_v33 = vld [vmem:[%s8621_s3 + $0xb8] sm:$0xff]  ;;  %1614 = vmatmul.bf16.gmra.mxu1 %v6855_v14  ;;  %v2254_v18 = vsel %vm7114_vm10, %v1939_v15, %v2253_v23 }
 0x1c7   : > { %8696 = vst [vmem:[#allocation49_spill] sm:$0xff] %v7100_v52  ;;  %v1941_v52 = vshrl.u32 %v1890_v40, 16  ;;  %v1737_v32 = vadd.f32 %v1662_v16, %v1384_v51  ;;  %v1944_v39 = vshll.u32 %v1890_v40, 16  ;;  %v2256_v13 = vld [vmem:[#allocation2 + $0x18] sm:$0xf]  ;;  %3302 = vmatpush.bf16.msra.mxu1 %v6040_v62  ;;  %3713 = vmatpush.bf16.msra.mxu2 %v6016_v33 }
 0x1c8   : > { %1880 = vst [vmem:[#allocation2 + $0xb8] sm:$0xf] %v6267_v8  ;;  %v7104_v41 = vpop.f32.mrf.mxu0 }
 0x1c9   : > { %8697 = vst [vmem:[#allocation50_spill] sm:$0xff] %v7104_v41  ;;  %v1943_v55 = vrot.slane %v1941_v52, 7  ;;  %5422 = vmatmul.msk.bf16.gmra.mxu3 %vm801_vm2, %v6635_v48  ;;  %v1773_v51 = vadd.f32 %v7038_v36, %v1737_v32  ;;  %v1387_v48 = vadd.f32 %v6619_v37, %v6837_v17  ;;  %v2260_v37 = vld [vmem:[#allocation2 + $0x20] sm:$0x1] }
 0x1ca   : > { %1881 = vst [vmem:[#allocation2 + $0xbc] sm:$0x1] %v6267_v8 }
 0x1cb   : > { %1882 = vst [vmem:[#allocation2 + $0xc0] sm:$0xf] %v6267_v8  ;;  %v1946_v52 = vor.u32 %v1944_v39, %v1943_v55  ;;  %v1805_v14 = vmax.f32 %v1773_v51, 0.0 }
 0x1cc   : > { %1883 = vst [vmem:[#allocation2 + $0xc4] sm:$0xf] %v6267_v8  ;;  %v1664_v30 = vpop.f32.mrf.mxu3 }
 0x1cd   : > { %1884 = vst [vmem:[#allocation2 + $0xc8] sm:$0x1] %v6267_v8  ;;  %v2257_v15 = vsel %vm7072_vm5, %v1946_v52, %v2256_v13  ;;  %v1665_v32 = vadd.f32 %v1664_v30, %v1575_v34  ;;  %v1891_v62 = vpack.c.bf16 %v1805_v14, %v1805_v14  ;;  %v1577_v9 = vpop.f32.mrf.mxu1  ;;  %v1947_v13 = vrot.slane %v1943_v55, 4 }
 0x1ce   : > { %1885 = vst [vmem:[#allocation2 + $0xcc] sm:$0xf] %v6267_v8  ;;  %v1342_v16 = vpop.f32.mrf.mxu2  ;;  %v1389_v14 = vadd.f32 %v6630_v46, %v6845_v60 }
 0x1cf   : > { %1886 = vst [vmem:[#allocation2 + $0xd0] sm:$0xf] %v6267_v8  ;;  %v1738_v33 = vadd.f32 %v1665_v32, %v1387_v48  ;;  %v1952_v41 = vshll.u32 %v1891_v62, 16 }
 0x1d0   : > { %1887 = vst [vmem:[#allocation2 + $0xd4] sm:$0x1] %v6267_v8  ;;  %v1089_v40 = vpop.f32.mrf.mxu0 }
 0x1d1   : > { %2250 = vst [vmem:[#allocation2 + $0x10] sm:$0xf] %v1938_v59  ;;  %v1179_v23 = vadd.f32 %v6866_v63, %v1089_v40  ;;  %v1949_v59 = vshrl.u32 %v1891_v62, 16  ;;  %v1774_v39 = vadd.f32 %v7038_v36, %v1738_v33 }
 0x1d2   : > { %2255 = vst [vmem:[#allocation2 + $0x14] sm:$0x1] %v2254_v18 }
 0x1d3   : > { %2258 = vst [vmem:[#allocation2 + $0x18] sm:$0xf] %v2257_v15  ;;  %v7142_v8 = vadd.f32 %v1342_v16, %v1179_v23  ;;  %v1951_v51 = vrot.slane %v1949_v59, 7  ;;  %v1806_v17 = vmax.f32 %v1774_v39, 0.0 }
 0x1d4   : > { %v1666_v52 = vpop.f32.mrf.mxu3 }
 0x1d5   : > { %v1954_v63 = vor.u32 %v1952_v41, %v1951_v51  ;;  %v1956_v30 = vrot.slane %v1951_v51, 4  ;;  %v1892_v40 = vpack.c.bf16 %v1806_v17, %v1806_v17  ;;  %v1667_v48 = vadd.f32 %v1666_v52, %v1577_v9  ;;  %v1580_v41 = vpop.f32.mrf.mxu1 }
 0x1d6   : > { %v7145_v31 = vpop.f32.mrf.mxu2  ;;  %1619 = vmatmul.bf16.gmra.mxu1 %v6884_v54 }
 0x1d7   : > { %v1955_v23 = vsel %vm7096_vm8, %v1947_v13, %v1954_v63  ;;  %v2261_v55 = vsel %vm7114_vm10, %v1956_v30, %v2260_v37  ;;  %v1958_v62 = vshrl.u32 %v1892_v40, 16  ;;  %v1739_v33 = vadd.f32 %v1667_v48, %v1389_v14  ;;  %v2263_v37 = vld [vmem:[#allocation2 + $0x24] sm:$0xf] }
 0x1d8   : > { %v7147_v18 = vld [vmem:[#allocation2 + $0xc] sm:$0xff]  ;;  %v7149_v34 = vpop.f32.mrf.mxu0  ;;  %2259 = vst [vmem:[#allocation2 + $0x1c] sm:$0xf] %v1955_v23  ;;  %v1961_v39 = vshll.u32 %v1892_v40, 16 }
 0x1d9   : > { %v2366_v16 = vld [vmem:[#allocation2 + $0x14] sm:$0x1]  ;;  %3132 = vmatmul.bf16.vlgmr.msrb.gmra.mxu0 %v7147_v18  ;;  %v2592_v32 = vshll.u32 %v7147_v18, 16  ;;  %2262 = vst [vmem:[#allocation2 + $0x20] sm:$0x1] %v2261_v55  ;;  %v2590_v46 = vshrl.u32 %v7147_v18, 16  ;;  %v1775_v51 = vadd.f32 %v7038_v36, %v1739_v33  ;;  %5423 = vmatmul.msk.bf16.gmra.mxu3 %vm801_vm2, %v6671_v2 }
 0x1da   : > { %v2542_v15 = vunpack.c.l.b16 %v2366_v16  ;;  %v1960_v9 = vrot.slane %v1958_v62, 7  ;;  %v1392_v16 = vadd.f32 %v6648_v53, %v6860_v4  ;;  %v5999_v53 = vld [vmem:[%s8621_s3 + $0x30] sm:$0xff] }
 0x1db   : > { %v2594_v60 = vrot.slane %v2592_v32, 1  ;;  %v1807_v52 = vmax.f32 %v1775_v51, 0.0  ;;  %3536 = vmatpush.bf16.msra.mxu3 %v5999_v53 }
 0x1dc   : > { %v7159_v59 = vpack.c.b16 %v2542_v15, %v2542_v15  ;;  %v1963_v30 = vor.u32 %v1961_v39, %v1960_v9  ;;  %v1669_v40 = vpop.f32.mrf.mxu3 }
 0x1dd   : > { %v2595_v17 = vor.u32 %v2594_v60, %v2590_v46  ;;  %v1893_v54 = vpack.c.bf16 %v1807_v52, %v1807_v52  ;;  %v1670_v2 = vadd.f32 %v1669_v40, %v1580_v41  ;;  %v1582_v32 = vpop.f32.mrf.mxu1  ;;  %v1964_v52 = vrot.slane %v1960_v9, 4 }
 0x1de   : > { %v2597_v13 = vshll.u32 %v7159_v59, 16  ;;  %v1347_v63 = vpop.f32.mrf.mxu2  ;;  %v2264_v15 = vsel %vm7072_vm5, %v1963_v30, %v2263_v37  ;;  %v1394_v9 = vadd.f32 %v6662_v1, %v6868_v25  ;;  %v6015_v1 = vld [vmem:[%s8621_s3 + $0xb0] sm:$0xff] }
 0x1df   : > { %2265 = vst [vmem:[#allocation2 + $0x24] sm:$0xf] %v2264_v15  ;;  %v7175_v62 = vld [vmem:[#allocation2 + $0x18] sm:$0xff]  ;;  %v1966_v4 = vshrl.u32 %v1893_v54, 16  ;;  %v1740_v46 = vadd.f32 %v1670_v2, %v1392_v16  ;;  %v1969_v51 = vshll.u32 %v1893_v54, 16  ;;  %3714 = vmatpush.bf16.msra.mxu2 %v6015_v1 }
 0x1e0   : > { %v2599_v14 = vrot.slane %v2597_v13, 1  ;;  %v1094_v48 = vpop.f32.mrf.mxu0  ;;  %v2369_v60 = vld [vmem:[#allocation2 + $0x20] sm:$0x1]  ;;  %v2604_v41 = vshll.u32 %v7175_v62, 16 }
 0x1e1   : > { %v1184_v23 = vadd.f32 %v6898_v57, %v1094_v48  ;;  %v2543_v57 = vunpack.c.l.b16 %v2369_v60  ;;  %v1968_v39 = vrot.slane %v1966_v4, 7  ;;  %v1776_v37 = vadd.f32 %v7038_v36, %v1740_v46 }
 0x1e2   : > { %v7173_v55 = vsel %vm493_vm0, %v2595_v17, %v2599_v14  ;;  %v2267_v17 = vld [vmem:[#allocation2 + $0x2c] sm:$0x1]  ;;  %v2606_v15 = vrot.slane %v2604_v41, 1  ;;  %v2602_v60 = vshrl.u32 %v7175_v62, 16  ;;  %v6039_v41 = vld [vmem:[%s8621_s3 + $0x170] sm:$0xff] }
 0x1e3   : > { %3221 = vmatmul.bf16.vlgmr.msrb.gmra.mxu2 %v7173_v55  ;;  %v7181_v33 = vadd.f32 %v1347_v63, %v1184_v23  ;;  %v7187_v30 = vpack.c.b16 %v2543_v57, %v2543_v57  ;;  %v1971_v14 = vor.u32 %v1969_v51, %v1968_v39  ;;  %v1973_v48 = vrot.slane %v1968_v39, 4  ;;  %v6007_v39 = vld [vmem:[%s8621_s3 + $0x70] sm:$0xff]  ;;  %3303 = vmatpush.bf16.msra.mxu1 %v6039_v41 }
 0x1e4   : > { %v1808_v63 = vmax.f32 %v1776_v37, 0.0  ;;  %v1671_v16 = vpop.f32.mrf.mxu3  ;;  %v2607_v37 = vor.u32 %v2606_v15, %v2602_v60  ;;  %3625 = vmatpush.bf16.msra.mxu0 %v6007_v39 }
 0x1e5   : > { %v2609_v23 = vshll.u32 %v7187_v30, 16  ;;  %v1972_v54 = vsel %vm7096_vm8, %v1964_v52, %v1971_v14  ;;  %v2268_v2 = vsel %vm7114_vm10, %v1973_v48, %v2267_v17  ;;  %v1672_v4 = vadd.f32 %v1671_v16, %v1582_v32  ;;  %v1585_v46 = vpop.f32.mrf.mxu1  ;;  %v2270_v52 = vld [vmem:[#allocation2 + $0x30] sm:$0xf] }
 0x1e6   : > { %v7185_v13 = vpop.f32.mrf.mxu2  ;;  %v1894_v53 = vpack.c.bf16 %v1808_v63, %v1808_v63  ;;  %2266 = vst [vmem:[#allocation2 + $0x28] sm:$0xf] %v1972_v54  ;;  %1624 = vmatmul.bf16.gmra.mxu1 %v6908_v12  ;;  %v1397_v16 = vadd.f32 %v6684_v42, %v6889_v38 }
 0x1e7   : > { %2269 = vst [vmem:[#allocation2 + $0x2c] sm:$0x1] %v2268_v2  ;;  %v1741_v51 = vadd.f32 %v1672_v4, %v1394_v9  ;;  %v2611_v17 = vrot.slane %v2609_v23, 1 }
 0x1e8   : > { %v7189_v40 = vpop.f32.mrf.mxu0  ;;  %v1975_v57 = vshrl.u32 %v1894_v53, 16  ;;  %v1978_v32 = vshll.u32 %v1894_v53, 16 }
 0x1e9   : > { %3137 = vmatmul.bf16.gmra.mxu0 %v7175_v62  ;;  %5424 = vmatmul.msk.bf16.gmra.mxu3 %vm801_vm2, %v6709_v6  ;;  %v1777_v14 = vadd.f32 %v7038_v36, %v1741_v51  ;;  %v7216_v23 = vsel %vm493_vm0, %v2607_v37, %v2611_v17  ;;  %v1146_v6 = vadd.f32 %v6692_v50, %v6894_v35 }
 0x1ea   : > { %v1977_v25 = vrot.slane %v1975_v57, 7 }
 0x1eb   : > { %v1809_v15 = vmax.f32 %v1777_v14, 0.0  ;;  %v1310_v35 = vadd.f32 %v6892_v26, %v1146_v6 }
 0x1ec   : > { %v1980_v63 = vor.u32 %v1978_v32, %v1977_v25  ;;  %v1674_v12 = vpop.f32.mrf.mxu3  ;;  %v1981_v32 = vrot.slane %v1977_v25, 4 }
 0x1ed   : > { %v1675_v9 = vadd.f32 %v1674_v12, %v1585_v46  ;;  %v7223_v4 = vld [vmem:[#allocation2 + $0x24] sm:$0xff]  ;;  %v1895_v60 = vpack.c.bf16 %v1809_v15, %v1809_v15  ;;  %v1587_v42 = vpop.f32.mrf.mxu1  ;;  %v1399_v26 = vadd.f32 %v6703_v24, %v1310_v35 }
 0x1ee   : > { %v1352_v48 = vpop.f32.mrf.mxu2  ;;  %v2271_v2 = vsel %vm7072_vm5, %v1980_v63, %v2270_v52  ;;  %v2372_v38 = vld [vmem:[#allocation2 + $0x2c] sm:$0x1]  ;;  %v2616_v50 = vshll.u32 %v7223_v4, 16  ;;  %v2274_v52 = vld [vmem:[#allocation2 + $0x38] sm:$0x1] }
 0x1ef   : > { %2272 = vst [vmem:[#allocation2 + $0x30] sm:$0xf] %v2271_v2  ;;  %v1742_v41 = vadd.f32 %v1675_v9, %v1397_v16  ;;  %v2544_v39 = vunpack.c.l.b16 %v2372_v38  ;;  %v1983_v51 = vshrl.u32 %v1895_v60, 16  ;;  %v1986_v17 = vshll.u32 %v1895_v60, 16  ;;  %v5998_v24 = vld [vmem:[%s8621_s3 + $0x28] sm:$0xff] }
 0x1f0   : > { %v1099_v54 = vpop.f32.mrf.mxu0  ;;  %v2614_v60 = vshrl.u32 %v7223_v4, 16  ;;  %3537 = vmatpush.bf16.msra.mxu3 %v5998_v24 }
 0x1f1   : > { %v1189_v53 = vadd.f32 %v6922_v28, %v1099_v54  ;;  %v1778_v28 = vadd.f32 %v7038_v36, %v1742_v41  ;;  %v7231_v46 = vpack.c.b16 %v2544_v39, %v2544_v39  ;;  %v1985_v37 = vrot.slane %v1983_v51, 7 }
 0x1f2   : > { %v2618_v54 = vrot.slane %v2616_v50, 1 }
 0x1f3   : > { %3226 = vmatmul.bf16.gmra.mxu2 %v7216_v23  ;;  %v7226_v57 = vadd.f32 %v1352_v48, %v1189_v53  ;;  %v1810_v14 = vmax.f32 %v1778_v28, 0.0  ;;  %v1988_v48 = vor.u32 %v1986_v17, %v1985_v37  ;;  %v1990_v63 = vrot.slane %v1985_v37, 4  ;;  %v8700_v37 = vld [vmem:[#allocation12_spill] sm:$0xff]  ;;  %v2277_v17 = vld [vmem:[#allocation2 + $0x3c] sm:$0xf] }
 0x1f4   : > { %v1676_v15 = vpop.f32.mrf.mxu3  ;;  %v2621_v12 = vshll.u32 %v7231_v46, 16  ;;  %v2619_v39 = vor.u32 %v2618_v54, %v2614_v60 }
 0x1f5   : > { %v1896_v6 = vpack.c.bf16 %v1810_v14, %v1810_v14  ;;  %v1677_v2 = vadd.f32 %v1676_v15, %v1587_v42  ;;  %v1989_v53 = vsel %vm7096_vm8, %v1981_v32, %v1988_v48  ;;  %v2275_v25 = vsel %vm7114_vm10, %v1990_v63, %v2274_v52  ;;  %v1590_v9 = vpop.f32.mrf.mxu1  ;;  %v6038_v42 = vld [vmem:[%s8621_s3 + $0x168] sm:$0xff]  ;;  %v8701_v48 = vld [vmem:[#allocation9_spill] sm:$0xff] }
 0x1f6   : > { %v7233_v1 = vpop.f32.mrf.mxu2  ;;  %2273 = vst [vmem:[#allocation2 + $0x34] sm:$0xf] %v1989_v53  ;;  %v2623_v51 = vrot.slane %v2621_v12, 1  ;;  %1629 = vmatmul.bf16.gmra.mxu1 %v6938_v22  ;;  %v1402_v63 = vadd.f32 %v8701_v48, %v6913_v56  ;;  %v6037_v22 = vld [vmem:[%s8621_s3 + $0x160] sm:$0xff] }
 0x1f7   : > { %v1992_v38 = vshrl.u32 %v1896_v6, 16  ;;  %v1743_v41 = vadd.f32 %v1677_v2, %v1399_v26  ;;  %2276 = vst [vmem:[#allocation2 + $0x38] sm:$0x1] %v2275_v25  ;;  %v1995_v35 = vshll.u32 %v1896_v6, 16  ;;  %3304 = vmatpush.bf16.msra.mxu1 %v6038_v42  ;;  %v5997_v26 = vld [vmem:[%s8621_s3 + $0x20] sm:$0xff] }
 0x1f8   : > { %v7235_v16 = vpop.f32.mrf.mxu0  ;;  %v7258_v15 = vsel %vm493_vm0, %v2619_v39, %v2623_v51  ;;  %v8702_v25 = vld [vmem:[#allocation10_spill] sm:$0xff]  ;;  %3538 = vmatpush.bf16.msra.mxu3 %v5997_v26 }
 0x1f9   : > { %3142 = vmatmul.bf16.gmra.mxu0 %v7223_v4  ;;  %v1994_v50 = vrot.slane %v1992_v38, 7  ;;  %v1779_v28 = vadd.f32 %v7038_v36, %v1743_v41  ;;  %5425 = vmatmul.msk.bf16.gmra.mxu3 %vm801_vm2, %v8700_v37  ;;  %v1151_v60 = vadd.f32 %v8702_v25, %v6918_v19  ;;  %v6036_v19 = vld [vmem:[%s8621_s3 + $0x158] sm:$0xff] }
 0x1fb   : > { %v1997_v52 = vor.u32 %v1995_v35, %v1994_v50  ;;  %v1811_v14 = vmax.f32 %v1779_v28, 0.0  ;;  %3305 = vmatpush.bf16.msra.mxu1 %v6037_v22 }
 0x1fc   : > { %v1679_v12 = vpop.f32.mrf.mxu3 }
 0x1fd   : > { %v2278_v6 = vsel %vm7072_vm5, %v1997_v52, %v2277_v17  ;;  %v1897_v2 = vpack.c.bf16 %v1811_v14, %v1811_v14  ;;  %v1680_v56 = vadd.f32 %v1679_v12, %v1590_v9  ;;  %v1592_v38 = vpop.f32.mrf.mxu1  ;;  %v7271_v41 = vld [vmem:[#allocation2 + $0x30] sm:$0xff]  ;;  %v5996_v9 = vld [vmem:[%s8621_s3 + $0x18] sm:$0xff]  ;;  %v2281_v52 = vld [vmem:[#allocation2 + $0x44] sm:$0x1] }
 0x1fe   : > { %v1357_v32 = vpop.f32.mrf.mxu2  ;;  %2279 = vst [vmem:[#allocation2 + $0x3c] sm:$0xf] %v2278_v6  ;;  %v2375_v42 = vld [vmem:[#allocation2 + $0x38] sm:$0x1]  ;;  %3539 = vmatpush.bf16.msra.mxu3 %v5996_v9  ;;  %v6006_v9 = vld [vmem:[%s8621_s3 + $0x68] sm:$0xff] }
 0x1ff   : > { %v2000_v39 = vshrl.u32 %v1897_v2, 16  ;;  %v1744_v24 = vadd.f32 %v1680_v56, %v1402_v63  ;;  %v2545_v35 = vunpack.c.l.b16 %v2375_v42  ;;  %v2003_v37 = vshll.u32 %v1897_v2, 16  ;;  %3306 = vmatpush.bf16.msra.mxu1 %v6036_v19  ;;  %v5995_v56 = vld [vmem:[%s8621_s3 + $0x10] sm:$0xff]  ;;  %3626 = vmatpush.bf16.msra.mxu0 %v6006_v9 }
 0x200   : > { %v1104_v54 = vpop.f32.mrf.mxu0  ;;  %v1998_v63 = vrot.slane %v1994_v50, 4 }
 0x201   : > { %v1194_v53 = vadd.f32 %v6952_v7, %v1104_v54  ;;  %v2628_v7 = vshll.u32 %v7271_v41, 16  ;;  %v2002_v28 = vrot.slane %v2000_v39, 7  ;;  %v1780_v17 = vadd.f32 %v7038_v36, %v1744_v24  ;;  %v8703_v39 = vld [vmem:[#allocation11_spill] sm:$0xff] }
 0x202   : > { %v7287_v48 = vpack.c.b16 %v2545_v35, %v2545_v35  ;;  %3540 = vmatpush.bf16.msra.mxu3 %v5995_v56 }
 0x203   : > { %3231 = vmatmul.bf16.gmra.mxu2 %v7258_v15  ;;  %v7274_v51 = vadd.f32 %v1357_v32, %v1194_v53  ;;  %v1315_v32 = vadd.f32 %v6916_v43, %v1151_v60  ;;  %v2005_v54 = vor.u32 %v2003_v37, %v2002_v28  ;;  %v2007_v12 = vrot.slane %v2002_v28, 4  ;;  %v6035_v43 = vld [vmem:[%s8621_s3 + $0x150] sm:$0xff]  ;;  %v6014_v28 = vld [vmem:[%s8621_s3 + $0xa8] sm:$0xff] }
 0x204   : > { %v1812_v22 = vmax.f32 %v1780_v17, 0.0  ;;  %v1681_v6 = vpop.f32.mrf.mxu3  ;;  %v2630_v53 = vrot.slane %v2628_v7, 1  ;;  %v2633_v2 = vshll.u32 %v7287_v48, 16  ;;  %v2626_v7 = vshrl.u32 %v7271_v41, 16  ;;  %3307 = vmatpush.bf16.msra.mxu1 %v6035_v43  ;;  %3715 = vmatpush.bf16.msra.mxu2 %v6014_v28  ;;  %v8705_v43 = vld [vmem:[#allocation13_spill] sm:$0xff] }
 0x205   : > { %v2006_v50 = vsel %vm7096_vm8, %v1998_v63, %v2005_v54  ;;  %v2282_v25 = vsel %vm7114_vm10, %v2007_v12, %v2281_v52  ;;  %v1404_v24 = vadd.f32 %v8703_v39, %v1315_v32  ;;  %v1682_v42 = vadd.f32 %v1681_v6, %v1592_v38  ;;  %v1595_v35 = vpop.f32.mrf.mxu1  ;;  %v6034_v38 = vld [vmem:[%s8621_s3 + $0x148] sm:$0xff]  ;;  %v8704_v12 = vld [vmem:[#allocation16_spill] sm:$0xff]  ;;  %v6033_v39 = vld [vmem:[%s8621_s3 + $0x140] sm:$0xff] }
 0x206   : > { %v7285_v14 = vpop.f32.mrf.mxu2  ;;  %v1898_v60 = vpack.c.bf16 %v1812_v22, %v1812_v22  ;;  %2280 = vst [vmem:[#allocation2 + $0x40] sm:$0xf] %v2006_v50  ;;  %v2631_v17 = vor.u32 %v2630_v53, %v2626_v7  ;;  %v2635_v32 = vrot.slane %v2633_v2, 1  ;;  %v5994_v52 = vld [vmem:[%s8621_s3 + $0x8] sm:$0xff]  ;;  %1634 = vmatmul.bf16.gmra.mxu1 %v6962_v27  ;;  %v1407_v56 = vadd.f32 %v8705_v43, %v6943_v49  ;;  %v745_v43 = vpop.permute.xlu2 %744 }
 0x207   : > { %2283 = vst [vmem:[#allocation2 + $0x44] sm:$0x1] %v2282_v25  ;;  %v1745_v37 = vadd.f32 %v1682_v42, %v1404_v24  ;;  %v2284_v22 = vld [vmem:[#allocation2 + $0x48] sm:$0xf]  ;;  %3541 = vmatpush.bf16.msra.mxu3 %v5994_v52  ;;  %v5993_v24 = vld [vmem:[%s8621_s3] sm:$0xff] }
 0x208   : > { %v7289_v26 = vpop.f32.mrf.mxu0  ;;  %v2009_v19 = vshrl.u32 %v1898_v60, 16  ;;  %v2012_v54 = vshll.u32 %v1898_v60, 16  ;;  %3308 = vmatpush.bf16.msra.mxu1 %v6034_v38  ;;  %v7324_v25 = vsel %vm493_vm0, %v2631_v17, %v2635_v32  ;;  %v8706_v42 = vld [vmem:[#allocation14_spill] sm:$0xff] }
 0x209   : > { %3147 = vmatmul.bf16.gmra.mxu0 %v7271_v41  ;;  %5426 = vmatmul.msk.bf16.gmra.mxu3 %vm801_vm2, %v8704_v12  ;;  %v1781_v6 = vadd.f32 %v7038_v36, %v1745_v37  ;;  %v1156_v7 = vadd.f32 %v8706_v42, %v6948_v5 }
 0x20a   : > { %v2011_v63 = vrot.slane %v2009_v19, 7 }
 0x20b   : > { %v1813_v50 = vmax.f32 %v1781_v6, 0.0  ;;  %3542 = vmatpush.bf16.msra.mxu3 %v5993_v24 }
 0x20c   : > { %v2014_v53 = vor.u32 %v2012_v54, %v2011_v63  ;;  %v1684_v60 = vpop.f32.mrf.mxu3  ;;  %3309 = vmatpush.bf16.msra.mxu1 %v6033_v39 }
 0x20d   : > { %v1685_v9 = vadd.f32 %v1684_v60, %v1595_v35  ;;  %v7337_v28 = vld [vmem:[#allocation2 + $0x3c] sm:$0xff]  ;;  %v1899_v37 = vpack.c.bf16 %v1813_v50, %v1813_v50  ;;  %v1597_v17 = vpop.f32.mrf.mxu1  ;;  %v798_v50 = vrot.slane %v6990_v58, 1 }
 0x20e   : > { %v1362_v2 = vpop.f32.mrf.mxu2  ;;  %v2285_v49 = vsel %vm7072_vm5, %v2014_v53, %v2284_v22  ;;  %v2378_v32 = vld [vmem:[#allocation2 + $0x44] sm:$0x1]  ;;  %v2640_v12 = vshll.u32 %v7337_v28, 16 }
 0x20f   : > { %2286 = vst [vmem:[#allocation2 + $0x48] sm:$0xf] %v2285_v49  ;;  %v1746_v52 = vadd.f32 %v1685_v9, %v1407_v56  ;;  %v2546_v54 = vunpack.c.l.b16 %v2378_v32  ;;  %v2017_v5 = vshrl.u32 %v1899_v37, 16  ;;  %v2020_v53 = vshll.u32 %v1899_v37, 16 }
 0x210   : > { %v1109_v27 = vpop.f32.mrf.mxu0  ;;  %v2015_v56 = vrot.slane %v2011_v63, 4  ;;  %v2642_v24 = vrot.slane %v2640_v12, 1  ;;  %v854_v32 = vsel %vm801_vm2, %v6990_v58, %v745_v43  ;;  %v2291_v43 = vld [vmem:[#allocation2 + $0x54] sm:$0xf] }
 0x211   : > { %v1199_v19 = vadd.f32 %v6978_v11, %v1109_v27  ;;  %v1320_v11 = vadd.f32 %v6946_v47, %v1156_v7  ;;  %v1782_v35 = vadd.f32 %v7038_v36, %v1746_v52  ;;  %v7345_v22 = vpack.c.b16 %v2546_v54, %v2546_v54  ;;  %v2288_v27 = vld [vmem:[#allocation2 + $0x50] sm:$0x1]  ;;  %v8707_v7 = vld [vmem:[#allocation15_spill] sm:$0xff] }
 0x212   : > { %v2019_v6 = vrot.slane %v2017_v5, 7  ;;  %v2638_v54 = vshrl.u32 %v7337_v28, 16 }
 0x213   : > { %3236 = vmatmul.bf16.gmra.mxu2 %v7324_v25  ;;  %v7340_v38 = vadd.f32 %v1362_v2, %v1199_v19  ;;  %v799_v2 = vrot.slane %v6997_v0, 1  ;;  %v1814_v60 = vmax.f32 %v1782_v35, 0.0  ;;  %v2645_v47 = vshll.u32 %v7345_v22, 16 }
 0x214   : > { %v2022_v39 = vor.u32 %v2020_v53, %v2019_v6  ;;  %v2024_v42 = vrot.slane %v2019_v6, 4  ;;  %v1686_v49 = vpop.f32.mrf.mxu3  ;;  %v1409_v19 = vadd.f32 %v8707_v7, %v1320_v11  ;;  %v2643_v35 = vor.u32 %v2642_v24, %v2638_v54 }
 0x215   : > { %v1900_v9 = vpack.c.bf16 %v1814_v60, %v1814_v60  ;;  %v1687_v37 = vadd.f32 %v1686_v49, %v1597_v17  ;;  %v1600_v52 = vpop.f32.mrf.mxu1  ;;  %v800_v5 = vsel %vm746_vm1, %v798_v50, %v799_v2  ;;  %v2647_v17 = vrot.slane %v2645_v47, 1 }
 0x216   : > { %v2023_v0 = vsel %vm7096_vm8, %v2015_v56, %v2022_v39  ;;  %v2289_v63 = vsel %vm7114_vm10, %v2024_v42, %v2288_v27  ;;  %1639 = vmatmul.bf16.gmra.mxu1 %v854_v32  ;;  %v1161_v60 = vadd.f32 %v6783_v44, %v6972_v61  ;;  %v8708_v39 = vld [vmem:[#allocation17_spill] sm:$0xff] }
 0x217   : > { %2287 = vst [vmem:[#allocation2 + $0x4c] sm:$0xf] %v2023_v0  ;;  %v2026_v12 = vshrl.u32 %v1900_v9, 16  ;;  %v1747_v11 = vadd.f32 %v1687_v37, %v1409_v19  ;;  %v2029_v53 = vshll.u32 %v1900_v9, 16  ;;  %v7365_v50 = vsel %vm493_vm0, %v2643_v35, %v2647_v17  ;;  %v8709_v37 = vld [vmem:[#allocation39_spill] sm:$0xff] }
 0x218   : > { %2290 = vst [vmem:[#allocation2 + $0x50] sm:$0x1] %v2289_v63  ;;  %v1412_v42 = vadd.f32 %v8708_v39, %v6967_v3  ;;  %v1325_v32 = vadd.f32 %v8709_v37, %v1161_v60  ;;  %v6005_v37 = vld [vmem:[%s8621_s3 + $0x60] sm:$0xff] }
 0x219   : > { %3152 = vmatmul.bf16.gmra.mxu0 %v7337_v28  ;;  %v2028_v6 = vrot.slane %v2026_v12, 7  ;;  %v1783_v58 = vadd.f32 %v7038_v36, %v1747_v11  ;;  %5427 = vmatmul.msk.bf16.gmra.mxu3 %vm801_vm2, %v800_v5  ;;  %v2295_v12 = vld [vmem:[#allocation2 + $0x5c] sm:$0x1] }
 0x21a   : > { %3627 = vmatpush.bf16.msra.mxu0 %v6005_v37 }
 0x21b   : > { %v2031_v56 = vor.u32 %v2029_v53, %v2028_v6  ;;  %v1815_v27 = vmax.f32 %v1783_v58, 0.0  ;;  %v2032_v11 = vrot.slane %v2028_v6, 4  ;;  %v8710_v58 = vld [vmem:[#allocation18_spill] sm:$0xff] }
 0x21c   : > { %v1689_v2 = vpop.f32.mrf.mxu3 }
 0x21d   : > { %v2292_v49 = vsel %vm7072_vm5, %v2031_v56, %v2291_v43  ;;  %v1901_v24 = vpack.c.bf16 %v1815_v27, %v1815_v27  ;;  %v1690_v47 = vadd.f32 %v1689_v2, %v1600_v52  ;;  %v1602_v7 = vpop.f32.mrf.mxu1  ;;  %v1414_v43 = vadd.f32 %v8710_v58, %v1325_v32  ;;  %v6013_v32 = vld [vmem:[%s8621_s3 + $0xa0] sm:$0xff] }
 0x21e   : > { %2293 = vst [vmem:[#allocation2 + $0x54] sm:$0xf] %v2292_v49  ;;  %v7371_v19 = vld [vmem:[#allocation2 + $0x48] sm:$0xff]  ;;  %v2815_v2 = vrot.slane %v7159_v59, 1  ;;  %3716 = vmatpush.bf16.msra.mxu2 %v6013_v32 }
 0x21f   : > { %v2034_v9 = vshrl.u32 %v1901_v24, 16  ;;  %v1748_v44 = vadd.f32 %v1690_v47, %v1412_v42  ;;  %v2381_v61 = vld [vmem:[#allocation2 + $0x50] sm:$0x1]  ;;  %v2652_v63 = vshll.u32 %v7371_v19, 16  ;;  %v2037_v54 = vshll.u32 %v1901_v24, 16  ;;  %v5975_v24 = vld [vmem:[#allocation2] sm:$0xff] }
 0x220   : > { %v2547_v0 = vunpack.c.l.b16 %v2381_v61 }
 0x221   : > { %v2036_v3 = vrot.slane %v2034_v9, 7  ;;  %v1784_v5 = vadd.f32 %v7038_v36, %v1748_v44  ;;  %v2654_v27 = vrot.slane %v2652_v63, 1  ;;  %v2650_v9 = vshrl.u32 %v7371_v19, 16 }
 0x222   : > { %v7377_v52 = vpack.c.b16 %v2547_v0, %v2547_v0  ;;  %v2814_v44 = vrot.slane %v7147_v18, 1 }
 0x223   : > { %3241 = vmatmul.bf16.gmra.mxu2 %v7365_v50  ;;  %v2039_v35 = vor.u32 %v2037_v54, %v2036_v3  ;;  %v2041_v17 = vrot.slane %v2036_v3, 4  ;;  %v1816_v53 = vmax.f32 %v1784_v5, 0.0  ;;  %v2655_v0 = vor.u32 %v2654_v27, %v2650_v9 }
 0x224   : > { %v1691_v56 = vpop.f32.mrf.mxu3  ;;  %v2657_v60 = vshll.u32 %v7377_v52, 16  ;;  %v7396_v63 = vsel %vm746_vm1, %v2814_v44, %v2815_v2  ;;  %v8713_v44 = vld [vmem:[#allocation43_spill] sm:$0xff] }
 0x225   : > { %v2040_v39 = vsel %vm7096_vm8, %v2032_v11, %v2039_v35  ;;  %v2296_v42 = vsel %vm7114_vm10, %v2041_v17, %v2295_v12  ;;  %v1902_v49 = vpack.c.bf16 %v1816_v53, %v1816_v53  ;;  %v1692_v6 = vadd.f32 %v1691_v56, %v1602_v7  ;;  %v1605_v47 = vpop.f32.mrf.mxu1  ;;  %v2298_v12 = vld [vmem:[#allocation2 + $0x60] sm:$0xf]  ;;  %v8711_v17 = vld [vmem:[#allocation20_spill] sm:$0xff]  ;;  %v8712_v56 = vld [vmem:[#allocation19_spill] sm:$0xff] }
 0x226   : > { %2294 = vst [vmem:[#allocation2 + $0x58] sm:$0xf] %v2040_v39  ;;  %v2659_v7 = vrot.slane %v2657_v60, 1  ;;  %3310 = vmatmul.bf16.vlgmr.msra.gmra.mxu1 %v7396_v63  ;;  %v1166_v53 = vadd.f32 %v8711_v17, %v7015_v29  ;;  %v1417_v27 = vadd.f32 %v8712_v56, %v7003_v10 }
 0x227   : > { %2297 = vst [vmem:[#allocation2 + $0x5c] sm:$0x1] %v2296_v42  ;;  %v2043_v61 = vshrl.u32 %v1902_v49, 16  ;;  %v1749_v59 = vadd.f32 %v1692_v6, %v1414_v43  ;;  %v2046_v54 = vshll.u32 %v1902_v49, 16 }
 0x228   : > { %v7403_v58 = vsel %vm493_vm0, %v2655_v0, %v2659_v7 }
 0x229   : > { %3157 = vmatmul.bf16.gmra.mxu0 %v7371_v19  ;;  %v2045_v3 = vrot.slane %v2043_v61, 7  ;;  %v1785_v5 = vadd.f32 %v7038_v36, %v1749_v59  ;;  %3543 = vmatmul.bf16.vlgmr.msra.gmra.mxu3 %v5975_v24  ;;  %v1330_v61 = vadd.f32 %v8713_v44, %v1166_v53  ;;  %v2818_v53 = vrot.slane %v7187_v30, 1 }
 0x22b   : > { %v2048_v11 = vor.u32 %v2046_v54, %v2045_v3  ;;  %v1817_v35 = vmax.f32 %v1785_v5, 0.0  ;;  %v2049_v7 = vrot.slane %v2045_v3, 4 }
 0x22c   : > { %v1694_v43 = vpop.f32.mrf.mxu3 }
 0x22d   : > { %v2299_v60 = vsel %vm7072_vm5, %v2048_v11, %v2298_v12  ;;  %v1903_v2 = vpack.c.bf16 %v1817_v35, %v1817_v35  ;;  %v1695_v39 = vadd.f32 %v1694_v43, %v1605_v47  ;;  %v7409_v42 = vld [vmem:[#allocation2 + $0x54] sm:$0xff]  ;;  %v1607_v49 = vpop.f32.mrf.mxu1  ;;  %v2302_v47 = vld [vmem:[#allocation2 + $0x68] sm:$0x1] }
 0x22e   : > { %2300 = vst [vmem:[#allocation2 + $0x60] sm:$0xf] %v2299_v60  ;;  %v2384_v6 = vld [vmem:[#allocation2 + $0x5c] sm:$0x1]  ;;  %v2664_v59 = vshll.u32 %v7409_v42, 16 }
 0x22f   : > { %v2051_v24 = vshrl.u32 %v1903_v2, 16  ;;  %v1750_v29 = vadd.f32 %v1695_v39, %v1417_v27  ;;  %v2548_v9 = vunpack.c.l.b16 %v2384_v6  ;;  %v2054_v37 = vshll.u32 %v1903_v2, 16  ;;  %v8714_v11 = vld [vmem:[#allocation21_spill] sm:$0xff] }
 0x230   : > { %v1419_v35 = vadd.f32 %v8714_v11, %v1330_v61  ;;  %v2666_v43 = vrot.slane %v2664_v59, 1  ;;  %v2662_v39 = vshrl.u32 %v7409_v42, 16  ;;  %v2817_v6 = vrot.slane %v7175_v62, 1 }
 0x231   : > { %v2053_v10 = vrot.slane %v2051_v24, 7  ;;  %v1786_v32 = vadd.f32 %v7038_v36, %v1750_v29  ;;  %v7415_v0 = vpack.c.b16 %v2548_v9, %v2548_v9 }
 0x232   : > { %v2667_v30 = vor.u32 %v2666_v43, %v2662_v39  ;;  %v7428_v44 = vsel %vm746_vm1, %v2817_v6, %v2818_v53 }
 0x233   : > { %3246 = vmatmul.bf16.gmra.mxu2 %v7403_v58  ;;  %v2056_v54 = vor.u32 %v2054_v37, %v2053_v10  ;;  %v2058_v5 = vrot.slane %v2053_v10, 4  ;;  %v1818_v12 = vmax.f32 %v1786_v32, 0.0  ;;  %v2669_v56 = vshll.u32 %v7415_v0, 16  ;;  %v2305_v37 = vld [vmem:[#allocation2 + $0x6c] sm:$0xf] }
 0x234   : > { %v1696_v17 = vpop.f32.mrf.mxu3 }
 0x235   : > { %v2057_v27 = vsel %vm7096_vm8, %v2049_v7, %v2056_v54  ;;  %v2303_v36 = vsel %vm7114_vm10, %v2058_v5, %v2302_v47  ;;  %v1904_v60 = vpack.c.bf16 %v1818_v12, %v1818_v12  ;;  %v1697_v3 = vadd.f32 %v1696_v17, %v1607_v49  ;;  %v1610_v2 = vpop.f32.mrf.mxu1  ;;  %v7433_v49 = vld [vmem:[%s8620_s2] ss:$0 sm:$0xff]  ;;  %v8715_v7 = vld [vmem:[#allocation47_spill] sm:$0xff] }
 0x236   : > { %2301 = vst [vmem:[#allocation2 + $0x64] sm:$0xf] %v2057_v27  ;;  %v2671_v9 = vrot.slane %v2669_v56, 1  ;;  %3315 = vmatmul.bf16.gmra.mxu1 %v7428_v44  ;;  %v8716_v54 = vld [vmem:[#allocation23_spill] sm:$0xff]  ;;  %v8719_v17 = vld [vmem:[#allocation22_spill] sm:$0xff] }
 0x237   : > { %2304 = vst [vmem:[#allocation2 + $0x68] sm:$0x1] %v2303_v36  ;;  %v2060_v24 = vshrl.u32 %v1904_v60, 16  ;;  %v1751_v29 = vadd.f32 %v1697_v3, %v1419_v35  ;;  %v2063_v59 = vshll.u32 %v1904_v60, 16  ;;  %v1171_v5 = vadd.f32 %v8716_v54, %v8715_v7  ;;  %v8718_v35 = vld [vmem:[#allocation45_spill] sm:$0xff] }
 0x238   : > { %v7441_v12 = vsel %vm493_vm0, %v2667_v30, %v2671_v9  ;;  %v1422_v43 = vadd.f32 %v8719_v17, %v8718_v35 }
 0x239   : > { %3162 = vmatmul.bf16.gmra.mxu0 %v7409_v42  ;;  %v2062_v61 = vrot.slane %v2060_v24, 7  ;;  %v1787_v10 = vadd.f32 %v7433_v49, %v1751_v29  ;;  %3548 = vmatmul.bf16.gmra.mxu3 %v7147_v18  ;;  %8717 = vst [vmem:[#allocation12_spill] sm:$0xff] %v7441_v12  ;;  %v8720_v24 = vld [vmem:[#allocation46_spill] sm:$0xff] }
 0x23a   : > { %v1335_v29 = vadd.f32 %v8720_v24, %v1171_v5  ;;  %v2821_v5 = vrot.slane %v7231_v46, 1  ;;  %v6004_v46 = vld [vmem:[%s8621_s3 + $0x58] sm:$0xff] }
 0x23b   : > { %v2065_v32 = vor.u32 %v2063_v59, %v2062_v61  ;;  %v1819_v47 = vmax.f32 %v1787_v10, 0.0  ;;  %3628 = vmatpush.bf16.msra.mxu0 %v6004_v46 }
 0x23c   : > { %v1699_v11 = vpop.f32.mrf.mxu3 }
 0x23d   : > { %v2306_v56 = vsel %vm7072_vm5, %v2065_v32, %v2305_v37  ;;  %v1905_v53 = vpack.c.bf16 %v1819_v47, %v1819_v47  ;;  %v1700_v27 = vadd.f32 %v1699_v11, %v1610_v2  ;;  %v7447_v36 = vld [vmem:[#allocation2 + $0x60] sm:$0xff]  ;;  %v1612_v18 = vpop.f32.mrf.mxu1  ;;  %v2309_v2 = vld [vmem:[#allocation2 + $0x74] sm:$0x1]  ;;  %v2066_v32 = vrot.slane %v2062_v61, 4 }
 0x23e   : > { %2307 = vst [vmem:[#allocation2 + $0x6c] sm:$0xf] %v2306_v56  ;;  %v2387_v60 = vld [vmem:[#allocation2 + $0x68] sm:$0x1]  ;;  %v2676_v30 = vshll.u32 %v7447_v36, 16  ;;  %v8721_v11 = vld [vmem:[#allocation24_spill] sm:$0xff] }
 0x23f   : > { %v2068_v3 = vshrl.u32 %v1905_v53, 16  ;;  %v1752_v39 = vadd.f32 %v1700_v27, %v1422_v43  ;;  %v2549_v6 = vunpack.c.l.b16 %v2387_v60  ;;  %v2071_v59 = vshll.u32 %v1905_v53, 16 }
 0x240   : > { %v1424_v35 = vadd.f32 %v8721_v11, %v1335_v29  ;;  %v2678_v43 = vrot.slane %v2676_v30, 1  ;;  %v6012_v30 = vld [vmem:[%s8621_s3 + $0x98] sm:$0xff] }
 0x241   : > { %v2070_v9 = vrot.slane %v2068_v3, 7  ;;  %v1788_v10 = vadd.f32 %v7433_v49, %v1752_v39  ;;  %v7453_v37 = vpack.c.b16 %v2549_v6, %v2549_v6  ;;  %v2674_v39 = vshrl.u32 %v7447_v36, 16  ;;  %3717 = vmatpush.bf16.msra.mxu2 %v6012_v30 }
 0x242   : > { %v2820_v6 = vrot.slane %v7223_v4, 1 }
 0x243   : > { %3251 = vmatmul.bf16.gmra.mxu2 %v7441_v12  ;;  %v2073_v47 = vor.u32 %v2071_v59, %v2070_v9  ;;  %v2075_v7 = vrot.slane %v2070_v9, 4  ;;  %v1820_v54 = vmax.f32 %v1788_v10, 0.0  ;;  %v2681_v56 = vshll.u32 %v7453_v37, 16  ;;  %v8728_v12 = vld [vmem:[#allocation27_spill] sm:$0xff] }
 0x244   : > { %v1701_v17 = vpop.f32.mrf.mxu3  ;;  %v2679_v9 = vor.u32 %v2678_v43, %v2674_v39 }
 0x245   : > { %v2074_v53 = vsel %vm7096_vm8, %v2066_v32, %v2073_v47  ;;  %v2310_v27 = vsel %vm7114_vm10, %v2075_v7, %v2309_v2  ;;  %v1906_v60 = vpack.c.bf16 %v1820_v54, %v1820_v54  ;;  %v1702_v61 = vadd.f32 %v1701_v17, %v1612_v18  ;;  %v1615_v3 = vpop.f32.mrf.mxu1  ;;  %v7477_v47 = vpop.f32.mrf.mxu0  ;;  %v2312_v7 = vld [vmem:[#allocation2 + $0x78] sm:$0xf]  ;;  %v8723_v17 = vld [vmem:[#allocation26_spill] sm:$0xff] }
 0x246   : > { %2308 = vst [vmem:[#allocation2 + $0x70] sm:$0xf] %v2074_v53  ;;  %v2683_v59 = vrot.slane %v2681_v56, 1  ;;  %v7472_v18 = vsel %vm746_vm1, %v2820_v6, %v2821_v5  ;;  %v8725_v53 = vld [vmem:[#allocation48_spill] sm:$0xff] }
 0x247   : > { %2311 = vst [vmem:[#allocation2 + $0x74] sm:$0x1] %v2310_v27  ;;  %v2077_v24 = vshrl.u32 %v1906_v60, 16  ;;  %v1753_v29 = vadd.f32 %v1702_v61, %v1424_v35  ;;  %v2080_v2 = vshll.u32 %v1906_v60, 16  ;;  %3320 = vmatmul.bf16.gmra.mxu1 %v7472_v18  ;;  %v8722_v35 = vld [vmem:[#allocation50_spill] sm:$0xff]  ;;  %v8726_v27 = vld [vmem:[#allocation25_spill] sm:$0xff] }
 0x248   : > { %v1176_v43 = vadd.f32 %v8723_v17, %v8722_v35  ;;  %v7482_v56 = vsel %vm493_vm0, %v2679_v9, %v2683_v59  ;;  %v1427_v60 = vadd.f32 %v8726_v27, %v8725_v53  ;;  %v8727_v59 = vld [vmem:[#allocation49_spill] sm:$0xff] }
 0x249   : > { %3167 = vmatmul.bf16.gmra.mxu0 %v7447_v36  ;;  %v2079_v10 = vrot.slane %v2077_v24, 7  ;;  %v1789_v32 = vadd.f32 %v7433_v49, %v1753_v29  ;;  %3553 = vmatmul.bf16.gmra.mxu3 %v7175_v62  ;;  %8724 = vst [vmem:[#allocation9_spill] sm:$0xff] %v7482_v56 }
 0x24b   : > { %v2082_v54 = vor.u32 %v2080_v2, %v2079_v10  ;;  %v1821_v11 = vmax.f32 %v1789_v32, 0.0  ;;  %v1340_v2 = vadd.f32 %v8727_v59, %v1176_v43  ;;  %v2823_v59 = vrot.slane %v7271_v41, 1 }
 0x24c   : > { %v1704_v5 = vpop.f32.mrf.mxu3 }
 0x24d   : > { %v2313_v62 = vsel %vm7072_vm5, %v2082_v54, %v2312_v7  ;;  %v1907_v61 = vpack.c.bf16 %v1821_v11, %v1821_v11  ;;  %v1705_v39 = vadd.f32 %v1704_v5, %v1615_v3  ;;  %v7488_v6 = vld [vmem:[#allocation2 + $0x6c] sm:$0xff]  ;;  %v1617_v24 = vpop.f32.mrf.mxu1  ;;  %v2316_v3 = vld [vmem:[#allocation2 + $0x80] sm:$0x1]  ;;  %v2083_v5 = vrot.slane %v2079_v10, 4 }
 0x24e   : > { %2314 = vst [vmem:[#allocation2 + $0x78] sm:$0xf] %v2313_v62  ;;  %v2390_v29 = vld [vmem:[#allocation2 + $0x74] sm:$0x1]  ;;  %v2688_v32 = vshll.u32 %v7488_v6, 16 }
 0x24f   : > { %v2085_v46 = vshrl.u32 %v1907_v61, 16  ;;  %v1754_v30 = vadd.f32 %v1705_v39, %v1427_v60  ;;  %v2550_v9 = vunpack.c.l.b16 %v2390_v29  ;;  %v2088_v17 = vshll.u32 %v1907_v61, 16 }
 0x250   : > { %v2690_v39 = vrot.slane %v2688_v32, 1  ;;  %v2824_v29 = vrot.slane %v7287_v48, 1 }
 0x251   : > { %v2087_v35 = vrot.slane %v2085_v46, 7  ;;  %v1790_v7 = vadd.f32 %v7433_v49, %v1754_v30  ;;  %v7494_v54 = vpack.c.b16 %v2550_v9, %v2550_v9 }
 0x253   : > { %3256 = vmatmul.bf16.gmra.mxu2 %v7482_v56  ;;  %v2090_v53 = vor.u32 %v2088_v17, %v2087_v35  ;;  %v2092_v27 = vrot.slane %v2087_v35, 4  ;;  %v1822_v62 = vmax.f32 %v1790_v7, 0.0  ;;  %v1429_v56 = vadd.f32 %v8728_v12, %v1340_v2 }
 0x254   : > { %v1706_v60 = vpop.f32.mrf.mxu3  ;;  %v2693_v43 = vshll.u32 %v7494_v54, 16  ;;  %v2686_v12 = vshrl.u32 %v7488_v6, 16  ;;  %v7507_v17 = vsel %vm746_vm1, %v2823_v59, %v2824_v29 }
 0x255   : > { %v2091_v61 = vsel %vm7096_vm8, %v2083_v5, %v2090_v53  ;;  %v2317_v46 = vsel %vm7114_vm10, %v2092_v27, %v2316_v3  ;;  %v1908_v30 = vpack.c.bf16 %v1822_v62, %v1822_v62  ;;  %v1707_v10 = vadd.f32 %v1706_v60, %v1617_v24  ;;  %v1620_v9 = vpop.f32.mrf.mxu1  ;;  %v7512_v24 = vpop.f32.mrf.mxu2  ;;  %v2319_v53 = vld [vmem:[#allocation2 + $0x84] sm:$0xf]  ;;  %v8729_v60 = vld [vmem:[#allocation29_spill] sm:$0xff] }
 0x256   : > { %v3133_v11 = vpop.f32.mrf.mxu0  ;;  %2315 = vst [vmem:[#allocation2 + $0x7c] sm:$0xf] %v2091_v61  ;;  %v2691_v48 = vor.u32 %v2690_v39, %v2686_v12  ;;  %v2695_v35 = vrot.slane %v2693_v43, 1  ;;  %v1181_v39 = vadd.f32 %v8729_v60, %v7149_v34  ;;  %v8731_v61 = vld [vmem:[#allocation28_spill] sm:$0xff] }
 0x257   : > { %2318 = vst [vmem:[#allocation2 + $0x80] sm:$0x1] %v2317_v46  ;;  %v2094_v2 = vshrl.u32 %v1908_v30, 16  ;;  %v1755_v32 = vadd.f32 %v1707_v10, %v1429_v56  ;;  %v2097_v3 = vshll.u32 %v1908_v30, 16  ;;  %3325 = vmatmul.bf16.gmra.mxu1 %v7507_v17  ;;  %v1432_v46 = vadd.f32 %v8731_v61, %v7142_v8 }
 0x258   : > { %v7519_v43 = vsel %vm493_vm0, %v2691_v48, %v2695_v35  ;;  %v1345_v35 = vadd.f32 %v7145_v31, %v1181_v39 }
 0x259   : > { %3172 = vmatmul.bf16.gmra.mxu0 %v7488_v6  ;;  %v2096_v7 = vrot.slane %v2094_v2, 7  ;;  %v1791_v5 = vadd.f32 %v7433_v49, %v1755_v32  ;;  %3558 = vmatmul.bf16.gmra.mxu3 %v7223_v4  ;;  %8730 = vst [vmem:[#allocation10_spill] sm:$0xff] %v7519_v43 }
 0x25b   : > { %v2099_v62 = vor.u32 %v2097_v3, %v2096_v7  ;;  %v1823_v56 = vmax.f32 %v1791_v5, 0.0 }
 0x25c   : > { %v1709_v29 = vpop.f32.mrf.mxu3 }
 0x25d   : > { %v2320_v4 = vsel %vm7072_vm5, %v2099_v62, %v2319_v53  ;;  %v1909_v30 = vpack.c.bf16 %v1823_v56, %v1823_v56  ;;  %v1710_v10 = vadd.f32 %v1709_v29, %v1620_v9  ;;  %v7525_v12 = vld [vmem:[#allocation2 + $0x78] sm:$0xff]  ;;  %v1622_v59 = vpop.f32.mrf.mxu1  ;;  %v2100_v9 = vrot.slane %v2096_v7, 4  ;;  %v2323_v56 = vld [vmem:[#allocation2 + $0x8c] sm:$0x1] }
 0x25e   : > { %v7514_v27 = vpop.f32.mrf.mxu0  ;;  %2321 = vst [vmem:[#allocation2 + $0x84] sm:$0xf] %v2320_v4  ;;  %v2393_v2 = vld [vmem:[#allocation2 + $0x80] sm:$0x1]  ;;  %v2700_v3 = vshll.u32 %v7525_v12, 16 }
 0x25f   : > { %v2102_v32 = vshrl.u32 %v1909_v30, 16  ;;  %v1756_v34 = vadd.f32 %v1710_v10, %v1432_v46  ;;  %v2551_v48 = vunpack.c.l.b16 %v2393_v2  ;;  %v2105_v5 = vshll.u32 %v1909_v30, 16  ;;  %v8732_v10 = vld [vmem:[#allocation30_spill] sm:$0xff] }
 0x260   : > { %v1434_v31 = vadd.f32 %v8732_v10, %v1345_v35  ;;  %v2702_v2 = vrot.slane %v2700_v3, 1  ;;  %v2698_v35 = vshrl.u32 %v7525_v12, 16  ;;  %v2826_v3 = vrot.slane %v7337_v28, 1  ;;  %v2326_v10 = vld [vmem:[#allocation2 + $0x90] sm:$0xf] }
 0x261   : > { %v2104_v8 = vrot.slane %v2102_v32, 7  ;;  %v1792_v53 = vadd.f32 %v7433_v49, %v1756_v34  ;;  %v7531_v62 = vpack.c.b16 %v2551_v48, %v2551_v48  ;;  %v2827_v32 = vrot.slane %v7345_v22, 1  ;;  %v6003_v22 = vld [vmem:[%s8621_s3 + $0x50] sm:$0xff] }
 0x262   : > { %3629 = vmatpush.bf16.msra.mxu0 %v6003_v22 }
 0x263   : > { %3261 = vmatmul.bf16.gmra.mxu2 %v7519_v43  ;;  %v2107_v61 = vor.u32 %v2105_v5, %v2104_v8  ;;  %v2109_v4 = vrot.slane %v2104_v8, 4  ;;  %v1824_v46 = vmax.f32 %v1792_v53, 0.0  ;;  %v2705_v30 = vshll.u32 %v7531_v62, 16 }
 0x264   : > { %v1711_v39 = vpop.f32.mrf.mxu3 }
 0x265   : > { %v2108_v7 = vsel %vm7096_vm8, %v2100_v9, %v2107_v61  ;;  %v2324_v34 = vsel %vm7114_vm10, %v2109_v4, %v2323_v56  ;;  %v1910_v48 = vpack.c.bf16 %v1824_v46, %v1824_v46  ;;  %v1625_v8 = vpop.f32.mrf.mxu1  ;;  %v6011_v9 = vld [vmem:[%s8621_s3 + $0x90] sm:$0xff]  ;;  %v2703_v56 = vor.u32 %v2702_v2, %v2698_v35 }
 0x266   : > { %v3222_v60 = vpop.f32.mrf.mxu2  ;;  %v7533_v29 = vpop.f32.mrf.mxu0  ;;  %2322 = vst [vmem:[#allocation2 + $0x88] sm:$0xf] %v2108_v7  ;;  %3718 = vmatpush.bf16.msra.mxu2 %v6011_v9 }
 0x267   : > { %v7535_v43 = vadd.f32 %v3222_v60, %v3133_v11  ;;  %v1712_v11 = vadd.f32 %v1711_v39, %v1622_v59  ;;  %2325 = vst [vmem:[#allocation2 + $0x8c] sm:$0x1] %v2324_v34  ;;  %v2111_v5 = vshrl.u32 %v1910_v48, 16  ;;  %v2707_v60 = vrot.slane %v2705_v30, 1 }
 0x268   : > { %v7554_v59 = vsel %vm746_vm1, %v2826_v3, %v2827_v32  ;;  %v2114_v4 = vshll.u32 %v1910_v48, 16  ;;  %v8733_v32 = vld [vmem:[#allocation32_spill] sm:$0xff] }
 0x269   : > { %3177 = vmatmul.bf16.gmra.mxu0 %v7525_v12  ;;  %v1757_v53 = vadd.f32 %v1712_v11, %v1434_v31  ;;  %v2113_v61 = vrot.slane %v2111_v5, 7  ;;  %3330 = vmatmul.bf16.gmra.mxu1 %v7554_v59  ;;  %v1186_v34 = vadd.f32 %v8733_v32, %v7189_v40  ;;  %v7567_v48 = vsel %vm493_vm0, %v2703_v56, %v2707_v60 }
 0x26a   : > { %3563 = vmatmul.bf16.gmra.mxu3 %v7271_v41  ;;  %8734 = vst [vmem:[#allocation11_spill] sm:$0xff] %v7567_v48  ;;  %v8735_v41 = vld [vmem:[#allocation31_spill] sm:$0xff] }
 0x26b   : > { %v1793_v46 = vadd.f32 %v7433_v49, %v1757_v53  ;;  %v2116_v7 = vor.u32 %v2114_v4, %v2113_v61  ;;  %v1437_v35 = vadd.f32 %v8735_v41, %v7181_v33  ;;  %v1350_v60 = vadd.f32 %v7185_v13, %v1186_v34  ;;  %v8736_v13 = vld [vmem:[#allocation33_spill] sm:$0xff] }
 0x26c   : > { %v1714_v11 = vpop.f32.mrf.mxu3 }
 0x26d   : > { %v1825_v30 = vmax.f32 %v1793_v46, 0.0  ;;  %v2327_v3 = vsel %vm7072_vm5, %v2116_v7, %v2326_v10  ;;  %v1715_v53 = vadd.f32 %v1714_v11, %v1625_v8  ;;  %v7573_v22 = vld [vmem:[#allocation2 + $0x84] sm:$0xff]  ;;  %v2117_v8 = vrot.slane %v2113_v61, 4 }
 0x26e   : > { %v3224_v31 = vpop.f32.mrf.mxu2  ;;  %v7559_v39 = vpop.f32.mrf.mxu0  ;;  %2328 = vst [vmem:[#allocation2 + $0x90] sm:$0xf] %v2327_v3  ;;  %v2396_v9 = vld [vmem:[#allocation2 + $0x8c] sm:$0x1]  ;;  %v2712_v46 = vshll.u32 %v7573_v22, 16  ;;  %v1439_v34 = vadd.f32 %v8736_v13, %v1350_v60  ;;  %v2710_v60 = vshrl.u32 %v7573_v22, 16 }
 0x26f   : > { %v7562_v2 = vadd.f32 %v3224_v31, %v7514_v27  ;;  %v1911_v5 = vpack.c.bf16 %v1825_v30, %v1825_v30  ;;  %v1627_v27 = vpop.f32.mrf.mxu1  ;;  %v1758_v40 = vadd.f32 %v1715_v53, %v1437_v35  ;;  %v2552_v56 = vunpack.c.l.b16 %v2396_v9  ;;  %v2330_v30 = vld [vmem:[#allocation2 + $0x98] sm:$0x1] }
 0x271   : > { %v2119_v4 = vshrl.u32 %v1911_v5, 16  ;;  %v2122_v31 = vshll.u32 %v1911_v5, 16  ;;  %v1794_v10 = vadd.f32 %v7433_v49, %v1758_v40  ;;  %v7579_v7 = vpack.c.b16 %v2552_v56, %v2552_v56 }
 0x272   : > { %v2830_v40 = vrot.slane %v7377_v52, 1 }
 0x273   : > { %3266 = vmatmul.bf16.gmra.mxu2 %v7567_v48  ;;  %v2121_v33 = vrot.slane %v2119_v4, 7  ;;  %v1826_v53 = vmax.f32 %v1794_v10, 0.0  ;;  %v2714_v4 = vrot.slane %v2712_v46, 1  ;;  %v2717_v5 = vshll.u32 %v7579_v7, 16 }
 0x274   : > { %v1716_v9 = vpop.f32.mrf.mxu3  ;;  %v2829_v46 = vrot.slane %v7371_v19, 1 }
 0x275   : > { %v2124_v41 = vor.u32 %v2122_v31, %v2121_v33  ;;  %v2126_v3 = vrot.slane %v2121_v33, 4  ;;  %v1912_v31 = vpack.c.bf16 %v1826_v53, %v1826_v53  ;;  %v2715_v52 = vor.u32 %v2714_v4, %v2710_v60 }
 0x276   : > { %v3227_v32 = vpop.f32.mrf.mxu2  ;;  %v7581_v11 = vpop.f32.mrf.mxu0  ;;  %v2719_v13 = vrot.slane %v2717_v5, 1  ;;  %v8737_v5 = vld [vmem:[#allocation35_spill] sm:$0xff] }
 0x277   : > { %v7584_v35 = vadd.f32 %v3227_v32, %v7533_v29  ;;  %v2125_v61 = vsel %vm7096_vm8, %v2117_v8, %v2124_v41  ;;  %v2331_v56 = vsel %vm7114_vm10, %v2126_v3, %v2330_v30  ;;  %v1717_v29 = vadd.f32 %v1716_v9, %v1627_v27  ;;  %v1630_v33 = vpop.f32.mrf.mxu1  ;;  %v2333_v27 = vld [vmem:[#allocation2 + $0x9c] sm:$0xf] }
 0x278   : > { %2329 = vst [vmem:[#allocation2 + $0x94] sm:$0xf] %v2125_v61  ;;  %v2128_v10 = vshrl.u32 %v1912_v31, 16  ;;  %v7597_v8 = vsel %vm746_vm1, %v2829_v46, %v2830_v40  ;;  %v2131_v30 = vshll.u32 %v1912_v31, 16  ;;  %v1191_v40 = vadd.f32 %v8737_v5, %v7235_v16 }
 0x279   : > { %3182 = vmatmul.bf16.gmra.mxu0 %v7573_v22  ;;  %2332 = vst [vmem:[#allocation2 + $0x98] sm:$0x1] %v2331_v56  ;;  %v1759_v32 = vadd.f32 %v1717_v29, %v1439_v34  ;;  %3335 = vmatmul.bf16.gmra.mxu1 %v7597_v8  ;;  %v7610_v56 = vsel %vm493_vm0, %v2715_v52, %v2719_v13  ;;  %v8739_v29 = vld [vmem:[#allocation34_spill] sm:$0xff] }
 0x27a   : > { %v2130_v41 = vrot.slane %v2128_v10, 7  ;;  %3568 = vmatmul.bf16.gmra.mxu3 %v7337_v28  ;;  %8738 = vst [vmem:[#allocation16_spill] sm:$0xff] %v7610_v56  ;;  %v1442_v60 = vadd.f32 %v8739_v29, %v7226_v57  ;;  %v1355_v13 = vadd.f32 %v7233_v1, %v1191_v40  ;;  %v8740_v1 = vld [vmem:[#allocation36_spill] sm:$0xff] }
 0x27b   : > { %v1795_v3 = vadd.f32 %v7433_v49, %v1759_v32 }
 0x27c   : > { %v2133_v61 = vor.u32 %v2131_v30, %v2130_v41  ;;  %v1719_v31 = vpop.f32.mrf.mxu3  ;;  %v1444_v40 = vadd.f32 %v8740_v1, %v1355_v13 }
 0x27d   : > { %v1827_v4 = vmax.f32 %v1795_v3, 0.0  ;;  %v1720_v10 = vadd.f32 %v1719_v31, %v1630_v33  ;;  %v2134_v33 = vrot.slane %v2130_v41, 4 }
 0x27e   : > { %v3229_v53 = vpop.f32.mrf.mxu2  ;;  %v7602_v9 = vpop.f32.mrf.mxu0  ;;  %v2334_v28 = vsel %vm7072_vm5, %v2133_v61, %v2333_v27 }
 0x27f   : > { %v7605_v34 = vadd.f32 %v3229_v53, %v7559_v39  ;;  %v1913_v46 = vpack.c.bf16 %v1827_v4, %v1827_v4  ;;  %v7616_v32 = vld [vmem:[#allocation2 + $0x90] sm:$0xff]  ;;  %2335 = vst [vmem:[#allocation2 + $0x9c] sm:$0xf] %v2334_v28  ;;  %v1632_v39 = vpop.f32.mrf.mxu1  ;;  %v1760_v16 = vadd.f32 %v1720_v10, %v1442_v60  ;;  %v2337_v4 = vld [vmem:[#allocation2 + $0xa4] sm:$0x1] }
 0x280   : > { %v2399_v30 = vld [vmem:[#allocation2 + $0x98] sm:$0x1]  ;;  %v2724_v53 = vshll.u32 %v7616_v32, 16  ;;  %v2722_v13 = vshrl.u32 %v7616_v32, 16 }
 0x281   : > { %v2136_v3 = vshrl.u32 %v1913_v46, 16  ;;  %v2553_v52 = vunpack.c.l.b16 %v2399_v30  ;;  %v2139_v5 = vshll.u32 %v1913_v46, 16  ;;  %v1796_v27 = vadd.f32 %v7433_v49, %v1760_v16 }
 0x282   : > { %v2833_v16 = vrot.slane %v7415_v0, 1  ;;  %v6002_v0 = vld [vmem:[%s8621_s3 + $0x48] sm:$0xff] }
 0x283   : > { %3271 = vmatmul.bf16.gmra.mxu2 %v7610_v56  ;;  %v2138_v57 = vrot.slane %v2136_v3, 7  ;;  %v7622_v61 = vpack.c.b16 %v2553_v52, %v2553_v52  ;;  %v1828_v10 = vmax.f32 %v1796_v27, 0.0  ;;  %v2726_v3 = vrot.slane %v2724_v53, 1  ;;  %3630 = vmatpush.bf16.msra.mxu0 %v6002_v0 }
 0x284   : > { %v1721_v30 = vpop.f32.mrf.mxu3  ;;  %v2832_v53 = vrot.slane %v7409_v42, 1 }
 0x285   : > { %v2141_v28 = vor.u32 %v2139_v5, %v2138_v57  ;;  %v2143_v48 = vrot.slane %v2138_v57, 4  ;;  %v2729_v46 = vshll.u32 %v7622_v61, 16  ;;  %v1914_v5 = vpack.c.bf16 %v1828_v10, %v1828_v10 }
 0x286   : > { %v3232_v31 = vpop.f32.mrf.mxu2  ;;  %v7624_v29 = vpop.f32.mrf.mxu0 }
 0x287   : > { %v7627_v60 = vadd.f32 %v3232_v31, %v7581_v11  ;;  %v2142_v41 = vsel %vm7096_vm8, %v2134_v33, %v2141_v28  ;;  %v2338_v52 = vsel %vm7114_vm10, %v2143_v48, %v2337_v4  ;;  %v1722_v11 = vadd.f32 %v1721_v30, %v1632_v39  ;;  %v1635_v57 = vpop.f32.mrf.mxu1  ;;  %v6010_v48 = vld [vmem:[%s8621_s3 + $0x88] sm:$0xff] }
 0x288   : > { %2336 = vst [vmem:[#allocation2 + $0xa0] sm:$0xf] %v2142_v41  ;;  %v2145_v27 = vshrl.u32 %v1914_v5, 16  ;;  %v2727_v33 = vor.u32 %v2726_v3, %v2722_v13  ;;  %v2731_v4 = vrot.slane %v2729_v46, 1  ;;  %v7646_v39 = vsel %vm746_vm1, %v2832_v53, %v2833_v16  ;;  %3719 = vmatpush.bf16.msra.mxu2 %v6010_v48  ;;  %v8741_v16 = vld [vmem:[#allocation38_spill] sm:$0xff] }
 0x289   : > { %3187 = vmatmul.bf16.gmra.mxu0 %v7616_v32  ;;  %2339 = vst [vmem:[#allocation2 + $0xa4] sm:$0x1] %v2338_v52  ;;  %v1761_v31 = vadd.f32 %v1722_v11, %v1444_v40  ;;  %v2148_v10 = vshll.u32 %v1914_v5, 16  ;;  %3340 = vmatmul.bf16.gmra.mxu1 %v7646_v39  ;;  %v2340_v40 = vld [vmem:[#allocation2 + $0xa8] sm:$0xf]  ;;  %v1196_v5 = vadd.f32 %v8741_v16, %v7289_v26 }
 0x28a   : > { %v2147_v28 = vrot.slane %v2145_v27, 7  ;;  %3573 = vmatmul.bf16.gmra.mxu3 %v7371_v19  ;;  %v7659_v11 = vsel %vm493_vm0, %v2727_v33, %v2731_v4  ;;  %v8743_v19 = vld [vmem:[#allocation37_spill] sm:$0xff] }
 0x28b   : > { %v1797_v1 = vadd.f32 %v7433_v49, %v1761_v31  ;;  %8742 = vst [vmem:[#allocation13_spill] sm:$0xff] %v7659_v11  ;;  %v1447_v53 = vadd.f32 %v8743_v19, %v7274_v51  ;;  %v1360_v4 = vadd.f32 %v7285_v14, %v1196_v5  ;;  %v8744_v14 = vld [vmem:[#allocation40_spill] sm:$0xff] }
 0x28c   : > { %v2150_v52 = vor.u32 %v2148_v10, %v2147_v28  ;;  %v1724_v13 = vpop.f32.mrf.mxu3 }
 0x28d   : > { %v1829_v46 = vmax.f32 %v1797_v1, 0.0  ;;  %v1725_v0 = vadd.f32 %v1724_v13, %v1635_v57  ;;  %v2151_v57 = vrot.slane %v2147_v28, 4  ;;  %v1449_v5 = vadd.f32 %v8744_v14, %v1360_v4 }
 0x28e   : > { %v3234_v30 = vpop.f32.mrf.mxu2  ;;  %v7651_v41 = vpop.f32.mrf.mxu0  ;;  %v2341_v27 = vsel %vm7072_vm5, %v2150_v52, %v2340_v40 }
 0x28f   : > { %v7654_v3 = vadd.f32 %v3234_v30, %v7602_v9  ;;  %v1915_v31 = vpack.c.bf16 %v1829_v46, %v1829_v46  ;;  %v7665_v48 = vld [vmem:[#allocation2 + $0x9c] sm:$0xff]  ;;  %2342 = vst [vmem:[#allocation2 + $0xa8] sm:$0xf] %v2341_v27  ;;  %v1637_v9 = vpop.f32.mrf.mxu1  ;;  %v1762_v26 = vadd.f32 %v1725_v0, %v1447_v53  ;;  %v2344_v46 = vld [vmem:[#allocation2 + $0xb0] sm:$0x1] }
 0x290   : > { %v2402_v10 = vld [vmem:[#allocation2 + $0xa4] sm:$0x1]  ;;  %v2736_v30 = vshll.u32 %v7665_v48, 16  ;;  %v2734_v4 = vshrl.u32 %v7665_v48, 16 }
 0x291   : > { %v2153_v1 = vshrl.u32 %v1915_v31, 16  ;;  %v2554_v33 = vunpack.c.l.b16 %v2402_v10  ;;  %v2156_v16 = vshll.u32 %v1915_v31, 16  ;;  %v1798_v40 = vadd.f32 %v7433_v49, %v1762_v26 }
 0x292   : > { %v2836_v26 = vrot.slane %v7453_v37, 1 }
 0x293   : > { %3276 = vmatmul.bf16.gmra.mxu2 %v7659_v11  ;;  %v2155_v51 = vrot.slane %v2153_v1, 7  ;;  %v7671_v52 = vpack.c.b16 %v2554_v33, %v2554_v33  ;;  %v1830_v0 = vmax.f32 %v1798_v40, 0.0  ;;  %v2738_v1 = vrot.slane %v2736_v30, 1 }
 0x294   : > { %v1726_v10 = vpop.f32.mrf.mxu3  ;;  %v2835_v30 = vrot.slane %v7447_v36, 1 }
 0x295   : > { %v2158_v27 = vor.u32 %v2156_v16, %v2155_v51  ;;  %v2160_v56 = vrot.slane %v2155_v51, 4  ;;  %v2741_v31 = vshll.u32 %v7671_v52, 16  ;;  %v1916_v16 = vpack.c.bf16 %v1830_v0, %v1830_v0 }
 0x296   : > { %v3237_v13 = vpop.f32.mrf.mxu2  ;;  %v7673_v19 = vpop.f32.mrf.mxu0  ;;  %v2739_v37 = vor.u32 %v2738_v1, %v2734_v4 }
 0x297   : > { %v7676_v53 = vadd.f32 %v3237_v13, %v7624_v29  ;;  %v2159_v28 = vsel %vm7096_vm8, %v2151_v57, %v2158_v27  ;;  %v2345_v33 = vsel %vm7114_vm10, %v2160_v56, %v2344_v46  ;;  %v1727_v29 = vadd.f32 %v1726_v10, %v1637_v9  ;;  %v1640_v51 = vpop.f32.mrf.mxu1  ;;  %v2347_v9 = vld [vmem:[#allocation2 + $0xb4] sm:$0xf] }
 0x298   : > { %2343 = vst [vmem:[#allocation2 + $0xac] sm:$0xf] %v2159_v28  ;;  %v2162_v40 = vshrl.u32 %v1916_v16, 16  ;;  %v2743_v14 = vrot.slane %v2741_v31, 1  ;;  %v7689_v57 = vsel %vm746_vm1, %v2835_v30, %v2836_v26  ;;  %v2165_v56 = vshll.u32 %v1916_v16, 16  ;;  %v8745_v31 = vld [vmem:[#allocation42_spill] sm:$0xff] }
 0x299   : > { %3192 = vmatmul.bf16.gmra.mxu0 %v7665_v48  ;;  %2346 = vst [vmem:[#allocation2 + $0xb0] sm:$0x1] %v2345_v33  ;;  %v1763_v13 = vadd.f32 %v1727_v29, %v1449_v5  ;;  %3345 = vmatmul.bf16.gmra.mxu1 %v7689_v57  ;;  %v1201_v26 = vadd.f32 %v8745_v31, %v7477_v47  ;;  %v8747_v29 = vld [vmem:[#allocation41_spill] sm:$0xff] }
 0x29a   : > { %v2164_v27 = vrot.slane %v2162_v40, 7  ;;  %3578 = vmatmul.bf16.gmra.mxu3 %v7409_v42  ;;  %v7702_v33 = vsel %vm493_vm0, %v2739_v37, %v2743_v14  ;;  %v1452_v4 = vadd.f32 %v8747_v29, %v7340_v38  ;;  %v6001_v14 = vld [vmem:[%s8621_s3 + $0x40] sm:$0xff]  ;;  %v2351_v29 = vld [vmem:[#allocation2 + $0xbc] sm:$0x1] }
 0x29b   : > { %v1799_v46 = vadd.f32 %v7433_v49, %v1763_v13  ;;  %8746 = vst [vmem:[#allocation14_spill] sm:$0xff] %v7702_v33  ;;  %v6009_v38 = vld [vmem:[%s8621_s3 + $0x80] sm:$0xff]  ;;  %3631 = vmatpush.bf16.msra.mxu0 %v6001_v14 }
 0x29c   : > { %v2167_v28 = vor.u32 %v2165_v56, %v2164_v27  ;;  %v1729_v16 = vpop.f32.mrf.mxu3  ;;  %3720 = vmatpush.bf16.msra.mxu2 %v6009_v38 }
 0x29d   : > { %v1831_v1 = vmax.f32 %v1799_v46, 0.0  ;;  %v1730_v40 = vadd.f32 %v1729_v16, %v1640_v51  ;;  %v1365_v51 = vadd.f32 %v7512_v24, %v1201_v26  ;;  %v2168_v16 = vrot.slane %v2164_v27, 4  ;;  %v8748_v26 = vld [vmem:[#allocation44_spill] sm:$0xff] }
 0x29e   : > { %v3239_v0 = vpop.f32.mrf.mxu2  ;;  %v7694_v10 = vpop.f32.mrf.mxu0  ;;  %v2348_v42 = vsel %vm7072_vm5, %v2167_v28, %v2347_v9 }
 0x29f   : > { %v7697_v5 = vadd.f32 %v3239_v0, %v7651_v41  ;;  %v1917_v30 = vpack.c.bf16 %v1831_v1, %v1831_v1  ;;  %v7708_v13 = vld [vmem:[#allocation2 + $0xa8] sm:$0xff]  ;;  %2349 = vst [vmem:[#allocation2 + $0xb4] sm:$0xf] %v2348_v42  ;;  %v1642_v41 = vpop.f32.mrf.mxu1  ;;  %v1764_v47 = vadd.f32 %v1730_v40, %v1452_v4  ;;  %v1454_v11 = vadd.f32 %v8748_v26, %v1365_v51 }
 0x2a0   : > { %v2405_v56 = vld [vmem:[#allocation2 + $0xb0] sm:$0x1]  ;;  %v2748_v9 = vshll.u32 %v7708_v13, 16  ;;  %v2746_v51 = vshrl.u32 %v7708_v13, 16 }
 0x2a1   : > { %v2170_v46 = vshrl.u32 %v1917_v30, 16  ;;  %v2555_v37 = vunpack.c.l.b16 %v2405_v56  ;;  %v2173_v28 = vshll.u32 %v1917_v30, 16  ;;  %v1800_v1 = vadd.f32 %v7433_v49, %v1764_v47 }
 0x2a2   : > { %v2750_v30 = vrot.slane %v2748_v9, 1  ;;  %v2838_v9 = vrot.slane %v7488_v6, 1 }
 0x2a3   : > { %3281 = vmatmul.bf16.gmra.mxu2 %v7702_v33  ;;  %v2172_v0 = vrot.slane %v2170_v46, 7  ;;  %v7720_v31 = vpack.c.b16 %v2555_v37, %v2555_v37  ;;  %v1832_v24 = vmax.f32 %v1800_v1, 0.0  ;;  %v2839_v37 = vrot.slane %v7494_v54, 1 }
 0x2a4   : > { %v1731_v46 = vpop.f32.mrf.mxu3 }
 0x2a5   : > { %v2175_v40 = vor.u32 %v2173_v28, %v2172_v0  ;;  %v2177_v56 = vrot.slane %v2172_v0, 4  ;;  %v2753_v47 = vshll.u32 %v7720_v31, 16  ;;  %v1918_v38 = vpack.c.bf16 %v1832_v24, %v1832_v24  ;;  %v2354_v24 = vld [vmem:[#allocation2 + $0xc0] sm:$0xf] }
 0x2a6   : > { %v3242_v4 = vpop.f32.mrf.mxu2  ;;  %v3158_v42 = vpop.f32.mrf.mxu0 }
 0x2a7   : > { %v7723_v33 = vadd.f32 %v3242_v4, %v7673_v19  ;;  %v2176_v27 = vsel %vm7096_vm8, %v2168_v16, %v2175_v40  ;;  %v2352_v14 = vsel %vm7114_vm10, %v2177_v56, %v2351_v29  ;;  %v1732_v19 = vadd.f32 %v1731_v46, %v1642_v41  ;;  %v3311_v0 = vpop.f32.mrf.mxu1 }
 0x2a8   : > { %2350 = vst [vmem:[#allocation2 + $0xb8] sm:$0xf] %v2176_v27  ;;  %v2179_v28 = vshrl.u32 %v1918_v38, 16  ;;  %v3312_v54 = vadd.f32 %v3311_v0, %v7535_v43  ;;  %v2751_v4 = vor.u32 %v2750_v30, %v2746_v51  ;;  %v2755_v16 = vrot.slane %v2753_v47, 1 }
 0x2a9   : > { %3197 = vmatmul.bf16.gmra.mxu0 %v7708_v13  ;;  %2353 = vst [vmem:[#allocation2 + $0xbc] sm:$0x1] %v2352_v14  ;;  %v1765_v1 = vadd.f32 %v1732_v19, %v1454_v11  ;;  %v7737_v40 = vsel %vm746_vm1, %v2838_v9, %v2839_v37  ;;  %v2182_v56 = vshll.u32 %v1918_v38, 16 }
 0x2aa   : > { %v2181_v29 = vrot.slane %v2179_v28, 7  ;;  %3350 = vmatmul.bf16.gmra.mxu1 %v7737_v40  ;;  %3583 = vmatmul.bf16.gmra.mxu3 %v7447_v36  ;;  %v7746_v30 = vsel %vm493_vm0, %v2751_v4, %v2755_v16  ;;  %v2358_v4 = vld [vmem:[#allocation2 + $0xc8] sm:$0x1] }
 0x2ab   : > { %v1801_v41 = vadd.f32 %v7433_v49, %v1765_v1  ;;  %8749 = vst [vmem:[#allocation15_spill] sm:$0xff] %v7746_v30 }
 0x2ac   : > { %v2184_v27 = vor.u32 %v2182_v56, %v2181_v29  ;;  %v3544_v47 = vpop.f32.mrf.mxu3  ;;  %v2185_v56 = vrot.slane %v2181_v29, 4 }
 0x2ad   : > { %v1833_v43 = vmax.f32 %v1801_v41, 0.0  ;;  %v7750_v14 = vadd.f32 %v3544_v47, %v3312_v54 }
 0x2ae   : > { %v3244_v26 = vpop.f32.mrf.mxu2  ;;  %v3160_v46 = vpop.f32.mrf.mxu0  ;;  %v2355_v37 = vsel %vm7072_vm5, %v2184_v27, %v2354_v24  ;;  %v6056_v27 = vld [vmem:[%s8621_s3 + $0x1f8] sm:$0xff] }
 0x2af   : > { %v7743_v11 = vadd.f32 %v3244_v26, %v7694_v10  ;;  %v1919_v49 = vpack.c.bf16 %v1833_v43, %v1833_v43  ;;  %v7752_v38 = vld [vmem:[#allocation2 + $0xb4] sm:$0xff]  ;;  %2356 = vst [vmem:[#allocation2 + $0xc0] sm:$0xf] %v2355_v37  ;;  %v3313_v36 = vpop.f32.mrf.mxu1  ;;  %v2842_v37 = vrot.slane %v7531_v62, 1  ;;  %4084 = vmatpush.bf16.msrb.mxu3 %v6056_v27  ;;  %v2363_v27 = vld [vmem:[#allocation2 + $0x8] sm:$0x1] }
 0x2b0   : > { %v2408_v19 = vld [vmem:[#allocation2 + $0xbc] sm:$0x1]  ;;  %v3314_v10 = vadd.f32 %v3313_v36, %v7562_v2  ;;  %v2760_v9 = vshll.u32 %v7752_v38, 16 }
 0x2b1   : > { %v2187_v0 = vshrl.u32 %v1919_v49, 16  ;;  %v2556_v51 = vunpack.c.l.b16 %v2408_v19  ;;  %v2190_v1 = vshll.u32 %v1919_v49, 16  ;;  %v2758_v19 = vshrl.u32 %v7752_v38, 16 }
 0x2b2   : > { %v2762_v43 = vrot.slane %v2760_v9, 1 }
 0x2b3   : > { %3286 = vmatmul.bf16.gmra.mxu2 %v7746_v30  ;;  %v2189_v28 = vrot.slane %v2187_v0, 7  ;;  %v7757_v21 = vpack.c.b16 %v2556_v51, %v2556_v51  ;;  %v2841_v0 = vrot.slane %v7525_v12, 1 }
 0x2b4   : > { %v3546_v2 = vpop.f32.mrf.mxu3  ;;  %v2763_v51 = vor.u32 %v2762_v43, %v2758_v19  ;;  %v6068_v43 = vld [vmem:[%s8623_s5 + $0x18] sm:$0xff] }
 0x2b5   : > { %v2192_v41 = vor.u32 %v2190_v1, %v2189_v28  ;;  %v2194_v24 = vrot.slane %v2189_v28, 4  ;;  %v2765_v47 = vshll.u32 %v7757_v21, 16  ;;  %v7777_v9 = vsel %vm746_vm1, %v2841_v0, %v2842_v37  ;;  %v6048_v1 = vld [vmem:[%s8621_s3 + $0x1b8] sm:$0xff]  ;;  %4885 = vmatpush.bf16.msrb.mxu2 %v6068_v43 }
 0x2b6   : > { %v3247_v54 = vpop.f32.mrf.mxu2  ;;  %v3163_v16 = vpop.f32.mrf.mxu0  ;;  %3995 = vmatpush.bf16.msrb.mxu1 %v6048_v1 }
 0x2b7   : > { %v7759_v26 = vadd.f32 %v3247_v54, %v3158_v42  ;;  %v2193_v49 = vsel %vm7096_vm8, %v2185_v56, %v2192_v41  ;;  %v2359_v29 = vsel %vm7114_vm10, %v2194_v24, %v2358_v4  ;;  %v7771_v42 = vadd.f32 %v3546_v2, %v3314_v10  ;;  %v3316_v36 = vpop.f32.mrf.mxu1  ;;  %v6064_v2 = vld [vmem:[%s8621_s3 + $0x238] sm:$0xff] }
 0x2b8   : > { %2357 = vst [vmem:[#allocation2 + $0xc4] sm:$0xf] %v2193_v49  ;;  %v3317_v62 = vadd.f32 %v3316_v36, %v7584_v35  ;;  %v2767_v20 = vrot.slane %v2765_v47, 1  ;;  %4173 = vmatpush.bf16.msrb.mxu0 %v6064_v2  ;;  %v2541_v36 = vunpack.c.l.b16 %v2363_v27 }
 0x2b9   : > { %3202 = vmatmul.bf16.gmra.mxu0 %v7752_v38  ;;  %2360 = vst [vmem:[#allocation2 + $0xc8] sm:$0x1] %v2359_v29 }
 0x2ba   : > { %3355 = vmatmul.bf16.gmra.mxu1 %v7777_v9  ;;  %3588 = vmatmul.bf16.gmra.mxu3 %v7488_v6  ;;  %v7787_v4 = vsel %vm493_vm0, %v2763_v51, %v2767_v20  ;;  %v2845_v51 = vrot.slane %v7579_v7, 1 }
 0x2bb   : > { %8750 = vst [vmem:[#allocation17_spill] sm:$0xff] %v7787_v4 }
 0x2bc   : > { %v3549_v35 = vpop.f32.mrf.mxu3 }
 0x2bd   : > { %v7789_v54 = vadd.f32 %v3549_v35, %v3317_v62  ;;  %v2844_v35 = vrot.slane %v7573_v22, 1 }
 0x2be   : > { %v3249_v45 = vpop.f32.mrf.mxu2  ;;  %v3165_v10 = vpop.f32.mrf.mxu0 }
 0x2bf   : > { %v7781_v28 = vadd.f32 %v3249_v45, %v3160_v46  ;;  %v7791_v56 = vld [vmem:[#allocation2 + $0xc0] sm:$0xff]  ;;  %v3318_v41 = vpop.f32.mrf.mxu1  ;;  %v7815_v43 = vsel %vm746_vm1, %v2844_v35, %v2845_v51 }
 0x2c0   : > { %v2411_v24 = vld [vmem:[#allocation2 + $0xc8] sm:$0x1]  ;;  %v3319_v6 = vadd.f32 %v3318_v41, %v7605_v34  ;;  %v2772_v47 = vshll.u32 %v7791_v56, 16  ;;  %v2770_v1 = vshrl.u32 %v7791_v56, 16  ;;  %v2559_v41 = vpack.c.b16 %v2541_v36, %v2541_v36 }
 0x2c1   : > { %v2557_v46 = vunpack.c.l.b16 %v2411_v24  ;;  %v6131_v24 = vld [vmem:[#allocation2] sm:$0xff] }
 0x2c2   : > { %v2774_v0 = vrot.slane %v2772_v47, 1  ;;  %v2578_v47 = vshrl.u32 %v6131_v24, 16 }
 0x2c3   : > { %3291 = vmatmul.bf16.gmra.mxu2 %v7787_v4  ;;  %v7802_v37 = vpack.c.b16 %v2557_v46, %v2557_v46  ;;  %v2580_v46 = vshll.u32 %v6131_v24, 16 }
 0x2c4   : > { %v3551_v19 = vpop.f32.mrf.mxu3  ;;  %v2775_v27 = vor.u32 %v2774_v0, %v2770_v1 }
 0x2c5   : > { %v2777_v62 = vshll.u32 %v7802_v37, 16  ;;  %v7809_v20 = vadd.f32 %v3551_v19, %v3319_v6  ;;  %v2585_v19 = vshll.u32 %v2559_v41, 16 }
 0x2c6   : > { %v3252_v49 = vpop.f32.mrf.mxu2  ;;  %v3168_v29 = vpop.f32.mrf.mxu0 }
 0x2c7   : > { %v7804_v34 = vadd.f32 %v3252_v49, %v3163_v16  ;;  %v3321_v45 = vpop.f32.mrf.mxu1  ;;  %v2779_v2 = vrot.slane %v2777_v62, 1  ;;  %v2582_v49 = vrot.slane %v2580_v46, 1 }
 0x2c8   : > { %v3322_v16 = vadd.f32 %v3321_v45, %v7627_v60  ;;  %v2587_v45 = vrot.slane %v2585_v19, 1  ;;  %v2812_v19 = vrot.slane %v2559_v41, 1 }
 0x2c9   : > { %3207 = vmatmul.bf16.gmra.mxu0 %v7791_v56  ;;  %v7822_v36 = vsel %vm493_vm0, %v2775_v27, %v2779_v2  ;;  %v2583_v51 = vor.u32 %v2582_v49, %v2578_v47  ;;  %v2811_v49 = vrot.slane %v6131_v24, 1 }
 0x2ca   : > { %3360 = vmatmul.bf16.gmra.mxu1 %v7815_v43  ;;  %3593 = vmatmul.bf16.gmra.mxu3 %v7525_v12 }
 0x2cb   : > { %v2588_v46 = vsel %vm493_vm0, %v2583_v51, %v2587_v45  ;;  %v6047_v51 = vld [vmem:[%s8621_s3 + $0x1b0] sm:$0xff]  ;;  %v2813_v45 = vsel %vm746_vm1, %v2811_v49, %v2812_v19 }
 0x2cc   : > { %v3554_v60 = vpop.f32.mrf.mxu3  ;;  %3996 = vmatpush.bf16.msrb.mxu1 %v6047_v51 }
 0x2cd   : > { %v7824_v0 = vadd.f32 %v3554_v60, %v3322_v16  ;;  %v2848_v16 = vrot.slane %v7622_v61, 1 }
 0x2ce   : > { %v3254_v7 = vpop.f32.mrf.mxu2  ;;  %v3170_v6 = vpop.f32.mrf.mxu0 }
 0x2cf   : > { %v7819_v4 = vadd.f32 %v3254_v7, %v3165_v10  ;;  %v3323_v62 = vpop.f32.mrf.mxu1  ;;  %v6055_v10 = vld [vmem:[%s8621_s3 + $0x1f0] sm:$0xff] }
 0x2d0   : > { %v3324_v12 = vadd.f32 %v3323_v62, %v7654_v3  ;;  %4085 = vmatpush.bf16.msrb.mxu3 %v6055_v10  ;;  %v2847_v3 = vrot.slane %v7616_v32, 1 }
 0x2d3   : > { %3296 = vmatmul.bf16.gmra.mxu2 %v7822_v36 }
 0x2d4   : > { %v3556_v27 = vpop.f32.mrf.mxu3 }
 0x2d5   : > { %v7835_v2 = vadd.f32 %v3556_v27, %v3324_v12  ;;  %v2851_v27 = vrot.slane %v7671_v52, 1 }
 0x2d6   : > { %v3257_v1 = vpop.f32.mrf.mxu2  ;;  %v3173_v35 = vpop.f32.mrf.mxu0 }
 0x2d7   : > { %v7829_v30 = vadd.f32 %v3257_v1, %v3168_v29  ;;  %v3326_v7 = vpop.f32.mrf.mxu1  ;;  %v7840_v29 = vsel %vm746_vm1, %v2847_v3, %v2848_v16  ;;  %v2850_v3 = vrot.slane %v7665_v48, 1 }
 0x2d8   : > { %v3327_v47 = vadd.f32 %v3326_v7, %v7676_v53 }
 0x2d9   : > { %3632 = vmatmul.bf16.vlgmr.msra.gmra.mxu0 %v2588_v46 }
 0x2da   : > { %3365 = vmatmul.bf16.gmra.mxu1 %v7840_v29  ;;  %3598 = vmatmul.bf16.gmra.mxu3 %v7573_v22  ;;  %v6063_v22 = vld [vmem:[%s8621_s3 + $0x230] sm:$0xff] }
 0x2db   : > { %4174 = vmatpush.bf16.msrb.mxu0 %v6063_v22 }
 0x2dc   : > { %v3559_v53 = vpop.f32.mrf.mxu3 }
 0x2dd   : > { %v7850_v24 = vadd.f32 %v3559_v53, %v3327_v47  ;;  %v7865_v47 = vsel %vm746_vm1, %v2850_v3, %v2851_v27 }
 0x2de   : > { %v3259_v60 = vpop.f32.mrf.mxu2  ;;  %v3175_v61 = vpop.f32.mrf.mxu0  ;;  %8751 = vst [vmem:[#allocation39_spill] sm:$0xff] %v7865_v47 }
 0x2df   : > { %v7844_v62 = vadd.f32 %v3259_v60, %v3170_v6  ;;  %v3328_v41 = vpop.f32.mrf.mxu1 }
 0x2e0   : > { %v3329_v12 = vadd.f32 %v3328_v41, %v7697_v5 }
 0x2e3   : > { %3721 = vmatmul.bf16.vlgmr.msra.gmra.mxu2 %v2813_v45 }
 0x2e4   : > { %v3561_v10 = vpop.f32.mrf.mxu3 }
 0x2e5   : > { %v7860_v16 = vadd.f32 %v3561_v10, %v3329_v12 }
 0x2e6   : > { %v3262_v6 = vpop.f32.mrf.mxu2  ;;  %v3178_v1 = vpop.f32.mrf.mxu0 }
 0x2e7   : > { %v7856_v46 = vadd.f32 %v3262_v6, %v3173_v35  ;;  %v3331_v7 = vpop.f32.mrf.mxu1 }
 0x2e8   : > { %v3332_v5 = vadd.f32 %v3331_v7, %v7723_v33  ;;  %v6053_v7 = vld [vmem:[%s8621_s3 + $0x1e0] sm:$0xff] }
 0x2e9   : > { %3637 = vmatmul.bf16.gmra.mxu0 %v7173_v55 }
 0x2ea   : > { %3370 = vmatmul.bf16.gmra.mxu1 %v7865_v47  ;;  %3603 = vmatmul.bf16.gmra.mxu3 %v7616_v32  ;;  %v6054_v32 = vld [vmem:[%s8621_s3 + $0x1e8] sm:$0xff] }
 0x2eb   : > { %4086 = vmatpush.bf16.msrb.mxu3 %v6054_v32 }
 0x2ed   : > { %v3564_v52 = vpop.f32.mrf.mxu3 }
 0x2ee   : > { %v3264_v35 = vpop.f32.mrf.mxu2  ;;  %v3180_v49 = vpop.f32.mrf.mxu0  ;;  %v7871_v55 = vadd.f32 %v3564_v52, %v3332_v5  ;;  %v6067_v52 = vld [vmem:[%s8623_s5 + $0x10] sm:$0xff] }
 0x2ef   : > { %v7869_v19 = vadd.f32 %v3264_v35, %v3175_v61  ;;  %v3333_v60 = vpop.f32.mrf.mxu1  ;;  %v2854_v61 = vrot.slane %v7720_v31, 1  ;;  %v6046_v31 = vld [vmem:[%s8621_s3 + $0x1a8] sm:$0xff]  ;;  %4087 = vmatpush.bf16.msrb.mxu3 %v6053_v7  ;;  %4886 = vmatpush.bf16.msrb.mxu2 %v6067_v52 }
 0x2f0   : > { %v3334_v51 = vadd.f32 %v3333_v60, %v7743_v11  ;;  %3997 = vmatpush.bf16.msrb.mxu1 %v6046_v31  ;;  %v6044_v60 = vld [vmem:[%s8621_s3 + $0x198] sm:$0xff]  ;;  %v6050_v7 = vld [vmem:[%s8621_s3 + $0x1c8] sm:$0xff] }
 0x2f3   : > { %3726 = vmatmul.bf16.gmra.mxu2 %v7396_v63  ;;  %v2853_v63 = vrot.slane %v7708_v13, 1 }
 0x2f5   : > { %v3566_v41 = vpop.f32.mrf.mxu3  ;;  %v7887_v6 = vsel %vm746_vm1, %v2853_v63, %v2854_v61  ;;  %v6051_v61 = vld [vmem:[%s8621_s3 + $0x1d0] sm:$0xff]  ;;  %v2857_v63 = vrot.slane %v7757_v21, 1  ;;  %v6042_v21 = vld [vmem:[%s8621_s3 + $0x188] sm:$0xff] }
 0x2f6   : > { %v3267_v33 = vpop.f32.mrf.mxu2  ;;  %v3183_v45 = vpop.f32.mrf.mxu0  ;;  %v7882_v12 = vadd.f32 %v3566_v41, %v3334_v51  ;;  %8752 = vst [vmem:[#allocation18_spill] sm:$0xff] %v7887_v6  ;;  %v6052_v51 = vld [vmem:[%s8621_s3 + $0x1d8] sm:$0xff]  ;;  %v6043_v41 = vld [vmem:[%s8621_s3 + $0x190] sm:$0xff] }
 0x2f7   : > { %v7875_v53 = vadd.f32 %v3267_v33, %v3178_v1  ;;  %v3336_v22 = vpop.f32.mrf.mxu1  ;;  %4088 = vmatpush.bf16.msrb.mxu3 %v6052_v51 }
 0x2f8   : > { %v3337_v11 = vadd.f32 %v3336_v22, %v7759_v26  ;;  %v6045_v26 = vld [vmem:[%s8621_s3 + $0x1a0] sm:$0xff] }
 0x2f9   : > { %3642 = vmatmul.bf16.gmra.mxu0 %v7216_v23  ;;  %3998 = vmatpush.bf16.msrb.mxu1 %v6045_v26 }
 0x2fa   : > { %3375 = vmatmul.bf16.gmra.mxu1 %v7887_v6  ;;  %3608 = vmatmul.bf16.gmra.mxu3 %v7665_v48 }
 0x2fb   : > { %4089 = vmatpush.bf16.msrb.mxu3 %v6051_v61 }
 0x2fd   : > { %v3569_v3 = vpop.f32.mrf.mxu3  ;;  %3999 = vmatpush.bf16.msrb.mxu1 %v6044_v60 }
 0x2fe   : > { %v3269_v1 = vpop.f32.mrf.mxu2  ;;  %v3185_v10 = vpop.f32.mrf.mxu0  ;;  %v7902_v5 = vadd.f32 %v3569_v3, %v3337_v11 }
 0x2ff   : > { %v7894_v27 = vadd.f32 %v3269_v1, %v3180_v49  ;;  %v3338_v48 = vpop.f32.mrf.mxu1  ;;  %v6062_v49 = vld [vmem:[%s8621_s3 + $0x228] sm:$0xff]  ;;  %4090 = vmatpush.bf16.msrb.mxu3 %v6050_v7 }
 0x300   : > { %v3339_v35 = vadd.f32 %v3338_v48, %v7781_v28  ;;  %4175 = vmatpush.bf16.msrb.mxu0 %v6062_v49 }
 0x301   : > { %4000 = vmatpush.bf16.msrb.mxu1 %v6043_v41 }
 0x303   : > { %3731 = vmatmul.bf16.gmra.mxu2 %v7428_v44 }
 0x305   : > { %v3571_v22 = vpop.f32.mrf.mxu3  ;;  %4001 = vmatpush.bf16.msrb.mxu1 %v6042_v21 }
 0x306   : > { %v3272_v28 = vpop.f32.mrf.mxu2  ;;  %v3188_v33 = vpop.f32.mrf.mxu0  ;;  %v7928_v11 = vadd.f32 %v3571_v22, %v3339_v35  ;;  %v6041_v35 = vld [vmem:[%s8621_s3 + $0x180] sm:$0xff]  ;;  %v2860_v22 = vrot.slane %v7802_v37, 1 }
 0x307   : > { %v7918_v32 = vadd.f32 %v3272_v28, %v3183_v45  ;;  %v3341_v31 = vpop.f32.mrf.mxu1  ;;  %v2856_v45 = vrot.slane %v7752_v38, 1 }
 0x308   : > { %v3342_v1 = vadd.f32 %v3341_v31, %v7804_v34 }
 0x309   : > { %3647 = vmatmul.bf16.gmra.mxu0 %v7258_v15  ;;  %v7933_v26 = vsel %vm746_vm1, %v2856_v45, %v2857_v63  ;;  %4002 = vmatpush.bf16.msrb.mxu1 %v6041_v35  ;;  %v2859_v45 = vrot.slane %v7791_v56, 1 }
 0x30a   : > { %8753 = vst [vmem:[#allocation20_spill] sm:$0xff] %v7933_v26  ;;  %3380 = vmatmul.bf16.gmra.mxu1 %v7933_v26  ;;  %3613 = vmatmul.bf16.gmra.mxu3 %v7708_v13  ;;  %v6049_v13 = vld [vmem:[%s8621_s3 + $0x1c0] sm:$0xff] }
 0x30b   : > { %4091 = vmatpush.bf16.msrb.mxu3 %v6049_v13 }
 0x30d   : > { %v3574_v49 = vpop.f32.mrf.mxu3 }
 0x30e   : > { %v3274_v3 = vpop.f32.mrf.mxu2  ;;  %v3190_v48 = vpop.f32.mrf.mxu0  ;;  %v7951_v52 = vadd.f32 %v3574_v49, %v3342_v1 }
 0x30f   : > { %v7943_v34 = vadd.f32 %v3274_v3, %v3185_v10  ;;  %v3343_v60 = vpop.f32.mrf.mxu1 }
 0x310   : > { %v3344_v51 = vadd.f32 %v3343_v60, %v7819_v4  ;;  %v7964_v4 = vsel %vm746_vm1, %v2859_v45, %v2860_v22 }
 0x311   : > { %8754 = vst [vmem:[#allocation19_spill] sm:$0xff] %v7964_v4 }
 0x313   : > { %3736 = vmatmul.bf16.gmra.mxu2 %v7472_v18 }
 0x315   : > { %v3576_v61 = vpop.f32.mrf.mxu3 }
 0x316   : > { %v3277_v10 = vpop.f32.mrf.mxu2  ;;  %v3193_v28 = vpop.f32.mrf.mxu0  ;;  %v7959_v63 = vadd.f32 %v3576_v61, %v3344_v51  ;;  %v6132_v61 = vld [vmem:[#allocation2 + $0x18] sm:$0xff] }
 0x317   : > { %v7955_v41 = vadd.f32 %v3277_v10, %v3188_v33  ;;  %v3346_v31 = vpop.f32.mrf.mxu1 }
 0x318   : > { %v3347_v1 = vadd.f32 %v3346_v31, %v7829_v30  ;;  %v6061_v30 = vld [vmem:[%s8621_s3 + $0x220] sm:$0xff] }
 0x319   : > { %3652 = vmatmul.bf16.gmra.mxu0 %v7324_v25 }
 0x31a   : > { %3385 = vmatmul.bf16.gmra.mxu1 %v7964_v4  ;;  %3618 = vmatmul.bf16.gmra.mxu3 %v7752_v38  ;;  %v8758_v4 = vld [vmem:[#allocation11_spill] sm:$0xff] }
 0x31b   : > { %4176 = vmatpush.bf16.msrb.mxu0 %v6061_v30 }
 0x31d   : > { %v3579_v37 = vpop.f32.mrf.mxu3 }
 0x31e   : > { %v3279_v33 = vpop.f32.mrf.mxu2  ;;  %v3195_v21 = vpop.f32.mrf.mxu0  ;;  %v7970_v3 = vadd.f32 %v3579_v37, %v3347_v1 }
 0x31f   : > { %v7968_v7 = vadd.f32 %v3279_v33, %v3190_v48  ;;  %v3348_v35 = vpop.f32.mrf.mxu1 }
 0x320   : > { %v3349_v56 = vadd.f32 %v3348_v35, %v7844_v62 }
 0x323   : > { %3741 = vmatmul.bf16.gmra.mxu2 %v7507_v17 }
 0x325   : > { %v3581_v60 = vpop.f32.mrf.mxu3 }
 0x326   : > { %v3282_v49 = vpop.f32.mrf.mxu2  ;;  %v3198_v13 = vpop.f32.mrf.mxu0  ;;  %v7980_v48 = vadd.f32 %v3581_v60, %v3349_v56 }
 0x327   : > { %v7977_v38 = vadd.f32 %v3282_v49, %v3193_v28  ;;  %v3351_v51 = vpop.f32.mrf.mxu1  ;;  %v6133_v49 = vld [vmem:[#allocation2 + $0x24] sm:$0xff] }
 0x328   : > { %v3352_v10 = vadd.f32 %v3351_v51, %v7856_v46 }
 0x329   : > { %3657 = vmatmul.bf16.gmra.mxu0 %v7365_v50 }
 0x32a   : > { %4003 = vmatmul.bf16.vlgmr.msrb.gmra.mxu1 %v6132_v61  ;;  %4092 = vmatmul.bf16.vlgmr.msrb.gmra.mxu3 %v7216_v23 }
 0x32d   : > { %v3584_v45 = vpop.f32.mrf.mxu3 }
 0x32e   : > { %v3284_v62 = vpop.f32.mrf.mxu2  ;;  %v3200_v22 = vpop.f32.mrf.mxu0  ;;  %v7986_v1 = vadd.f32 %v3584_v45, %v3352_v10 }
 0x32f   : > { %v7984_v31 = vadd.f32 %v3284_v62, %v3195_v21  ;;  %v3353_v28 = vpop.f32.mrf.mxu1 }
 0x330   : > { %v3354_v33 = vadd.f32 %v3353_v28, %v7869_v19 }
 0x333   : > { %3746 = vmatmul.bf16.gmra.mxu2 %v7554_v59 }
 0x335   : > { %v3586_v46 = vpop.f32.mrf.mxu3 }
 0x336   : > { %v3287_v37 = vpop.f32.mrf.mxu2  ;;  %v3203_v35 = vpop.f32.mrf.mxu0  ;;  %v7993_v23 = vadd.f32 %v3586_v46, %v3354_v33 }
 0x337   : > { %v7990_v56 = vadd.f32 %v3287_v37, %v3198_v13  ;;  %v3356_v30 = vpop.f32.mrf.mxu1  ;;  %v8755_v37 = vld [vmem:[#allocation12_spill] sm:$0xff] }
 0x338   : > { %v3357_v21 = vadd.f32 %v3356_v30, %v7875_v53  ;;  %v6060_v53 = vld [vmem:[%s8621_s3 + $0x218] sm:$0xff] }
 0x339   : > { %3662 = vmatmul.bf16.gmra.mxu0 %v7403_v58 }
 0x33a   : > { %4008 = vmatmul.bf16.gmra.mxu1 %v6133_v49  ;;  %4097 = vmatmul.bf16.gmra.mxu3 %v7258_v15  ;;  %v6066_v15 = vld [vmem:[%s8623_s5 + $0x8] sm:$0xff] }
 0x33b   : > { %4177 = vmatpush.bf16.msrb.mxu0 %v6060_v53  ;;  %4887 = vmatpush.bf16.msrb.mxu2 %v6066_v15 }
 0x33d   : > { %v3589_v19 = vpop.f32.mrf.mxu3 }
 0x33e   : > { %v3289_v60 = vpop.f32.mrf.mxu2  ;;  %v3205_v51 = vpop.f32.mrf.mxu0  ;;  %v7999_v61 = vadd.f32 %v3589_v19, %v3357_v21  ;;  %v6134_v21 = vld [vmem:[#allocation2 + $0x30] sm:$0xff] }
 0x33f   : > { %v7997_v10 = vadd.f32 %v3289_v60, %v3200_v22  ;;  %v3358_v13 = vpop.f32.mrf.mxu1 }
 0x340   : > { %v3359_v62 = vadd.f32 %v3358_v13, %v7894_v27 }
 0x343   : > { %3751 = vmatmul.bf16.gmra.mxu2 %v7597_v8 }
 0x345   : > { %v3591_v33 = vpop.f32.mrf.mxu3 }
 0x346   : > { %v3292_v22 = vpop.f32.mrf.mxu2  ;;  %v3208_v45 = vpop.f32.mrf.mxu0  ;;  %v8012_v46 = vadd.f32 %v3591_v33, %v3359_v62 }
 0x347   : > { %v8009_v28 = vadd.f32 %v3292_v22, %v3203_v35  ;;  %v3361_v27 = vpop.f32.mrf.mxu1 }
 0x348   : > { %v3362_v30 = vadd.f32 %v3361_v27, %v7918_v32 }
 0x349   : > { %3667 = vmatmul.bf16.gmra.mxu0 %v8755_v37 }
 0x34a   : > { %4013 = vmatmul.bf16.gmra.mxu1 %v6134_v21  ;;  %4102 = vmatmul.bf16.gmra.mxu3 %v7324_v25  ;;  %v8756_v25 = vld [vmem:[#allocation9_spill] sm:$0xff] }
 0x34d   : > { %v3594_v13 = vpop.f32.mrf.mxu3 }
 0x34e   : > { %v3294_v49 = vpop.f32.mrf.mxu2  ;;  %v3210_v60 = vpop.f32.mrf.mxu0  ;;  %v8018_v53 = vadd.f32 %v3594_v13, %v3362_v30 }
 0x34f   : > { %v8016_v19 = vadd.f32 %v3294_v49, %v3205_v51  ;;  %v3363_v35 = vpop.f32.mrf.mxu1  ;;  %v6135_v49 = vld [vmem:[#allocation2 + $0x3c] sm:$0xff] }
 0x350   : > { %v3364_v62 = vadd.f32 %v3363_v35, %v7943_v34 }
 0x353   : > { %3756 = vmatmul.bf16.gmra.mxu2 %v7646_v39 }
 0x355   : > { %v3596_v27 = vpop.f32.mrf.mxu3 }
 0x356   : > { %v3297_v15 = vpop.f32.mrf.mxu2  ;;  %v3633_v22 = vpop.f32.mrf.mxu0  ;;  %v8026_v21 = vadd.f32 %v3596_v27, %v3364_v62 }
 0x357   : > { %v8022_v33 = vadd.f32 %v3297_v15, %v3208_v45  ;;  %v3634_v32 = vadd.f32 %v3633_v22, %v7750_v14  ;;  %v3366_v51 = vpop.f32.mrf.mxu1 }
 0x358   : > { %v3367_v30 = vadd.f32 %v3366_v51, %v7955_v41  ;;  %v6059_v41 = vld [vmem:[%s8621_s3 + $0x210] sm:$0xff] }
 0x359   : > { %3672 = vmatmul.bf16.gmra.mxu0 %v8756_v25 }
 0x35a   : > { %4018 = vmatmul.bf16.gmra.mxu1 %v6135_v49  ;;  %4107 = vmatmul.bf16.gmra.mxu3 %v7365_v50  ;;  %v8757_v49 = vld [vmem:[#allocation10_spill] sm:$0xff] }
 0x35b   : > { %4178 = vmatpush.bf16.msrb.mxu0 %v6059_v41 }
 0x35d   : > { %v3599_v15 = vpop.f32.mrf.mxu3 }
 0x35e   : > { %v3299_v13 = vpop.f32.mrf.mxu2  ;;  %v3635_v34 = vpop.f32.mrf.mxu0  ;;  %v8033_v14 = vadd.f32 %v3599_v15, %v3367_v30 }
 0x35f   : > { %v8030_v35 = vadd.f32 %v3299_v13, %v3210_v60  ;;  %v3636_v45 = vadd.f32 %v3635_v34, %v7771_v42  ;;  %v3368_v22 = vpop.f32.mrf.mxu1 }
 0x360   : > { %v3369_v62 = vadd.f32 %v3368_v22, %v7968_v7  ;;  %v6136_v7 = vld [vmem:[#allocation2 + $0x48] sm:$0xff] }
 0x363   : > { %3761 = vmatmul.bf16.gmra.mxu2 %v7689_v57 }
 0x365   : > { %v3601_v42 = vpop.f32.mrf.mxu3 }
 0x366   : > { %v3722_v50 = vpop.f32.mrf.mxu2  ;;  %v3638_v27 = vpop.f32.mrf.mxu0  ;;  %v8044_v30 = vadd.f32 %v3601_v42, %v3369_v62 }
 0x367   : > { %v8040_v51 = vadd.f32 %v3722_v50, %v3634_v32  ;;  %v3639_v60 = vadd.f32 %v3638_v27, %v7789_v54  ;;  %v3371_v13 = vpop.f32.mrf.mxu1 }
 0x368   : > { %v3372_v34 = vadd.f32 %v3371_v13, %v7977_v38 }
 0x369   : > { %3677 = vmatmul.bf16.gmra.mxu0 %v8757_v49 }
 0x36a   : > { %4023 = vmatmul.bf16.gmra.mxu1 %v6136_v7  ;;  %4112 = vmatmul.bf16.gmra.mxu3 %v7403_v58 }
 0x36d   : > { %v3604_v50 = vpop.f32.mrf.mxu3 }
 0x36e   : > { %v3724_v15 = vpop.f32.mrf.mxu2  ;;  %v3640_v22 = vpop.f32.mrf.mxu0  ;;  %v8051_v54 = vadd.f32 %v3604_v50, %v3372_v34 }
 0x36f   : > { %v8048_v41 = vadd.f32 %v3724_v15, %v3636_v45  ;;  %v3641_v32 = vadd.f32 %v3640_v22, %v7809_v20  ;;  %v3373_v27 = vpop.f32.mrf.mxu1  ;;  %v6137_v15 = vld [vmem:[#allocation2 + $0x54] sm:$0xff] }
 0x370   : > { %v3374_v62 = vadd.f32 %v3373_v27, %v7984_v31 }
 0x373   : > { %3766 = vmatmul.bf16.gmra.mxu2 %v7737_v40 }
 0x375   : > { %v3606_v7 = vpop.f32.mrf.mxu3 }
 0x376   : > { %v3727_v42 = vpop.f32.mrf.mxu2  ;;  %v3643_v38 = vpop.f32.mrf.mxu0  ;;  %v8059_v45 = vadd.f32 %v3606_v7, %v3374_v62 }
 0x377   : > { %v8055_v13 = vadd.f32 %v3727_v42, %v3639_v60  ;;  %v3644_v58 = vadd.f32 %v3643_v38, %v7824_v0  ;;  %v3376_v20 = vpop.f32.mrf.mxu1 }
 0x378   : > { %v3377_v34 = vadd.f32 %v3376_v20, %v7990_v56  ;;  %v6058_v56 = vld [vmem:[%s8621_s3 + $0x208] sm:$0xff] }
 0x379   : > { %3682 = vmatmul.bf16.gmra.mxu0 %v8758_v4 }
 0x37a   : > { %4028 = vmatmul.bf16.gmra.mxu1 %v6137_v15  ;;  %4117 = vmatmul.bf16.gmra.mxu3 %v8755_v37  ;;  %v6065_v37 = vld [vmem:[%s8623_s5] sm:$0xff] }
 0x37b   : > { %4179 = vmatpush.bf16.msrb.mxu0 %v6058_v56  ;;  %4888 = vmatpush.bf16.msrb.mxu2 %v6065_v37 }
 0x37d   : > { %v3609_v27 = vpop.f32.mrf.mxu3 }
 0x37e   : > { %v3729_v22 = vpop.f32.mrf.mxu2  ;;  %v3645_v31 = vpop.f32.mrf.mxu0  ;;  %v8066_v0 = vadd.f32 %v3609_v27, %v3377_v34  ;;  %v8759_v34 = vld [vmem:[#allocation16_spill] sm:$0xff] }
 0x37f   : > { %v8063_v50 = vadd.f32 %v3729_v22, %v3641_v32  ;;  %v3646_v60 = vadd.f32 %v3645_v31, %v7835_v2  ;;  %v3378_v42 = vpop.f32.mrf.mxu1  ;;  %v6138_v31 = vld [vmem:[#allocation2 + $0x60] sm:$0xff] }
 0x380   : > { %v3379_v62 = vadd.f32 %v3378_v42, %v7997_v10 }
 0x383   : > { %3771 = vmatmul.bf16.gmra.mxu2 %v7777_v9 }
 0x385   : > { %v3611_v20 = vpop.f32.mrf.mxu3 }
 0x386   : > { %v3732_v32 = vpop.f32.mrf.mxu2  ;;  %v3648_v2 = vpop.f32.mrf.mxu0  ;;  %v8080_v10 = vadd.f32 %v3611_v20, %v3379_v62 }
 0x387   : > { %v8076_v38 = vadd.f32 %v3732_v32, %v3644_v58  ;;  %v3649_v7 = vadd.f32 %v3648_v2, %v7850_v24  ;;  %v3381_v15 = vpop.f32.mrf.mxu1 }
 0x388   : > { %v3382_v22 = vadd.f32 %v3381_v15, %v8009_v28 }
 0x389   : > { %3687 = vmatmul.bf16.gmra.mxu0 %v8759_v34 }
 0x38a   : > { %4033 = vmatmul.bf16.gmra.mxu1 %v6138_v31  ;;  %4122 = vmatmul.bf16.gmra.mxu3 %v8756_v25  ;;  %v8762_v31 = vld [vmem:[#allocation13_spill] sm:$0xff] }
 0x38d   : > { %v3614_v37 = vpop.f32.mrf.mxu3 }
 0x38e   : > { %v3734_v27 = vpop.f32.mrf.mxu2  ;;  %v3650_v42 = vpop.f32.mrf.mxu0  ;;  %v8087_v24 = vadd.f32 %v3614_v37, %v3382_v22 }
 0x38f   : > { %v8084_v56 = vadd.f32 %v3734_v27, %v3646_v60  ;;  %v3651_v58 = vadd.f32 %v3650_v42, %v7860_v16  ;;  %v3383_v32 = vpop.f32.mrf.mxu1  ;;  %v6139_v27 = vld [vmem:[#allocation2 + $0x6c] sm:$0xff] }
 0x390   : > { %v3384_v62 = vadd.f32 %v3383_v32, %v8016_v19 }
 0x391   : > { %8760 = vst [vmem:[#allocation43_spill] sm:$0xff] %v8084_v56  ;;  %v6142_v56 = vld [vmem:[#allocation2 + $0x90] sm:$0xff] }
 0x393   : > { %3776 = vmatmul.bf16.gmra.mxu2 %v7815_v43 }
 0x395   : > { %v3616_v15 = vpop.f32.mrf.mxu3 }
 0x396   : > { %v3737_v2 = vpop.f32.mrf.mxu2  ;;  %v3653_v28 = vpop.f32.mrf.mxu0  ;;  %v8095_v60 = vadd.f32 %v3616_v15, %v3384_v62 }
 0x397   : > { %v8091_v20 = vadd.f32 %v3737_v2, %v3649_v7  ;;  %v3654_v25 = vadd.f32 %v3653_v28, %v7871_v55  ;;  %v3386_v16 = vpop.f32.mrf.mxu1 }
 0x398   : > { %v3387_v22 = vadd.f32 %v3386_v16, %v8022_v33  ;;  %v6057_v33 = vld [vmem:[%s8621_s3 + $0x200] sm:$0xff] }
 0x399   : > { %8761 = vst [vmem:[#allocation21_spill] sm:$0xff] %v8091_v20  ;;  %3692 = vmatmul.bf16.gmra.mxu0 %v8762_v31  ;;  %v8765_v16 = vld [vmem:[#allocation14_spill] sm:$0xff] }
 0x39a   : > { %4038 = vmatmul.bf16.gmra.mxu1 %v6139_v27  ;;  %4127 = vmatmul.bf16.gmra.mxu3 %v8757_v49 }
 0x39b   : > { %4180 = vmatpush.bf16.msrb.mxu0 %v6057_v33 }
 0x39d   : > { %v3619_v32 = vpop.f32.mrf.mxu3 }
 0x39e   : > { %v3739_v42 = vpop.f32.mrf.mxu2  ;;  %v3655_v19 = vpop.f32.mrf.mxu0  ;;  %v8102_v55 = vadd.f32 %v3619_v32, %v3387_v22 }
 0x39f   : > { %v8099_v37 = vadd.f32 %v3739_v42, %v3651_v58  ;;  %v3656_v7 = vadd.f32 %v3655_v19, %v7882_v12  ;;  %v3388_v2 = vpop.f32.mrf.mxu1  ;;  %v6140_v42 = vld [vmem:[#allocation2 + $0x78] sm:$0xff] }
 0x3a0   : > { %v3389_v62 = vadd.f32 %v3388_v2, %v8030_v35 }
 0x3a1   : > { %8763 = vst [vmem:[#allocation47_spill] sm:$0xff] %v8099_v37 }
 0x3a3   : > { %3781 = vmatmul.bf16.gmra.mxu2 %v7840_v29 }
 0x3a5   : > { %v3621_v12 = vpop.f32.mrf.mxu3 }
 0x3a6   : > { %v3742_v49 = vpop.f32.mrf.mxu2  ;;  %v3658_v28 = vpop.f32.mrf.mxu0  ;;  %v8113_v22 = vadd.f32 %v3621_v12, %v3389_v62 }
 0x3a7   : > { %v8109_v15 = vadd.f32 %v3742_v49, %v3654_v25  ;;  %v3659_v58 = vadd.f32 %v3658_v28, %v7902_v5  ;;  %v4004_v27 = vpop.f32.mrf.mxu1 }
 0x3a9   : > { %8764 = vst [vmem:[#allocation23_spill] sm:$0xff] %v8109_v15  ;;  %3697 = vmatmul.bf16.gmra.mxu0 %v8765_v16 }
 0x3aa   : > { %4043 = vmatmul.bf16.gmra.mxu1 %v6140_v42  ;;  %4132 = vmatmul.bf16.gmra.mxu3 %v8758_v4  ;;  %v8768_v42 = vld [vmem:[#allocation15_spill] sm:$0xff] }
 0x3ad   : > { %v4093_v25 = vpop.f32.mrf.mxu3 }
 0x3ae   : > { %v3744_v35 = vpop.f32.mrf.mxu2  ;;  %v3660_v19 = vpop.f32.mrf.mxu0  ;;  %v8119_v33 = vadd.f32 %v4093_v25, %v4004_v27 }
 0x3af   : > { %v8116_v32 = vadd.f32 %v3744_v35, %v3656_v7  ;;  %v3661_v2 = vadd.f32 %v3660_v19, %v7928_v11  ;;  %v4006_v5 = vpop.f32.mrf.mxu1  ;;  %v6141_v35 = vld [vmem:[#allocation2 + $0x84] sm:$0xff] }
 0x3b1   : > { %8766 = vst [vmem:[#allocation45_spill] sm:$0xff] %v8116_v32 }
 0x3b3   : > { %3786 = vmatmul.bf16.gmra.mxu2 %v7865_v47 }
 0x3b5   : > { %v4095_v4 = vpop.f32.mrf.mxu3 }
 0x3b6   : > { %v3747_v49 = vpop.f32.mrf.mxu2  ;;  %v3663_v62 = vpop.f32.mrf.mxu0  ;;  %v8126_v7 = vadd.f32 %v4095_v4, %v4006_v5  ;;  %v298_v5 = vld [vmem:[%s6373_s29 + $0xc] sm:$0xf] }
 0x3b7   : > { %v8122_v28 = vadd.f32 %v3747_v49, %v3659_v58  ;;  %v3664_v12 = vadd.f32 %v3663_v62, %v7951_v52  ;;  %v4009_v11 = vpop.f32.mrf.mxu1 }
 0x3b9   : > { %8767 = vst [vmem:[#allocation22_spill] sm:$0xff] %v8122_v28  ;;  %3702 = vmatmul.bf16.gmra.mxu0 %v8768_v42  ;;  %v299_v28 = vld [vmem:[%s6373_s29 + $0x10] sm:$0xf] }
 0x3ba   : > { %4048 = vmatmul.bf16.gmra.mxu1 %v6141_v35  ;;  %4137 = vmatmul.bf16.gmra.mxu3 %v8759_v34  ;;  %v4375_v35 = vshll.u32 %v299_v28, 16  ;;  %v4379_v37 = vshrl.u32 %v299_v28, 16 }
 0x3bd   : > { %v4098_v49 = vpop.f32.mrf.mxu3 }
 0x3be   : > { %v3749_v27 = vpop.f32.mrf.mxu2  ;;  %v3665_v19 = vpop.f32.mrf.mxu0  ;;  %v8132_v52 = vadd.f32 %v4098_v49, %v4009_v11  ;;  %v4381_v49 = vrot.slane %v4379_v37, 4 }
 0x3bf   : > { %v8129_v25 = vadd.f32 %v3749_v27, %v3661_v2  ;;  %v3666_v58 = vadd.f32 %v3665_v19, %v7959_v63  ;;  %v4011_v62 = vpop.f32.mrf.mxu1  ;;  %v4366_v27 = vshrl.u32 %v298_v5, 16  ;;  %v8771_v63 = vld [vmem:[#allocation17_spill] sm:$0xff]  ;;  %v4377_v19 = vrot.slane %v4375_v35, 5 }
 0x3c1   : > { %8769 = vst [vmem:[#allocation46_spill] sm:$0xff] %v8129_v25  ;;  %v4369_v25 = vshll.u32 %v298_v5, 16  ;;  %v4382_v5 = vor.u32 %v4381_v49, %v4377_v19 }
 0x3c3   : > { %3791 = vmatmul.bf16.gmra.mxu2 %v7887_v6  ;;  %v4368_v6 = vrot.slane %v4366_v27, 4  ;;  %v4371_v20 = vrot.slane %v4369_v25, 5  ;;  %v302_v25 = vld [vmem:[%s6373_s29 + $0x1c] sm:$0xf] }
 0x3c5   : > { %v4100_v2 = vpop.f32.mrf.mxu3  ;;  %v4372_v37 = vor.u32 %v4371_v20, %v4368_v6  ;;  %v4399_v6 = vshll.u32 %v302_v25, 16 }
 0x3c6   : > { %v3752_v4 = vpop.f32.mrf.mxu2  ;;  %v3668_v32 = vpop.f32.mrf.mxu0  ;;  %v8141_v11 = vadd.f32 %v4100_v2, %v4011_v62  ;;  %v6143_v62 = vld [vmem:[%s6373_s29 + $0x14] sm:$0x1] }
 0x3c7   : > { %v8137_v15 = vadd.f32 %v3752_v4, %v3664_v12  ;;  %v3669_v34 = vadd.f32 %v3668_v32, %v7970_v3  ;;  %v4014_v47 = vpop.f32.mrf.mxu1  ;;  %v4385_v4 = vshll.u32 %v6143_v62, 16 }
 0x3c9   : > { %8770 = vst [vmem:[#allocation24_spill] sm:$0xff] %v8137_v15  ;;  %3707 = vmatmul.bf16.gmra.mxu0 %v8771_v63  ;;  %v4387_v27 = vrot.slane %v4385_v4, 5  ;;  %v4373_v15 = vrot.slane %v4372_v37, 4 }
 0x3ca   : > { %4053 = vmatmul.bf16.gmra.mxu1 %v6142_v56  ;;  %4142 = vmatmul.bf16.gmra.mxu3 %v8762_v31  ;;  %v301_v56 = vld [vmem:[%s6373_s29 + $0x18] sm:$0xf]  ;;  %v4383_v31 = vrot.slane %v4382_v5, 4 }
 0x3cb   : > { %v4378_v37 = vsel %vm8153_vm13, %v4373_v15, %v4377_v19 }
 0x3cc   : > { %v4388_v5 = vsel %vm8153_vm13, %v4383_v31, %v4387_v27  ;;  %v6145_v31 = vld [vmem:[%s6373_s29 + $0x20] sm:$0x1] }
 0x3cd   : > { %v4103_v35 = vpop.f32.mrf.mxu3  ;;  %v4409_v27 = vshll.u32 %v6145_v31, 16 }
 0x3ce   : > { %v3754_v3 = vpop.f32.mrf.mxu2  ;;  %v3670_v32 = vpop.f32.mrf.mxu0  ;;  %v8148_v2 = vadd.f32 %v4103_v35, %v4014_v47  ;;  %v4403_v47 = vshrl.u32 %v302_v25, 16  ;;  %v4401_v25 = vrot.slane %v4399_v6, 5 }
 0x3cf   : > { %v8144_v28 = vadd.f32 %v3754_v3, %v3666_v58  ;;  %v3671_v12 = vadd.f32 %v3670_v32, %v7980_v48  ;;  %v4390_v3 = vshrl.u32 %v301_v56, 16  ;;  %v4393_v32 = vshll.u32 %v301_v56, 16  ;;  %v4016_v4 = vpop.f32.mrf.mxu1 }
 0x3d0   : > { %v4411_v6 = vrot.slane %v4409_v27, 5 }
 0x3d1   : > { %8772 = vst [vmem:[#allocation50_spill] sm:$0xff] %v8144_v28  ;;  %v4392_v56 = vrot.slane %v4390_v3, 4 }
 0x3d3   : > { %3796 = vmatmul.bf16.gmra.mxu2 %v7933_v26  ;;  %v4395_v26 = vrot.slane %v4393_v32, 5 }
 0x3d5   : > { %v4105_v35 = vpop.f32.mrf.mxu3  ;;  %v4396_v19 = vor.u32 %v4395_v26, %v4392_v56 }
 0x3d6   : > { %v3757_v48 = vpop.f32.mrf.mxu2  ;;  %v3673_v49 = vpop.f32.mrf.mxu0  ;;  %v8165_v28 = vadd.f32 %v4105_v35, %v4016_v4  ;;  %v304_v35 = vld [vmem:[%s6373_s29 + $0x24] sm:$0xf] }
 0x3d7   : > { %v8157_v20 = vadd.f32 %v3757_v48, %v3669_v34  ;;  %v3674_v62 = vadd.f32 %v3673_v49, %v7986_v1  ;;  %v4405_v34 = vrot.slane %v4403_v47, 4  ;;  %v4762_v48 = vunpack.c.l.b16 %v4388_v5  ;;  %v6144_v1 = vld [vmem:[#allocation2 + $0x9c] sm:$0xff] }
 0x3d8   : > { %v4397_v47 = vrot.slane %v4396_v19, 4  ;;  %v4417_v56 = vshll.u32 %v304_v35, 16 }
 0x3d9   : > { %8775 = vst [vmem:[#allocation26_spill] sm:$0xff] %v8157_v20  ;;  %4181 = vmatmul.bf16.vlgmr.msrb.gmra.mxu0 %v7428_v44  ;;  %v4761_v20 = vunpack.c.l.b16 %v4378_v37  ;;  %v4406_v44 = vor.u32 %v4405_v34, %v4401_v25  ;;  %v305_v37 = vld [vmem:[%s6373_s29 + $0x28] sm:$0xf] }
 0x3da   : > { %4058 = vmatmul.bf16.gmra.mxu1 %v6144_v1  ;;  %4147 = vmatmul.bf16.gmra.mxu3 %v8765_v16  ;;  %v4402_v31 = vsel %vm8153_vm13, %v4397_v47, %v4401_v25  ;;  %v4423_v34 = vshll.u32 %v305_v37, 16  ;;  %v4419_v19 = vrot.slane %v4417_v56, 5  ;;  %v308_v56 = vld [vmem:[%s6373_s29 + $0x34] sm:$0xf] }
 0x3db   : > { %v4793_v32 = vpack.c.b16 %v4762_v48, %v4761_v20  ;;  %v4407_v5 = vrot.slane %v4406_v44, 4  ;;  %v4427_v48 = vshrl.u32 %v305_v37, 16  ;;  %v4763_v27 = vunpack.c.l.b16 %v4402_v31 }
 0x3dc   : > { %v4425_v44 = vrot.slane %v4423_v34, 5 }
 0x3dd   : > { %v4412_v26 = vsel %vm8153_vm13, %v4407_v5, %v4411_v6  ;;  %v4429_v25 = vrot.slane %v4427_v48, 4 }
 0x3de   : > { %v3759_v49 = vpop.f32.mrf.mxu2  ;;  %v3675_v15 = vpop.f32.mrf.mxu0 }
 0x3df   : > { %v8169_v4 = vadd.f32 %v3759_v49, %v3671_v12  ;;  %v3676_v3 = vadd.f32 %v3675_v15, %v7993_v23  ;;  %v4414_v12 = vshrl.u32 %v304_v35, 16  ;;  %v4764_v49 = vunpack.c.l.b16 %v4412_v26 }
 0x3e1   : > { %v4416_v15 = vrot.slane %v4414_v12, 4  ;;  %v4794_v5 = vpack.c.b16 %v4764_v49, %v4763_v27  ;;  %v307_v12 = vld [vmem:[%s6373_s29 + $0x30] sm:$0xf] }
 0x3e2   : > { %v4438_v27 = vshrl.u32 %v307_v12, 16  ;;  %v4441_v49 = vshll.u32 %v307_v12, 16 }
 0x3e3   : > { %5900 = vmatmul.msk.bf16.vlgmr.msrb.gmra.mxu2 %vm801_vm2, %v4793_v32  ;;  %v6146_v32 = vld [vmem:[#allocation2 + $0xa8] sm:$0xff]  ;;  %v4420_v37 = vor.u32 %v4419_v19, %v4416_v15  ;;  %v4447_v15 = vshll.u32 %v308_v56, 16  ;;  %v4451_v19 = vshrl.u32 %v308_v56, 16  ;;  %v310_v56 = vld [vmem:[%s6373_s29 + $0x3c] sm:$0xf] }
 0x3e5   : > { %v4421_v31 = vrot.slane %v4420_v37, 4 }
 0x3e6   : > { %v3762_v1 = vpop.f32.mrf.mxu2  ;;  %v3678_v16 = vpop.f32.mrf.mxu0 }
 0x3e7   : > { %v8179_v23 = vadd.f32 %v3762_v1, %v3674_v62  ;;  %v3679_v20 = vadd.f32 %v3678_v16, %v7999_v61  ;;  %v6147_v62 = vld [vmem:[%s6373_s29 + $0x2c] sm:$0x1]  ;;  %v4430_v1 = vor.u32 %v4429_v25, %v4425_v44 }
 0x3e8   : > { %v4433_v6 = vshll.u32 %v6147_v62, 16 }
 0x3e9   : > { %4186 = vmatmul.bf16.gmra.mxu0 %v7472_v18  ;;  %v4431_v26 = vrot.slane %v4430_v1, 4 }
 0x3ea   : > { %4063 = vmatmul.bf16.gmra.mxu1 %v6146_v32  ;;  %4152 = vmatmul.bf16.gmra.mxu3 %v8768_v42  ;;  %v4435_v16 = vrot.slane %v4433_v6, 5  ;;  %v4440_v6 = vrot.slane %v4438_v27, 4 }
 0x3ee   : > { %v3764_v47 = vpop.f32.mrf.mxu2  ;;  %v3680_v61 = vpop.f32.mrf.mxu0 }
 0x3ef   : > { %v8185_v35 = vadd.f32 %v3764_v47, %v3676_v3  ;;  %v3681_v18 = vadd.f32 %v3680_v61, %v8012_v46  ;;  %v4426_v3 = vsel %vm8153_vm13, %v4421_v31, %v4425_v44  ;;  %v4436_v46 = vsel %vm8153_vm13, %v4431_v26, %v4435_v16  ;;  %v6148_v61 = vld [vmem:[#allocation2 + $0xb4] sm:$0xff] }
 0x3f0   : > { %v4765_v25 = vunpack.c.l.b16 %v4426_v3  ;;  %v4766_v62 = vunpack.c.l.b16 %v4436_v46  ;;  %v4449_v47 = vrot.slane %v4447_v15, 5  ;;  %v4465_v15 = vshll.u32 %v310_v56, 16 }
 0x3f2   : > { %v4795_v16 = vpack.c.b16 %v4766_v62, %v4765_v25 }
 0x3f3   : > { %5901 = vmatmul.msk.bf16.gmra.mxu2 %vm801_vm2, %v4794_v5 }
 0x3f6   : > { %v3767_v34 = vpop.f32.mrf.mxu2  ;;  %v3683_v42 = vpop.f32.mrf.mxu0 }
 0x3f7   : > { %v8191_v48 = vadd.f32 %v3767_v34, %v3679_v20  ;;  %v3684_v32 = vadd.f32 %v3683_v42, %v8018_v53  ;;  %v4443_v20 = vrot.slane %v4441_v49, 5  ;;  %v4453_v53 = vrot.slane %v4451_v19, 4  ;;  %v311_v34 = vld [vmem:[%s6373_s29 + $0x40] sm:$0xf] }
 0x3f8   : > { %v4462_v49 = vshrl.u32 %v310_v56, 16  ;;  %v4475_v19 = vshrl.u32 %v311_v34, 16 }
 0x3f9   : > { %4191 = vmatmul.bf16.gmra.mxu0 %v7507_v17  ;;  %v6149_v17 = vld [vmem:[%s6373_s29 + $0x38] sm:$0x1]  ;;  %v4444_v26 = vor.u32 %v4443_v20, %v4440_v6  ;;  %v4454_v12 = vor.u32 %v4453_v53, %v4449_v47  ;;  %v4467_v53 = vrot.slane %v4465_v15, 5 }
 0x3fa   : > { %4068 = vmatmul.bf16.gmra.mxu1 %v6148_v61  ;;  %4157 = vmatmul.bf16.gmra.mxu3 %v8771_v63  ;;  %v4457_v31 = vshll.u32 %v6149_v17, 16  ;;  %v4464_v20 = vrot.slane %v4462_v49, 4  ;;  %v6150_v17 = vld [vmem:[#allocation2 + $0xc0] sm:$0xff] }
 0x3fb   : > { %v4445_v3 = vrot.slane %v4444_v26, 4  ;;  %v4455_v46 = vrot.slane %v4454_v12, 4 }
 0x3fc   : > { %v4459_v42 = vrot.slane %v4457_v31, 5  ;;  %v4468_v26 = vor.u32 %v4467_v53, %v4464_v20 }
 0x3fd   : > { %v4450_v62 = vsel %vm8153_vm13, %v4445_v3, %v4449_v47 }
 0x3fe   : > { %v3769_v44 = vpop.f32.mrf.mxu2  ;;  %v3685_v5 = vpop.f32.mrf.mxu0  ;;  %v4460_v6 = vsel %vm8153_vm13, %v4455_v46, %v4459_v42  ;;  %v4469_v3 = vrot.slane %v4468_v26, 4 }
 0x3ff   : > { %v8200_v37 = vadd.f32 %v3769_v44, %v3681_v18  ;;  %v3686_v1 = vadd.f32 %v3685_v5, %v8026_v21  ;;  %v4471_v18 = vshll.u32 %v311_v34, 16  ;;  %v4477_v44 = vrot.slane %v4475_v19, 4 }
 0x400   : > { %v4767_v5 = vunpack.c.l.b16 %v4450_v62 }
 0x401   : > { %v4473_v61 = vrot.slane %v4471_v18, 5 }
 0x403   : > { %5902 = vmatmul.msk.bf16.gmra.mxu2 %vm801_vm2, %v4795_v16  ;;  %v4768_v16 = vunpack.c.l.b16 %v4460_v6  ;;  %v4478_v12 = vor.u32 %v4477_v44, %v4473_v61  ;;  %v4474_v15 = vsel %vm8153_vm13, %v4469_v3, %v4473_v61 }
 0x404   : > { %v4769_v53 = vunpack.c.l.b16 %v4474_v15 }
 0x405   : > { %v4796_v34 = vpack.c.b16 %v4768_v16, %v4767_v5  ;;  %v4479_v46 = vrot.slane %v4478_v12, 4 }
 0x406   : > { %v3772_v27 = vpop.f32.mrf.mxu2  ;;  %v3688_v63 = vpop.f32.mrf.mxu0 }
 0x407   : > { %v8207_v21 = vadd.f32 %v3772_v27, %v3684_v32  ;;  %v3689_v25 = vadd.f32 %v3688_v63, %v8033_v14  ;;  %v6151_v14 = vld [vmem:[%s6373_s29 + $0x44] sm:$0x1]  ;;  %v313_v27 = vld [vmem:[%s6373_s29 + $0x48] sm:$0xf]  ;;  %v314_v63 = vld [vmem:[%s6373_s29 + $0x4c] sm:$0xf] }
 0x408   : > { %v4481_v32 = vshll.u32 %v6151_v14, 16  ;;  %v4486_v18 = vshrl.u32 %v313_v27, 16  ;;  %v4489_v19 = vshll.u32 %v313_v27, 16  ;;  %v4495_v6 = vshll.u32 %v314_v63, 16  ;;  %v6152_v14 = vld [vmem:[%s6373_s29 + $0x50] sm:$0x1] }
 0x409   : > { %4196 = vmatmul.bf16.gmra.mxu0 %v7554_v59  ;;  %v4499_v20 = vshrl.u32 %v314_v63, 16  ;;  %v317_v27 = vld [vmem:[%s6373_s29 + $0x58] sm:$0xf] }
 0x40a   : > { %4073 = vmatmul.bf16.gmra.mxu1 %v6150_v17  ;;  %4162 = vmatmul.bf16.gmra.mxu3 %v7822_v36  ;;  %v4483_v42 = vrot.slane %v4481_v32, 5  ;;  %v4488_v5 = vrot.slane %v4486_v18, 4  ;;  %v4491_v16 = vrot.slane %v4489_v19, 5  ;;  %v4497_v17 = vrot.slane %v4495_v6, 5 }
 0x40b   : > { %v4501_v61 = vrot.slane %v4499_v20, 4  ;;  %v4505_v32 = vshll.u32 %v6152_v14, 16  ;;  %v4519_v19 = vshll.u32 %v317_v27, 16  ;;  %v4523_v6 = vshrl.u32 %v317_v27, 16 }
 0x40c   : > { %v4492_v12 = vor.u32 %v4491_v16, %v4488_v5 }
 0x40d   : > { %v4525_v5 = vrot.slane %v4523_v6, 4 }
 0x40e   : > { %v3774_v47 = vpop.f32.mrf.mxu2  ;;  %v3690_v31 = vpop.f32.mrf.mxu0 }
 0x40f   : > { %v8217_v56 = vadd.f32 %v3774_v47, %v3686_v1  ;;  %v3691_v59 = vadd.f32 %v3690_v31, %v8044_v30  ;;  %v4484_v1 = vsel %vm8153_vm13, %v4479_v46, %v4483_v42  ;;  %v4493_v42 = vrot.slane %v4492_v12, 4  ;;  %v316_v46 = vld [vmem:[%s6373_s29 + $0x54] sm:$0xf] }
 0x410   : > { %v4770_v44 = vunpack.c.l.b16 %v4484_v1  ;;  %v4510_v1 = vshrl.u32 %v316_v46, 16  ;;  %v4513_v18 = vshll.u32 %v316_v46, 16 }
 0x413   : > { %5903 = vmatmul.msk.bf16.gmra.mxu2 %vm801_vm2, %v4796_v34  ;;  %v4502_v34 = vor.u32 %v4501_v61, %v4497_v17 }
 0x415   : > { %v4503_v3 = vrot.slane %v4502_v34, 4  ;;  %v320_v34 = vld [vmem:[%s6373_s29 + $0x64] sm:$0xf] }
 0x416   : > { %v3777_v49 = vpop.f32.mrf.mxu2  ;;  %v3693_v36 = vpop.f32.mrf.mxu0 }
 0x417   : > { %v8227_v30 = vadd.f32 %v3777_v49, %v3689_v25  ;;  %v3694_v62 = vadd.f32 %v3693_v36, %v8051_v54  ;;  %v4797_v25 = vpack.c.b16 %v4770_v44, %v4769_v53  ;;  %v4515_v44 = vrot.slane %v4513_v18, 5 }
 0x419   : > { %4201 = vmatmul.bf16.gmra.mxu0 %v7597_v8  ;;  %v4507_v8 = vrot.slane %v4505_v32, 5 }
 0x41e   : > { %v3779_v47 = vpop.f32.mrf.mxu2  ;;  %v3695_v31 = vpop.f32.mrf.mxu0 }
 0x41f   : > { %v8232_v26 = vadd.f32 %v3779_v47, %v3691_v59  ;;  %v3696_v54 = vadd.f32 %v3695_v31, %v8059_v45  ;;  %v4498_v59 = vsel %vm8153_vm13, %v4493_v42, %v4497_v17  ;;  %v4508_v45 = vsel %vm8153_vm13, %v4503_v3, %v4507_v8  ;;  %v6153_v47 = vld [vmem:[%s6373_s29 + $0x5c] sm:$0x1] }
 0x420   : > { %v4771_v20 = vunpack.c.l.b16 %v4498_v59  ;;  %v4772_v53 = vunpack.c.l.b16 %v4508_v45  ;;  %v4529_v31 = vshll.u32 %v6153_v47, 16  ;;  %v4547_v59 = vshrl.u32 %v320_v34, 16 }
 0x422   : > { %v4798_v32 = vpack.c.b16 %v4772_v53, %v4771_v20  ;;  %v4531_v8 = vrot.slane %v4529_v31, 5  ;;  %v4549_v53 = vrot.slane %v4547_v59, 4 }
 0x423   : > { %5904 = vmatmul.msk.bf16.gmra.mxu2 %vm801_vm2, %v4797_v25 }
 0x426   : > { %v3782_v63 = vpop.f32.mrf.mxu2  ;;  %v3698_v49 = vpop.f32.mrf.mxu0 }
 0x427   : > { %v8238_v36 = vadd.f32 %v3782_v63, %v3694_v62  ;;  %v3699_v15 = vadd.f32 %v3698_v49, %v8066_v0  ;;  %v4512_v62 = vrot.slane %v4510_v1, 4  ;;  %v4521_v0 = vrot.slane %v4519_v19, 5 }
 0x428   : > { %v4543_v49 = vshll.u32 %v320_v34, 16  ;;  %v323_v34 = vld [vmem:[%s6373_s29 + $0x70] sm:$0xf] }
 0x429   : > { %4206 = vmatmul.bf16.gmra.mxu0 %v7646_v39  ;;  %v4516_v25 = vor.u32 %v4515_v44, %v4512_v62  ;;  %v4526_v12 = vor.u32 %v4525_v5, %v4521_v0  ;;  %v319_v39 = vld [vmem:[%s6373_s29 + $0x60] sm:$0xf] }
 0x42a   : > { %v4534_v63 = vshrl.u32 %v319_v39, 16  ;;  %v4545_v20 = vrot.slane %v4543_v49, 5  ;;  %v4571_v49 = vshrl.u32 %v323_v34, 16 }
 0x42b   : > { %v4517_v42 = vrot.slane %v4516_v25, 4  ;;  %v4527_v3 = vrot.slane %v4526_v12, 4 }
 0x42c   : > { %v4536_v19 = vrot.slane %v4534_v63, 4 }
 0x42d   : > { %v4522_v1 = vsel %vm8153_vm13, %v4517_v42, %v4521_v0  ;;  %v4532_v18 = vsel %vm8153_vm13, %v4527_v3, %v4531_v8 }
 0x42e   : > { %v3784_v16 = vpop.f32.mrf.mxu2  ;;  %v3700_v17 = vpop.f32.mrf.mxu0  ;;  %v4773_v62 = vunpack.c.l.b16 %v4522_v1  ;;  %v4774_v44 = vunpack.c.l.b16 %v4532_v18 }
 0x42f   : > { %v8246_v61 = vadd.f32 %v3784_v16, %v3696_v54  ;;  %v3701_v14 = vadd.f32 %v3700_v17, %v8080_v10  ;;  %v4537_v54 = vshll.u32 %v319_v39, 16  ;;  %v322_v39 = vld [vmem:[%s6373_s29 + $0x6c] sm:$0xf] }
 0x430   : > { %v4799_v31 = vpack.c.b16 %v4774_v44, %v4773_v62 }
 0x431   : > { %v4539_v6 = vrot.slane %v4537_v54, 5  ;;  %v4567_v54 = vshll.u32 %v323_v34, 16 }
 0x433   : > { %5905 = vmatmul.msk.bf16.gmra.mxu2 %vm801_vm2, %v4798_v32  ;;  %v4540_v17 = vor.u32 %v4539_v6, %v4536_v19  ;;  %v4550_v32 = vor.u32 %v4549_v53, %v4545_v20  ;;  %v4569_v6 = vrot.slane %v4567_v54, 5  ;;  %v4573_v53 = vrot.slane %v4571_v49, 4 }
 0x435   : > { %v4541_v25 = vrot.slane %v4540_v17, 4  ;;  %v4551_v12 = vrot.slane %v4550_v32, 4  ;;  %v8280_v17 = vpop.f32.mrf.mxu1  ;;  %v8282_v32 = vpop.f32.mrf.mxu3 }
 0x436   : > { %v3787_v46 = vpop.f32.mrf.mxu2  ;;  %v3703_v27 = vpop.f32.mrf.mxu0 }
 0x437   : > { %v8253_v10 = vadd.f32 %v3787_v46, %v3699_v15  ;;  %v3704_v45 = vadd.f32 %v3703_v27, %v8087_v24  ;;  %v6154_v15 = vld [vmem:[%s6373_s29 + $0x68] sm:$0x1]  ;;  %v4546_v3 = vsel %vm8153_vm13, %v4541_v25, %v4545_v20  ;;  %v4558_v46 = vshrl.u32 %v322_v39, 16  ;;  %v6155_v20 = vld [vmem:[%s6373_s29 + $0x74] sm:$0x1] }
 0x438   : > { %v4553_v5 = vshll.u32 %v6154_v15, 16  ;;  %v4561_v27 = vshll.u32 %v322_v39, 16  ;;  %v4775_v59 = vunpack.c.l.b16 %v4546_v3  ;;  %v4577_v62 = vshll.u32 %v6155_v20, 16  ;;  %v325_v25 = vld [vmem:[%s6373_s29 + $0x78] sm:$0xf] }
 0x439   : > { %4211 = vmatmul.bf16.gmra.mxu0 %v7689_v57  ;;  %v4560_v18 = vrot.slane %v4558_v46, 4  ;;  %v4582_v3 = vshrl.u32 %v325_v25, 16 }
 0x43a   : > { %v4555_v57 = vrot.slane %v4553_v5, 5  ;;  %v4563_v19 = vrot.slane %v4561_v27, 5 }
 0x43e   : > { %v3789_v16 = vpop.f32.mrf.mxu2  ;;  %v3705_v24 = vpop.f32.mrf.mxu0 }
 0x43f   : > { %v8262_v0 = vadd.f32 %v3789_v16, %v3701_v14  ;;  %v3706_v47 = vadd.f32 %v3705_v24, %v8095_v60  ;;  %v4556_v14 = vsel %vm8153_vm13, %v4551_v12, %v4555_v57  ;;  %v4564_v16 = vor.u32 %v4563_v19, %v4560_v18  ;;  %v326_v12 = vld [vmem:[%s6373_s29 + $0x7c] sm:$0xf]  ;;  %v8296_v19 = vpop.f32.mrf.mxu1 }
 0x440   : > { %v4776_v1 = vunpack.c.l.b16 %v4556_v14  ;;  %v4574_v24 = vor.u32 %v4573_v53, %v4569_v6  ;;  %v4585_v14 = vshll.u32 %v325_v25, 16  ;;  %v4591_v46 = vshll.u32 %v326_v12, 16  ;;  %v329_v25 = vld [vmem:[%s6373_s29 + $0x88] sm:$0xf] }
 0x441   : > { %v4595_v27 = vshrl.u32 %v326_v12, 16 }
 0x442   : > { %v4575_v57 = vrot.slane %v4574_v24, 4 }
 0x443   : > { %5906 = vmatmul.msk.bf16.gmra.mxu2 %vm801_vm2, %v4799_v31  ;;  %v4565_v31 = vrot.slane %v4564_v16, 4  ;;  %v4597_v18 = vrot.slane %v4595_v27, 4 }
 0x446   : > { %v3792_v8 = vpop.f32.mrf.mxu2  ;;  %v3708_v42 = vpop.f32.mrf.mxu0 }
 0x447   : > { %v8272_v60 = vadd.f32 %v3792_v8, %v3704_v45  ;;  %v3709_v63 = vadd.f32 %v3708_v42, %v8102_v55  ;;  %v4800_v45 = vpack.c.b16 %v4776_v1, %v4775_v59  ;;  %v4584_v59 = vrot.slane %v4582_v3, 4 }
 0x448   : > { %v4587_v1 = vrot.slane %v4585_v14, 5  ;;  %v4619_v3 = vshrl.u32 %v329_v25, 16  ;;  %v8320_v14 = vpop.f32.mrf.mxu1 }
 0x449   : > { %4216 = vmatmul.bf16.gmra.mxu0 %v7737_v40  ;;  %v4579_v40 = vrot.slane %v4577_v62, 5 }
 0x44a   : > { %v4588_v16 = vor.u32 %v4587_v1, %v4584_v59 }
 0x44b   : > { %v4580_v42 = vsel %vm8153_vm13, %v4575_v57, %v4579_v40 }
 0x44c   : > { %v4589_v12 = vrot.slane %v4588_v16, 4 }
 0x44e   : > { %v3794_v44 = vpop.f32.mrf.mxu2  ;;  %v3710_v15 = vpop.f32.mrf.mxu0 }
 0x44f   : > { %v8277_v5 = vadd.f32 %v3794_v44, %v3706_v47  ;;  %v3711_v55 = vadd.f32 %v3710_v15, %v8113_v22  ;;  %v4570_v22 = vsel %vm8153_vm13, %v4565_v31, %v4569_v6  ;;  %v8298_v6 = vpop.f32.mrf.mxu3  ;;  %v6156_v15 = vld [vmem:[%s6373_s29 + $0x80] sm:$0x1]  ;;  %v328_v31 = vld [vmem:[%s6373_s29 + $0x84] sm:$0xf] }
 0x450   : > { %v4777_v49 = vunpack.c.l.b16 %v4570_v22 }
 0x453   : > { %5907 = vmatmul.msk.bf16.gmra.mxu2 %vm801_vm2, %v4800_v45  ;;  %v4601_v45 = vshll.u32 %v6156_v15, 16 }
 0x456   : > { %v3797_v39 = vpop.f32.mrf.mxu2  ;;  %v4182_v34 = vpop.f32.mrf.mxu0 }
 0x457   : > { %v8287_v8 = vadd.f32 %v3797_v39, %v3709_v63  ;;  %v4183_v47 = vadd.f32 %v4182_v34, %v8119_v33  ;;  %v4778_v63 = vunpack.c.l.b16 %v4580_v42  ;;  %v4593_v33 = vrot.slane %v4591_v46, 5  ;;  %v8322_v46 = vpop.f32.mrf.mxu3 }
 0x458   : > { %v4606_v34 = vshrl.u32 %v328_v31, 16  ;;  %v4615_v42 = vshll.u32 %v329_v25, 16 }
 0x459   : > { %v4262_v54 = vadd.f32 %v4183_v47, %v8040_v51  ;;  %4221 = vmatmul.bf16.gmra.mxu0 %v7777_v9  ;;  %v8303_v51 = vld [vmem:[%s8622_s4] ss:$0 sm:$0xff]  ;;  %v4801_v44 = vpack.c.b16 %v4778_v63, %v4777_v49  ;;  %v4598_v24 = vor.u32 %v4597_v18, %v4593_v33  ;;  %v4609_v47 = vshll.u32 %v328_v31, 16 }
 0x45a   : > { %v4594_v63 = vsel %vm8153_vm13, %v4589_v12, %v4593_v33 }
 0x45b   : > { %v4298_v57 = vadd.f32 %v8303_v51, %v4262_v54  ;;  %v4599_v39 = vrot.slane %v4598_v24, 4  ;;  %v6157_v24 = vld [vmem:[%s6373_s29 + $0x8c] sm:$0x1] }
 0x45c   : > { %v4625_v31 = vshll.u32 %v6157_v24, 16 }
 0x45d   : > { %v4330_v27 = vmax.f32 %v4298_v57, 0.0 }
 0x45e   : > { %v3799_v53 = vpop.f32.mrf.mxu2  ;;  %v4184_v20 = vpop.f32.mrf.mxu0 }
 0x45f   : > { %v8305_v9 = vadd.f32 %v3799_v53, %v3711_v55  ;;  %v4185_v62 = vadd.f32 %v4184_v20, %v8126_v7  ;;  %v8316_v55 = vld [vmem:[%s8624_s6] ss:$0 sm:$0xff]  ;;  %v4603_v7 = vrot.slane %v4601_v45, 5  ;;  %v4608_v53 = vrot.slane %v4606_v34, 4  ;;  %v8343_v34 = vpop.f32.mrf.mxu3 }
 0x460   : > { %v4611_v20 = vrot.slane %v4609_v47, 5 }
 0x461   : > { %v4263_v40 = vadd.f32 %v4185_v62, %v8048_v41  ;;  %v4604_v59 = vsel %vm8153_vm13, %v4599_v39, %v4603_v7  ;;  %v4617_v62 = vrot.slane %v4615_v42, 5  ;;  %v8341_v39 = vpop.f32.mrf.mxu1  ;;  %v4627_v42 = vrot.slane %v4625_v31, 5 }
 0x462   : > { %v4780_v16 = vunpack.c.l.b16 %v4604_v59  ;;  %v4612_v33 = vor.u32 %v4611_v20, %v4608_v53 }
 0x463   : > { %5908 = vmatmul.msk.bf16.gmra.mxu2 %vm801_vm2, %v4801_v44  ;;  %v4621_v44 = vrot.slane %v4619_v3, 4  ;;  %v4299_v15 = vadd.f32 %v8303_v51, %v4263_v40 }
 0x465   : > { %v4331_v25 = vmax.f32 %v4299_v15, 0.0 }
 0x466   : > { %v4890_v22 = vpop.f32.mrf.mxu2  ;;  %v4187_v41 = vpop.f32.mrf.mxu0 }
 0x467   : > { %v4891_v54 = vadd.f32 %v8316_v55, %v4890_v22  ;;  %v4188_v49 = vadd.f32 %v4187_v41, %v8132_v52  ;;  %v4779_v52 = vunpack.c.l.b16 %v4594_v63  ;;  %v4613_v41 = vrot.slane %v4612_v33, 4  ;;  %v332_v63 = vld [vmem:[%s6373_s29 + $0x94] sm:$0xf] }
 0x469   : > { %v4970_v1 = vadd.f32 %v4891_v54, %v4330_v27  ;;  %v4264_v18 = vadd.f32 %v4188_v49, %v8055_v13  ;;  %4226 = vmatmul.bf16.gmra.mxu0 %v7815_v43  ;;  %v4622_v43 = vor.u32 %v4621_v44, %v4617_v62  ;;  %v4802_v12 = vpack.c.b16 %v4780_v16, %v4779_v52  ;;  %v331_v49 = vld [vmem:[%s6373_s29 + $0x90] sm:$0xf] }
 0x46a   : > { %v4633_v20 = vshll.u32 %v331_v49, 16  ;;  %v4639_v44 = vshll.u32 %v332_v63, 16  ;;  %v4643_v52 = vshrl.u32 %v332_v63, 16  ;;  %v8776_v63 = vld [vmem:[#allocation43_spill] sm:$0xff] }
 0x46b   : > { %v5002_v45 = vmax.f32 %v4970_v1, 0.0  ;;  %v4623_v3 = vrot.slane %v4622_v43, 4  ;;  %v4300_v27 = vadd.f32 %v8303_v51, %v4264_v18  ;;  %v8361_v43 = vpop.f32.mrf.mxu3 }
 0x46d   : > { %5034 = vst [vmem:[%s8335_s19] sm:$0xff] %v5002_v45  ;;  %v4628_v53 = vsel %vm8153_vm13, %v4623_v3, %v4627_v42  ;;  %v4332_v15 = vmax.f32 %v4300_v27, 0.0 }
 0x46e   : > { %v4892_v57 = vpop.f32.mrf.mxu2  ;;  %v4189_v13 = vpop.f32.mrf.mxu0  ;;  %v4782_v24 = vunpack.c.l.b16 %v4628_v53 }
 0x46f   : > { %v4893_v7 = vadd.f32 %v8316_v55, %v4892_v57  ;;  %v4190_v40 = vadd.f32 %v4189_v13, %v8141_v11  ;;  %v4618_v11 = vsel %vm8153_vm13, %v4613_v41, %v4617_v62  ;;  %v4635_v57 = vrot.slane %v4633_v20, 5  ;;  %v8359_v13 = vpop.f32.mrf.mxu1 }
 0x470   : > { %v4781_v62 = vunpack.c.l.b16 %v4618_v11 }
 0x471   : > { %v4971_v47 = vadd.f32 %v4893_v7, %v4331_v25  ;;  %v4265_v22 = vadd.f32 %v4190_v40, %v8063_v50  ;;  %v4630_v50 = vshrl.u32 %v331_v49, 16  ;;  %v4641_v40 = vrot.slane %v4639_v44, 5  ;;  %v334_v44 = vld [vmem:[%s6373_s29 + $0x9c] sm:$0xf] }
 0x473   : > { %v5003_v54 = vmax.f32 %v4971_v47, 0.0  ;;  %5909 = vmatmul.msk.bf16.gmra.mxu2 %vm801_vm2, %v4802_v12  ;;  %v4632_v31 = vrot.slane %v4630_v50, 4  ;;  %v4301_v25 = vadd.f32 %v8303_v51, %v4265_v22  ;;  %v6158_v12 = vld [vmem:[%s6373_s29 + $0x98] sm:$0x1] }
 0x474   : > { %v4649_v47 = vshll.u32 %v6158_v12, 16 }
 0x475   : > { %5035 = vst [vmem:[%s8335_s19 + $0x8] sm:$0xff] %v5003_v54  ;;  %v4636_v42 = vor.u32 %v4635_v57, %v4632_v31  ;;  %v4333_v3 = vmax.f32 %v4301_v25, 0.0 }
 0x476   : > { %v4895_v59 = vpop.f32.mrf.mxu2  ;;  %v4192_v1 = vpop.f32.mrf.mxu0 }
 0x477   : > { %v4896_v18 = vadd.f32 %v8316_v55, %v4895_v59  ;;  %v4193_v45 = vadd.f32 %v4192_v1, %v8148_v2  ;;  %v4645_v2 = vrot.slane %v4643_v52, 4  ;;  %v4651_v59 = vrot.slane %v4649_v47, 5  ;;  %v8777_v47 = vld [vmem:[#allocation39_spill] sm:$0xff] }
 0x478   : > { %v4637_v1 = vrot.slane %v4636_v42, 4 }
 0x479   : > { %v4972_v16 = vadd.f32 %v4896_v18, %v4332_v15  ;;  %v4266_v33 = vadd.f32 %v4193_v45, %v8076_v38  ;;  %4231 = vmatmul.bf16.gmra.mxu0 %v7840_v29  ;;  %v4803_v29 = vpack.c.b16 %v4782_v24, %v4781_v62  ;;  %v4646_v49 = vor.u32 %v4645_v2, %v4641_v40  ;;  %v335_v15 = vld [vmem:[%s6373_s29 + $0xa0] sm:$0xf]  ;;  %v8373_v18 = vpop.f32.mrf.mxu1  ;;  %v8375_v45 = vpop.f32.mrf.mxu3 }
 0x47a   : > { %v4654_v62 = vshrl.u32 %v334_v44, 16  ;;  %v4657_v24 = vshll.u32 %v334_v44, 16  ;;  %v4663_v31 = vshll.u32 %v335_v15, 16  ;;  %v4109_v2 = vadd.f32 %v8282_v32, %v8280_v17 }
 0x47b   : > { %v5004_v7 = vmax.f32 %v4972_v16, 0.0  ;;  %v4302_v53 = vadd.f32 %v8303_v51, %v4266_v33  ;;  %v4647_v20 = vrot.slane %v4646_v49, 4  ;;  %v4642_v16 = vsel %vm8153_vm13, %v4637_v1, %v4641_v40 }
 0x47c   : > { %v4665_v42 = vrot.slane %v4663_v31, 5  ;;  %v337_v31 = vld [vmem:[%s6373_s29 + $0xa8] sm:$0xf] }
 0x47d   : > { %5036 = vst [vmem:[%s8335_s19 + $0x10] sm:$0xff] %v5004_v7  ;;  %v4334_v33 = vmax.f32 %v4302_v53, 0.0  ;;  %v4652_v25 = vsel %vm8153_vm13, %v4647_v20, %v4651_v59  ;;  %v4667_v7 = vshrl.u32 %v335_v15, 16  ;;  %v8778_v20 = vld [vmem:[#allocation21_spill] sm:$0xff] }
 0x47e   : > { %v4897_v41 = vpop.f32.mrf.mxu2  ;;  %v4194_v38 = vpop.f32.mrf.mxu0  ;;  %v4784_v40 = vunpack.c.l.b16 %v4652_v25 }
 0x47f   : > { %v4898_v27 = vadd.f32 %v8316_v55, %v4897_v41  ;;  %v4195_v54 = vadd.f32 %v4194_v38, %v8165_v28  ;;  %v4783_v41 = vunpack.c.l.b16 %v4642_v16  ;;  %v4656_v38 = vrot.slane %v4654_v62, 4 }
 0x480   : > { %v4669_v49 = vrot.slane %v4667_v7, 4 }
 0x481   : > { %v4973_v22 = vadd.f32 %v4898_v27, %v4333_v3  ;;  %v4267_v11 = vadd.f32 %v4195_v54, %v8776_v63  ;;  %v4804_v17 = vpack.c.b16 %v4784_v40, %v4783_v41  ;;  %v8389_v53 = vpop.f32.mrf.mxu1  ;;  %v8779_v41 = vld [vmem:[#allocation47_spill] sm:$0xff] }
 0x483   : > { %v5005_v50 = vmax.f32 %v4973_v22, 0.0  ;;  %5910 = vmatmul.msk.bf16.gmra.mxu2 %vm801_vm2, %v4803_v29  ;;  %v4659_v29 = vrot.slane %v4657_v24, 5  ;;  %v4303_v3 = vadd.f32 %v8303_v51, %v4267_v11  ;;  %v6159_v22 = vld [vmem:[%s6373_s29 + $0xa4] sm:$0x1] }
 0x484   : > { %v4673_v63 = vshll.u32 %v6159_v22, 16  ;;  %v4114_v22 = vadd.f32 %v8322_v46, %v8320_v14 }
 0x485   : > { %5037 = vst [vmem:[%s8335_s19 + $0x18] sm:$0xff] %v5005_v50  ;;  %v4660_v32 = vor.u32 %v4659_v29, %v4656_v38  ;;  %v8391_v50 = vpop.f32.mrf.mxu3  ;;  %v4335_v11 = vmax.f32 %v4303_v3, 0.0 }
 0x486   : > { %v4900_v28 = vpop.f32.mrf.mxu2  ;;  %v4197_v52 = vpop.f32.mrf.mxu0  ;;  %v4675_v62 = vrot.slane %v4673_v63, 5 }
 0x487   : > { %v4901_v57 = vadd.f32 %v8316_v55, %v4900_v28  ;;  %v4198_v54 = vadd.f32 %v4197_v52, %v4109_v2  ;;  %v4670_v28 = vor.u32 %v4669_v49, %v4665_v42  ;;  %v4111_v52 = vadd.f32 %v8298_v6, %v8296_v19  ;;  %v338_v2 = vld [vmem:[%s6373_s29 + $0xac] sm:$0xf] }
 0x488   : > { %v4661_v25 = vrot.slane %v4660_v32, 4  ;;  %v4691_v49 = vshrl.u32 %v338_v2, 16 }
 0x489   : > { %v4974_v12 = vadd.f32 %v4901_v57, %v4334_v33  ;;  %4236 = vmatmul.bf16.gmra.mxu0 %v8777_v47  ;;  %v4268_v44 = vadd.f32 %v4198_v54, %v8778_v20  ;;  %v4671_v7 = vrot.slane %v4670_v28, 4  ;;  %v4681_v47 = vshll.u32 %v337_v31, 16  ;;  %v8410_v63 = vpop.f32.mrf.mxu1 }
 0x48a   : > { %v4666_v3 = vsel %vm8153_vm13, %v4661_v25, %v4665_v42  ;;  %v4687_v54 = vshll.u32 %v338_v2, 16 }
 0x48b   : > { %v5006_v27 = vmax.f32 %v4974_v12, 0.0  ;;  %v4304_v33 = vadd.f32 %v8303_v51, %v4268_v44  ;;  %v4678_v12 = vshrl.u32 %v337_v31, 16  ;;  %v4683_v20 = vrot.slane %v4681_v47, 5 }
 0x48c   : > { %v4785_v44 = vunpack.c.l.b16 %v4666_v3  ;;  %v4689_v46 = vrot.slane %v4687_v54, 5 }
 0x48d   : > { %5038 = vst [vmem:[%s8335_s19 + $0x20] sm:$0xff] %v5006_v27  ;;  %v4336_v19 = vmax.f32 %v4304_v33, 0.0  ;;  %v4676_v27 = vsel %vm8153_vm13, %v4671_v7, %v4675_v62  ;;  %v4680_v32 = vrot.slane %v4678_v12, 4  ;;  %v4693_v62 = vrot.slane %v4691_v49, 4  ;;  %v8781_v12 = vld [vmem:[#allocation23_spill] sm:$0xff] }
 0x48e   : > { %v4902_v59 = vpop.f32.mrf.mxu2  ;;  %v4199_v1 = vpop.f32.mrf.mxu0 }
 0x48f   : > { %v4903_v15 = vadd.f32 %v8316_v55, %v4902_v59  ;;  %v4200_v24 = vadd.f32 %v4199_v1, %v4111_v52  ;;  %v8412_v59 = vpop.f32.mrf.mxu3 }
 0x491   : > { %v4975_v16 = vadd.f32 %v4903_v15, %v4335_v11  ;;  %v4269_v40 = vadd.f32 %v4200_v24, %v8779_v41  ;;  %v4786_v11 = vunpack.c.l.b16 %v4676_v27  ;;  %v2414_v15 = vld [vmem:[#allocation2 + $0xd4] sm:$0x1]  ;;  %v4684_v24 = vor.u32 %v4683_v20, %v4680_v32 }
 0x492   : > { %v2558_v14 = vunpack.c.l.b16 %v2414_v15  ;;  %v4116_v27 = vadd.f32 %v8343_v34, %v8341_v39  ;;  %v341_v15 = vld [vmem:[%s6373_s29 + $0xb8] sm:$0xf] }
 0x493   : > { %v5007_v57 = vmax.f32 %v4975_v16, 0.0  ;;  %5911 = vmatmul.msk.bf16.gmra.mxu2 %vm801_vm2, %v4804_v17  ;;  %v8780_v17 = vld [vmem:[#allocation18_spill] sm:$0xff]  ;;  %v4305_v42 = vadd.f32 %v8303_v51, %v4269_v40  ;;  %v8416_v16 = vld [vmem:[#allocation2 + $0xcc] sm:$0xff]  ;;  %v4805_v2 = vpack.c.b16 %v4786_v11, %v4785_v44  ;;  %v4685_v49 = vrot.slane %v4684_v24, 4  ;;  %v340_v11 = vld [vmem:[%s6373_s29 + $0xb4] sm:$0xf] }
 0x494   : > { %v8419_v31 = vpack.c.b16 %v2558_v14, %v2558_v14  ;;  %v2784_v33 = vshll.u32 %v8416_v16, 16  ;;  %4078 = vmatmul.bf16.gmra.mxu1 %v8416_v16  ;;  %v2782_v40 = vshrl.u32 %v8416_v16, 16  ;;  %v4702_v24 = vshrl.u32 %v340_v11, 16 }
 0x495   : > { %5039 = vst [vmem:[%s8335_s19 + $0x28] sm:$0xff] %v5007_v57  ;;  %v4337_v57 = vmax.f32 %v4305_v42, 0.0  ;;  %v4690_v34 = vsel %vm8153_vm13, %v4685_v49, %v4689_v46 }
 0x496   : > { %v4905_v38 = vpop.f32.mrf.mxu2  ;;  %v4202_v29 = vpop.f32.mrf.mxu0  ;;  %v2789_v3 = vshll.u32 %v8419_v31, 16 }
 0x497   : > { %v4906_v6 = vadd.f32 %v8316_v55, %v4905_v38  ;;  %v4203_v52 = vadd.f32 %v4202_v29, %v4114_v22  ;;  %v2786_v38 = vrot.slane %v2784_v33, 1  ;;  %v6160_v29 = vld [vmem:[%s6373_s29 + $0xb0] sm:$0x1]  ;;  %v8432_v32 = vpop.f32.mrf.mxu3  ;;  %v4705_v33 = vshll.u32 %v340_v11, 16 }
 0x499   : > { %v4976_v1 = vadd.f32 %v4906_v6, %v4336_v19  ;;  %4241 = vmatmul.bf16.gmra.mxu0 %v8780_v17  ;;  %v4270_v47 = vadd.f32 %v4203_v52, %v8781_v12  ;;  %v4697_v19 = vshll.u32 %v6160_v29, 16  ;;  %v4694_v6 = vor.u32 %v4693_v62, %v4689_v46  ;;  %v8430_v17 = vpop.f32.mrf.mxu1 }
 0x49a   : > { %v2787_v22 = vor.u32 %v2786_v38, %v2782_v40  ;;  %v4119_v46 = vadd.f32 %v8361_v43, %v8359_v13  ;;  %v8783_v38 = vld [vmem:[#allocation20_spill] sm:$0xff]  ;;  %v4787_v29 = vunpack.c.l.b16 %v4690_v34 }
 0x49b   : > { %v5008_v28 = vmax.f32 %v4976_v1, 0.0  ;;  %v2791_v1 = vrot.slane %v2789_v3, 1  ;;  %v4306_v20 = vadd.f32 %v8303_v51, %v4270_v47  ;;  %v4695_v52 = vrot.slane %v4694_v6, 4 }
 0x49c   : > { %v4707_v6 = vrot.slane %v4705_v33, 5 }
 0x49d   : > { %5040 = vst [vmem:[%s8335_s19 + $0x30] sm:$0xff] %v5008_v28  ;;  %v4699_v28 = vrot.slane %v4697_v19, 5  ;;  %v2792_v39 = vsel %vm493_vm0, %v2787_v22, %v2791_v1  ;;  %v4704_v19 = vrot.slane %v4702_v24, 4  ;;  %v4121_v24 = vadd.f32 %v8375_v45, %v8373_v18 }
 0x49e   : > { %v4907_v25 = vpop.f32.mrf.mxu2  ;;  %v4204_v7 = vpop.f32.mrf.mxu0  ;;  %4167 = vmatmul.bf16.gmra.mxu3 %v2792_v39 }
 0x49f   : > { %v4908_v41 = vadd.f32 %v8316_v55, %v4907_v25  ;;  %v4205_v44 = vadd.f32 %v4204_v7, %v4116_v27  ;;  %v4715_v25 = vshrl.u32 %v341_v15, 16  ;;  %v8782_v7 = vld [vmem:[#allocation45_spill] sm:$0xff] }
 0x4a1   : > { %v4977_v54 = vadd.f32 %v4908_v41, %v4337_v57  ;;  %v4711_v57 = vshll.u32 %v341_v15, 16  ;;  %v4271_v12 = vadd.f32 %v4205_v44, %v8782_v7  ;;  %v4700_v41 = vsel %vm8153_vm13, %v4695_v52, %v4699_v28  ;;  %v6161_v44 = vld [vmem:[%s6373_s29 + $0xbc] sm:$0x1]  ;;  %v8784_v52 = vld [vmem:[#allocation22_spill] sm:$0xff] }
 0x4a2   : > { %v4717_v27 = vrot.slane %v4715_v25, 4  ;;  %v4788_v1 = vunpack.c.l.b16 %v4700_v41  ;;  %v4721_v13 = vshll.u32 %v6161_v44, 16  ;;  %v4708_v15 = vor.u32 %v4707_v6, %v4704_v19  ;;  %v343_v41 = vld [vmem:[%s6373_s29 + $0xc0] sm:$0xf] }
 0x4a3   : > { %v5009_v42 = vmax.f32 %v4977_v54, 0.0  ;;  %5912 = vmatmul.msk.bf16.gmra.mxu2 %vm801_vm2, %v4805_v2  ;;  %v4338_v2 = vmax.f32 %v4306_v20, 0.0  ;;  %v4713_v3 = vrot.slane %v4711_v57, 5  ;;  %v4307_v54 = vadd.f32 %v8303_v51, %v4271_v12  ;;  %v8450_v20 = vpop.f32.mrf.mxu1 }
 0x4a4   : > { %v4723_v57 = vrot.slane %v4721_v13, 5  ;;  %v4709_v25 = vrot.slane %v4708_v15, 4  ;;  %v4726_v45 = vshrl.u32 %v343_v41, 16 }
 0x4a5   : > { %5041 = vst [vmem:[%s8335_s19 + $0x38] sm:$0xff] %v5009_v42  ;;  %v8452_v42 = vpop.f32.mrf.mxu3  ;;  %v4718_v28 = vor.u32 %v4717_v27, %v4713_v3  ;;  %v4339_v34 = vmax.f32 %v4307_v54, 0.0  ;;  %v8785_v27 = vld [vmem:[#allocation46_spill] sm:$0xff] }
 0x4a6   : > { %v4910_v14 = vpop.f32.mrf.mxu2  ;;  %v4207_v62 = vpop.f32.mrf.mxu0 }
 0x4a7   : > { %v4911_v47 = vadd.f32 %v8316_v55, %v4910_v14  ;;  %v4208_v22 = vadd.f32 %v4207_v62, %v4119_v46  ;;  %v4806_v62 = vpack.c.b16 %v4788_v1, %v4787_v29  ;;  %v4719_v7 = vrot.slane %v4718_v28, 4  ;;  %v344_v46 = vld [vmem:[%s6373_s29 + $0xc4] sm:$0xf] }
 0x4a8   : > { %v4714_v29 = vsel %vm8153_vm13, %v4709_v25, %v4713_v3  ;;  %v4729_v1 = vshll.u32 %v343_v41, 16  ;;  %v4735_v44 = vshll.u32 %v344_v46, 16  ;;  %v4739_v13 = vshrl.u32 %v344_v46, 16  ;;  %v6162_v41 = vld [vmem:[%s6373_s29 + $0xc8] sm:$0x1] }
 0x4a9   : > { %v4978_v40 = vadd.f32 %v4911_v47, %v4338_v2  ;;  %4246 = vmatmul.bf16.gmra.mxu0 %v8783_v38  ;;  %v4272_v39 = vadd.f32 %v4208_v22, %v8784_v52  ;;  %v4724_v18 = vsel %vm8153_vm13, %v4719_v7, %v4723_v57  ;;  %v4124_v3 = vadd.f32 %v8391_v50, %v8389_v53 }
 0x4aa   : > { %v4789_v15 = vunpack.c.l.b16 %v4714_v29  ;;  %v4790_v28 = vunpack.c.l.b16 %v4724_v18  ;;  %v4728_v52 = vrot.slane %v4726_v45, 4  ;;  %v4745_v46 = vshll.u32 %v6162_v41, 16 }
 0x4ab   : > { %v5010_v49 = vmax.f32 %v4978_v40, 0.0  ;;  %v4308_v12 = vadd.f32 %v8303_v51, %v4272_v39  ;;  %v8469_v19 = vpop.f32.mrf.mxu1 }
 0x4ac   : > { %v4807_v7 = vpack.c.b16 %v4790_v28, %v4789_v15 }
 0x4ad   : > { %5042 = vst [vmem:[%s8335_s19 + $0x40] sm:$0xff] %v5010_v49  ;;  %v8471_v6 = vpop.f32.mrf.mxu3  ;;  %v4340_v49 = vmax.f32 %v4308_v12, 0.0  ;;  %v8787_v12 = vld [vmem:[#allocation24_spill] sm:$0xff] }
 0x4ae   : > { %v4912_v43 = vpop.f32.mrf.mxu2  ;;  %v4209_v11 = vpop.f32.mrf.mxu0 }
 0x4af   : > { %v4913_v14 = vadd.f32 %v8316_v55, %v4912_v43  ;;  %v4210_v47 = vadd.f32 %v4209_v11, %v4121_v24  ;;  %v8786_v11 = vld [vmem:[#allocation19_spill] sm:$0xff]  ;;  %v4737_v24 = vrot.slane %v4735_v44, 5 }
 0x4b1   : > { %v4979_v33 = vadd.f32 %v4913_v14, %v4339_v34  ;;  %v4273_v54 = vadd.f32 %v4210_v47, %v8785_v27  ;;  %v2862_v27 = vrot.slane %v8416_v16, 1 }
 0x4b3   : > { %v5011_v2 = vmax.f32 %v4979_v33, 0.0  ;;  %5913 = vmatmul.msk.bf16.gmra.mxu2 %vm801_vm2, %v4806_v62  ;;  %v4309_v39 = vadd.f32 %v8303_v51, %v4273_v54  ;;  %v4731_v62 = vrot.slane %v4729_v1, 5  ;;  %v4741_v33 = vrot.slane %v4739_v13, 4  ;;  %v8485_v29 = vpop.f32.mrf.mxu1 }
 0x4b4   : > { %v2863_v54 = vrot.slane %v8419_v31, 1  ;;  %v4747_v13 = vrot.slane %v4745_v46, 5 }
 0x4b5   : > { %5043 = vst [vmem:[%s8335_s19 + $0x48] sm:$0xff] %v5011_v2  ;;  %v4341_v50 = vmax.f32 %v4309_v39, 0.0  ;;  %v4732_v47 = vor.u32 %v4731_v62, %v4728_v52  ;;  %v8487_v18 = vpop.f32.mrf.mxu3  ;;  %v4129_v39 = vadd.f32 %v8432_v32, %v8430_v17  ;;  %v4131_v32 = vadd.f32 %v8452_v42, %v8450_v20 }
 0x4b6   : > { %v4915_v40 = vpop.f32.mrf.mxu2  ;;  %v4212_v38 = vpop.f32.mrf.mxu0  ;;  %v4134_v20 = vadd.f32 %v8471_v6, %v8469_v19 }
 0x4b7   : > { %v4916_v22 = vadd.f32 %v8316_v55, %v4915_v40  ;;  %v4213_v14 = vadd.f32 %v4212_v38, %v4124_v3  ;;  %v4742_v40 = vor.u32 %v4741_v33, %v4737_v24  ;;  %v4126_v38 = vadd.f32 %v8412_v59, %v8410_v63 }
 0x4b8   : > { %v4733_v44 = vrot.slane %v4732_v47, 4 }
 0x4b9   : > { %v4980_v43 = vadd.f32 %v4916_v22, %v4340_v49  ;;  %4251 = vmatmul.bf16.gmra.mxu0 %v8786_v11  ;;  %v4274_v53 = vadd.f32 %v4213_v14, %v8787_v12  ;;  %v4743_v3 = vrot.slane %v4742_v40, 4  ;;  %v8788_v11 = vld [vmem:[#allocation50_spill] sm:$0xff] }
 0x4ba   : > { %v4738_v28 = vsel %vm8153_vm13, %v4733_v44, %v4737_v24 }
 0x4bb   : > { %v5012_v34 = vmax.f32 %v4980_v43, 0.0  ;;  %v4310_v49 = vadd.f32 %v8303_v51, %v4274_v53  ;;  %v2864_v43 = vsel %vm746_vm1, %v2862_v27, %v2863_v54  ;;  %v4748_v52 = vsel %vm8153_vm13, %v4743_v3, %v4747_v13  ;;  %v4049_v62 = vpop.f32.mrf.mxu1 }
 0x4bc   : > { %v4791_v14 = vunpack.c.l.b16 %v4738_v28  ;;  %v4792_v12 = vunpack.c.l.b16 %v4748_v52  ;;  %v4136_v28 = vadd.f32 %v8487_v18, %v8485_v29 }
 0x4bd   : > { %5044 = vst [vmem:[%s8335_s19 + $0x50] sm:$0xff] %v5012_v34  ;;  %v4342_v16 = vmax.f32 %v4310_v49, 0.0  ;;  %v4138_v33 = vpop.f32.mrf.mxu3 }
 0x4be   : > { %v4917_v57 = vpop.f32.mrf.mxu2  ;;  %v4214_v25 = vpop.f32.mrf.mxu0  ;;  %v4808_v17 = vpack.c.b16 %v4792_v12, %v4791_v14 }
 0x4bf   : > { %v4918_v2 = vadd.f32 %v8316_v55, %v4917_v57  ;;  %v4215_v1 = vadd.f32 %v4214_v25, %v4126_v38 }
 0x4c1   : > { %v4981_v45 = vadd.f32 %v4918_v2, %v4341_v50  ;;  %v4275_v15 = vadd.f32 %v4215_v1, %v8788_v11  ;;  %v8789_v50 = vld [vmem:[#allocation26_spill] sm:$0xff] }
 0x4c3   : > { %v5013_v22 = vmax.f32 %v4981_v45, 0.0  ;;  %5914 = vmatmul.msk.bf16.gmra.mxu2 %vm801_vm2, %v4807_v7  ;;  %v4311_v57 = vadd.f32 %v8303_v51, %v4275_v15  ;;  %v4051_v45 = vpop.f32.mrf.mxu1 }
 0x4c5   : > { %5045 = vst [vmem:[%s8335_s19 + $0x58] sm:$0xff] %v5013_v22  ;;  %v4343_v2 = vmax.f32 %v4311_v57, 0.0  ;;  %v4140_v27 = vpop.f32.mrf.mxu3 }
 0x4c6   : > { %v4920_v63 = vpop.f32.mrf.mxu2  ;;  %v4217_v59 = vpop.f32.mrf.mxu0 }
 0x4c7   : > { %v4921_v31 = vadd.f32 %v8316_v55, %v4920_v63  ;;  %v4218_v7 = vadd.f32 %v4217_v59, %v4129_v39 }
 0x4c9   : > { %v4982_v34 = vadd.f32 %v4921_v31, %v4342_v16  ;;  %4256 = vmatmul.bf16.gmra.mxu0 %v2864_v43  ;;  %v4276_v58 = vadd.f32 %v4218_v7, %v8789_v50  ;;  %v4139_v7 = vadd.f32 %v4138_v33, %v4049_v62 }
 0x4cb   : > { %v5014_v25 = vmax.f32 %v4982_v34, 0.0  ;;  %v4312_v46 = vadd.f32 %v8303_v51, %v4276_v58  ;;  %v4054_v11 = vpop.f32.mrf.mxu1 }
 0x4cd   : > { %5046 = vst [vmem:[%s8335_s19 + $0x60] sm:$0xff] %v5014_v25  ;;  %v4344_v1 = vmax.f32 %v4312_v46, 0.0  ;;  %v4143_v15 = vpop.f32.mrf.mxu3 }
 0x4ce   : > { %v4922_v53 = vpop.f32.mrf.mxu2  ;;  %v4219_v24 = vpop.f32.mrf.mxu0 }
 0x4cf   : > { %v4923_v47 = vadd.f32 %v8316_v55, %v4922_v53  ;;  %v4220_v38 = vadd.f32 %v4219_v24, %v4131_v32  ;;  %v4141_v32 = vadd.f32 %v4140_v27, %v4051_v45 }
 0x4d1   : > { %v4983_v41 = vadd.f32 %v4923_v47, %v4343_v2  ;;  %v4277_v22 = vadd.f32 %v4220_v38, %v8169_v4 }
 0x4d3   : > { %v5015_v40 = vmax.f32 %v4983_v41, 0.0  ;;  %5915 = vmatmul.msk.bf16.gmra.mxu2 %vm801_vm2, %v4808_v17  ;;  %v4313_v13 = vadd.f32 %v8303_v51, %v4277_v22  ;;  %v4056_v12 = vpop.f32.mrf.mxu1 }
 0x4d5   : > { %5047 = vst [vmem:[%s8335_s19 + $0x68] sm:$0xff] %v5015_v40  ;;  %v4345_v4 = vmax.f32 %v4313_v13, 0.0  ;;  %v4145_v53 = vpop.f32.mrf.mxu3 }
 0x4d6   : > { %v4925_v54 = vpop.f32.mrf.mxu2  ;;  %v4222_v49 = vpop.f32.mrf.mxu0 }
 0x4d7   : > { %v4926_v44 = vadd.f32 %v8316_v55, %v4925_v54  ;;  %v4223_v63 = vadd.f32 %v4222_v49, %v4134_v20 }
 0x4d9   : > { %v4984_v42 = vadd.f32 %v4926_v44, %v4344_v1  ;;  %v4278_v16 = vadd.f32 %v4223_v63, %v8179_v23  ;;  %v4144_v44 = vadd.f32 %v4143_v15, %v4054_v11 }
 0x4db   : > { %v5016_v3 = vmax.f32 %v4984_v42, 0.0  ;;  %v4314_v6 = vadd.f32 %v8303_v51, %v4278_v16  ;;  %v4059_v46 = vpop.f32.mrf.mxu1 }
 0x4dd   : > { %5048 = vst [vmem:[%s8335_s19 + $0x70] sm:$0xff] %v5016_v3  ;;  %v4346_v25 = vmax.f32 %v4314_v6, 0.0  ;;  %v4148_v62 = vpop.f32.mrf.mxu3 }
 0x4de   : > { %v4927_v59 = vpop.f32.mrf.mxu2  ;;  %v4224_v43 = vpop.f32.mrf.mxu0 }
 0x4df   : > { %v4928_v31 = vadd.f32 %v8316_v55, %v4927_v59  ;;  %v4225_v39 = vadd.f32 %v4224_v43, %v4136_v28 }
 0x4e1   : > { %v4985_v19 = vadd.f32 %v4928_v31, %v4345_v4  ;;  %v4279_v57 = vadd.f32 %v4225_v39, %v8185_v35  ;;  %v4146_v4 = vadd.f32 %v4145_v53, %v4056_v12 }
 0x4e3   : > { %v5017_v52 = vmax.f32 %v4985_v19, 0.0  ;;  %v4315_v29 = vadd.f32 %v8303_v51, %v4279_v57  ;;  %v4061_v13 = vpop.f32.mrf.mxu1  ;;  %v4149_v57 = vadd.f32 %v4148_v62, %v4059_v46 }
 0x4e5   : > { %5049 = vst [vmem:[%s8335_s19 + $0x78] sm:$0xff] %v5017_v52  ;;  %v4347_v17 = vmax.f32 %v4315_v29, 0.0  ;;  %v4150_v3 = vpop.f32.mrf.mxu3 }
 0x4e6   : > { %v4930_v34 = vpop.f32.mrf.mxu2  ;;  %v4227_v14 = vpop.f32.mrf.mxu0 }
 0x4e7   : > { %v4931_v23 = vadd.f32 %v8316_v55, %v4930_v34  ;;  %v4228_v50 = vadd.f32 %v4227_v14, %v4139_v7 }
 0x4e9   : > { %v4986_v24 = vadd.f32 %v4931_v23, %v4346_v25  ;;  %v4280_v47 = vadd.f32 %v4228_v50, %v8191_v48 }
 0x4eb   : > { %v5018_v18 = vmax.f32 %v4986_v24, 0.0  ;;  %v4316_v33 = vadd.f32 %v8303_v51, %v4280_v47  ;;  %v4064_v52 = vpop.f32.mrf.mxu1 }
 0x4ed   : > { %5050 = vst [vmem:[%s8335_s19 + $0x80] sm:$0xff] %v5018_v18  ;;  %v4348_v1 = vmax.f32 %v4316_v33, 0.0  ;;  %v4153_v39 = vpop.f32.mrf.mxu3 }
 0x4ee   : > { %v4932_v58 = vpop.f32.mrf.mxu2  ;;  %v4229_v2 = vpop.f32.mrf.mxu0 }
 0x4ef   : > { %v4933_v35 = vadd.f32 %v8316_v55, %v4932_v58  ;;  %v4230_v38 = vadd.f32 %v4229_v2, %v4141_v32  ;;  %v4151_v58 = vadd.f32 %v4150_v3, %v4061_v13 }
 0x4f1   : > { %v4987_v41 = vadd.f32 %v4933_v35, %v4347_v17  ;;  %v4281_v22 = vadd.f32 %v4230_v38, %v8200_v37 }
 0x4f3   : > { %v5019_v40 = vmax.f32 %v4987_v41, 0.0  ;;  %v4317_v45 = vadd.f32 %v8303_v51, %v4281_v22 }
 0x4f5   : > { %5051 = vst [vmem:[%s8335_s19 + $0x88] sm:$0xff] %v5019_v40  ;;  %v4349_v16 = vmax.f32 %v4317_v45, 0.0  ;;  %v4155_v2 = vpop.f32.mrf.mxu3  ;;  %v4154_v40 = vadd.f32 %v4153_v39, %v4064_v52 }
 0x4f6   : > { %v4935_v54 = vpop.f32.mrf.mxu2  ;;  %v4232_v49 = vpop.f32.mrf.mxu0 }
 0x4f7   : > { %v4936_v48 = vadd.f32 %v8316_v55, %v4935_v54  ;;  %v4233_v42 = vadd.f32 %v4232_v49, %v4144_v44 }
 0x4f9   : > { %v4988_v20 = vadd.f32 %v4936_v48, %v4348_v1  ;;  %v4282_v43 = vadd.f32 %v4233_v42, %v8207_v21 }
 0x4fb   : > { %v5020_v27 = vmax.f32 %v4988_v20, 0.0  ;;  %v4318_v11 = vadd.f32 %v8303_v51, %v4282_v43 }
 0x4fd   : > { %5052 = vst [vmem:[%s8335_s19 + $0x90] sm:$0xff] %v5020_v27  ;;  %v4350_v14 = vmax.f32 %v4318_v11, 0.0  ;;  %v4158_v49 = vpop.f32.mrf.mxu3 }
 0x4fe   : > { %v4937_v63 = vpop.f32.mrf.mxu2  ;;  %v4234_v59 = vpop.f32.mrf.mxu0 }
 0x4ff   : > { %v4938_v37 = vadd.f32 %v8316_v55, %v4937_v63  ;;  %v4235_v28 = vadd.f32 %v4234_v59, %v4146_v4 }
 0x501   : > { %v4989_v31 = vadd.f32 %v4938_v37, %v4349_v16  ;;  %v4283_v34 = vadd.f32 %v4235_v28, %v8217_v56  ;;  %v4066_v56 = vpop.f32.mrf.mxu1 }
 0x502   : > { %v4156_v42 = vadd.f32 %v4155_v2, %v4066_v56 }
 0x503   : > { %v5021_v15 = vmax.f32 %v4989_v31, 0.0  ;;  %v4319_v23 = vadd.f32 %v8303_v51, %v4283_v34 }
 0x505   : > { %5053 = vst [vmem:[%s8335_s19 + $0x98] sm:$0xff] %v5021_v15  ;;  %v4351_v18 = vmax.f32 %v4319_v23, 0.0  ;;  %v4160_v16 = vpop.f32.mrf.mxu3 }
 0x506   : > { %v4940_v19 = vpop.f32.mrf.mxu2  ;;  %v4237_v6 = vpop.f32.mrf.mxu0 }
 0x507   : > { %v4941_v21 = vadd.f32 %v8316_v55, %v4940_v19  ;;  %v4238_v12 = vadd.f32 %v4237_v6, %v4149_v57 }
 0x509   : > { %v4990_v25 = vadd.f32 %v4941_v21, %v4350_v14  ;;  %v4284_v29 = vadd.f32 %v4238_v12, %v8227_v30  ;;  %v4069_v54 = vpop.f32.mrf.mxu1 }
 0x50a   : > { %v4159_v15 = vadd.f32 %v4158_v49, %v4069_v54 }
 0x50b   : > { %v5022_v7 = vmax.f32 %v4990_v25, 0.0  ;;  %v4320_v17 = vadd.f32 %v8303_v51, %v4284_v29 }
 0x50d   : > { %5054 = vst [vmem:[%s8335_s19 + $0xa0] sm:$0xff] %v5022_v7  ;;  %v4352_v33 = vmax.f32 %v4320_v17, 0.0 }
 0x50e   : > { %v4942_v53 = vpop.f32.mrf.mxu2  ;;  %v4239_v24 = vpop.f32.mrf.mxu0 }
 0x50f   : > { %v4943_v50 = vadd.f32 %v8316_v55, %v4942_v53  ;;  %v4240_v32 = vadd.f32 %v4239_v24, %v4151_v58 }
 0x511   : > { %v4991_v47 = vadd.f32 %v4943_v50, %v4351_v18  ;;  %v4285_v62 = vadd.f32 %v4240_v32, %v8232_v26  ;;  %v4071_v43 = vpop.f32.mrf.mxu1 }
 0x512   : > { %v4161_v23 = vadd.f32 %v4160_v16, %v4071_v43 }
 0x513   : > { %v5023_v35 = vmax.f32 %v4991_v47, 0.0  ;;  %v4321_v22 = vadd.f32 %v8303_v51, %v4285_v62 }
 0x515   : > { %5055 = vst [vmem:[%s8335_s19 + $0xa8] sm:$0xff] %v5023_v35  ;;  %v4353_v27 = vmax.f32 %v4321_v22, 0.0  ;;  %v6163_v22 = vld [vmem:[%s8622_s4] ss:$0 sm:$0xff] }
 0x516   : > { %v4945_v41 = vpop.f32.mrf.mxu2  ;;  %v4242_v46 = vpop.f32.mrf.mxu0 }
 0x517   : > { %v4946_v30 = vadd.f32 %v8316_v55, %v4945_v41  ;;  %v4243_v48 = vadd.f32 %v4242_v46, %v4154_v40 }
 0x519   : > { %v4992_v38 = vadd.f32 %v4946_v30, %v4352_v33  ;;  %v4286_v45 = vadd.f32 %v4243_v48, %v8238_v36  ;;  %v4074_v25 = vpop.f32.mrf.mxu1 }
 0x51b   : > { %v5024_v1 = vmax.f32 %v4992_v38, 0.0  ;;  %v4322_v3 = vadd.f32 %v8303_v51, %v4286_v45 }
 0x51d   : > { %5056 = vst [vmem:[%s8335_s19 + $0xb0] sm:$0xff] %v5024_v1  ;;  %v4354_v11 = vmax.f32 %v4322_v3, 0.0 }
 0x51e   : > { %v4947_v44 = vpop.f32.mrf.mxu2  ;;  %v4244_v20 = vpop.f32.mrf.mxu0 }
 0x51f   : > { %v4948_v26 = vadd.f32 %v8316_v55, %v4947_v44  ;;  %v4245_v59 = vadd.f32 %v4244_v20, %v4156_v42 }
 0x521   : > { %v4993_v13 = vadd.f32 %v4948_v26, %v4353_v27  ;;  %v4287_v31 = vadd.f32 %v4245_v59, %v8246_v61  ;;  %v4163_v61 = vpop.f32.mrf.mxu3  ;;  %v4076_v47 = vpop.f32.mrf.mxu1 }
 0x522   : > { %v4164_v56 = vadd.f32 %v4163_v61, %v4074_v25 }
 0x523   : > { %v5025_v63 = vmax.f32 %v4993_v13, 0.0  ;;  %v4323_v19 = vadd.f32 %v8303_v51, %v4287_v31 }
 0x525   : > { %5057 = vst [vmem:[%s8335_s19 + $0xb8] sm:$0xff] %v5025_v63  ;;  %v4355_v21 = vmax.f32 %v4323_v19, 0.0 }
 0x526   : > { %v4950_v37 = vpop.f32.mrf.mxu2  ;;  %v4247_v4 = vpop.f32.mrf.mxu0 }
 0x527   : > { %v4951_v36 = vadd.f32 %v8316_v55, %v4950_v37  ;;  %v4248_v52 = vadd.f32 %v4247_v4, %v4159_v15 }
 0x529   : > { %v4994_v28 = vadd.f32 %v4951_v36, %v4354_v11  ;;  %v4288_v14 = vadd.f32 %v4248_v52, %v8253_v10  ;;  %v4165_v17 = vpop.f32.mrf.mxu3  ;;  %v4079_v54 = vpop.f32.mrf.mxu1 }
 0x52a   : > { %v4166_v40 = vadd.f32 %v4165_v17, %v4076_v47 }
 0x52b   : > { %v5026_v6 = vmax.f32 %v4994_v28, 0.0  ;;  %v4324_v12 = vadd.f32 %v8303_v51, %v4288_v14 }
 0x52d   : > { %5058 = vst [vmem:[%s8335_s19 + $0xc0] sm:$0xff] %v5026_v6  ;;  %v4356_v58 = vmax.f32 %v4324_v12, 0.0 }
 0x52e   : > { %v4952_v39 = vpop.f32.mrf.mxu2  ;;  %v4249_v34 = vpop.f32.mrf.mxu0 }
 0x52f   : > { %v4953_v57 = vadd.f32 %v8316_v55, %v4952_v39  ;;  %v4250_v24 = vadd.f32 %v4249_v34, %v4161_v23 }
 0x531   : > { %v4995_v7 = vadd.f32 %v4953_v57, %v4355_v21  ;;  %v4289_v50 = vadd.f32 %v4250_v24, %v8262_v0  ;;  %v4168_v49 = vpop.f32.mrf.mxu3  ;;  %v4081_v59 = vpop.f32.mrf.mxu1 }
 0x532   : > { %v4169_v45 = vadd.f32 %v4168_v49, %v4079_v54 }
 0x533   : > { %v5027_v53 = vmax.f32 %v4995_v7, 0.0  ;;  %v4325_v35 = vadd.f32 %v8303_v51, %v4289_v50 }
 0x535   : > { %5059 = vst [vmem:[%s8335_s19 + $0xc8] sm:$0xff] %v5027_v53  ;;  %v4357_v30 = vmax.f32 %v4325_v35, 0.0 }
 0x536   : > { %v4955_v29 = vpop.f32.mrf.mxu2  ;;  %v4252_v18 = vpop.f32.mrf.mxu0 }
 0x537   : > { %v4956_v10 = vadd.f32 %v8316_v55, %v4955_v29  ;;  %v4253_v41 = vadd.f32 %v4252_v18, %v4164_v56 }
 0x539   : > { %v4996_v2 = vadd.f32 %v4956_v10, %v4356_v58  ;;  %v4290_v33 = vadd.f32 %v4253_v41, %v8272_v60  ;;  %v4170_v43 = vpop.f32.mrf.mxu3 }
 0x53b   : > { %v5028_v32 = vmax.f32 %v4996_v2, 0.0  ;;  %v4326_v51 = vadd.f32 %v6163_v22, %v4290_v33 }
 0x53d   : > { %5060 = vst [vmem:[%s8335_s19 + $0xd0] sm:$0xff] %v5028_v32  ;;  %v4358_v27 = vmax.f32 %v4326_v51, 0.0 }
 0x53e   : > { %v4957_v46 = vpop.f32.mrf.mxu2  ;;  %v4254_v62 = vpop.f32.mrf.mxu0 }
 0x53f   : > { %v4958_v0 = vadd.f32 %v8316_v55, %v4957_v46  ;;  %v4255_v48 = vadd.f32 %v4254_v62, %v4166_v40  ;;  %v6164_v55 = vld [vmem:[%s8624_s6] ss:$0 sm:$0xff] }
 0x541   : > { %v4997_v38 = vadd.f32 %v4958_v0, %v4357_v30  ;;  %v4291_v60 = vadd.f32 %v4255_v48, %v8277_v5  ;;  %v4171_v5 = vadd.f32 %v4170_v43, %v4081_v59 }
 0x543   : > { %v5029_v1 = vmax.f32 %v4997_v38, 0.0  ;;  %v4327_v13 = vadd.f32 %v6163_v22, %v4291_v60 }
 0x545   : > { %5061 = vst [vmem:[%s8335_s19 + $0xd8] sm:$0xff] %v5029_v1  ;;  %v4359_v4 = vmax.f32 %v4327_v13, 0.0 }
 0x546   : > { %v4960_v44 = vpop.f32.mrf.mxu2  ;;  %v4257_v20 = vpop.f32.mrf.mxu0 }
 0x547   : > { %v4961_v26 = vadd.f32 %v6164_v55, %v4960_v44  ;;  %v4258_v63 = vadd.f32 %v4257_v20, %v4169_v45 }
 0x549   : > { %v4998_v42 = vadd.f32 %v4961_v26, %v4358_v27  ;;  %v4292_v37 = vadd.f32 %v4258_v63, %v8287_v8 }
 0x54b   : > { %v5030_v3 = vmax.f32 %v4998_v42, 0.0  ;;  %v4328_v15 = vadd.f32 %v6163_v22, %v4292_v37 }
 0x54d   : > { %5062 = vst [vmem:[%s8335_s19 + $0xe0] sm:$0xff] %v5030_v3  ;;  %v4360_v39 = vmax.f32 %v4328_v15, 0.0 }
 0x54e   : > { %v4962_v16 = vpop.f32.mrf.mxu2  ;;  %v4259_v11 = vpop.f32.mrf.mxu0 }
 0x54f   : > { %v4963_v31 = vadd.f32 %v6164_v55, %v4962_v16  ;;  %v4260_v19 = vadd.f32 %v4259_v11, %v4171_v5 }
 0x551   : > { %v4999_v36 = vadd.f32 %v4963_v31, %v4359_v4  ;;  %v4293_v52 = vadd.f32 %v4260_v19, %v8305_v9 }
 0x553   : > { %v5031_v28 = vmax.f32 %v4999_v36, 0.0  ;;  %v4329_v8 = vadd.f32 %v6163_v22, %v4293_v52 }
 0x555   : > { %5063 = vst [vmem:[%s8335_s19 + $0xe8] sm:$0xff] %v5031_v28  ;;  %v4361_v25 = vmax.f32 %v4329_v8, 0.0 }
 0x556   : > { %v4965_v6 = vpop.f32.mrf.mxu2 }
 0x557   : > { %v4966_v34 = vadd.f32 %v6164_v55, %v4965_v6 }
 0x559   : > { %v5000_v14 = vadd.f32 %v4966_v34, %v4360_v39 }
 0x55b   : > { %v5032_v21 = vmax.f32 %v5000_v14, 0.0 }
 0x55d   : > { %5064 = vst [vmem:[%s8335_s19 + $0xf0] sm:$0xff] %v5032_v21 }
 0x55e   : > { %v4967_v57 = vpop.f32.mrf.mxu2 }
 0x55f   : > { %v4968_v61 = vadd.f32 %v6164_v55, %v4967_v57 }
 0x561   : > { %v5001_v9 = vadd.f32 %v4968_v61, %v4361_v25 }
 0x563   : > { %v5033_v23 = vmax.f32 %v5001_v9, 0.0 }
 0x565   : > { %5065 = vst [vmem:[%s8335_s19 + $0xf8] sm:$0xff] %v5033_v23 }
 0x566   : > { %6222 = shalt.err (!%p6219_p8)
}
 0x567   : > { %s6268_s17 = smov 128   ;;  %s6269_s19 = smov 8  }
 0x568   : > { %6075 = dma.vmem_to_hbm [thread:$0]  (%p6348_p5), %s5080_s15, 4096, %s5082_s8, %s5067_s28, %s6268_s17, %s6268_s17, %s6269_s19  }
 0x569 PF: > { %p6087_p9 = scmp.ge.s32.totalorder %s6261_s27, 2  ;;  %s5096_s9 = sand.u32 1, %s6249_s24  }
 0x56a   : > { %s5097_s13 = scalar_lea.sflag [#allocation5], %s5096_s9 }
 0x56b   : > { %p6082_p10 = pnand %p6087_p9, %p6352_p6 }
 0x56d   : > { %p6083_p11 = pneg %p6082_p10 }
 0x56f   : > { %6244 = dma.done.wait (%p6083_p11), %s5097_s13, 4096  }
 0x570   : > { %6246 = vsyncadd (%p6083_p11), %s5097_s13, 4294963200  ;;  %p18_p12 = scmp.ge.s32.totalorder %s6335_s30, 4   ;;  %s8790_s24 = smov %s6253_s25 }
 0x571   : > { %s8791_s25 = smov %s6257_s26  ;;  %s8792_s26 = smov %s6346_s10 }
 0x572   : > { %s8793_s27 = smov %s6335_s30  ;;  %20 = sbr.rel (!%p18_p12) target bundleno = 4 (0x4), region = 93 }
 0x577   :  { %5103 = vsyncpa [#allocation4], 1 }
 0x578   :  { %5105 = vsyncpa [#allocation4 + $0x1], 1 }
 0x579   :  { %5106 = vsyncpa [#allocation5], 1 }
 0x57a   :  { %5108 = vsyncpa [#allocation5 + $0x1], 1 }

</bundles_post_ra>
